<compile_context>
chip_gen: v7x
topology: tpu7x:2x2x1
jax: 0.10.0
libtpu: 0.0.40
codegen_flags: <defaults>
</compile_context>

<pallas_src>
import math

import numpy as np

import jax
import jax.numpy as jnp
from jax.experimental import pallas as pl
from jax.experimental.pallas import tpu as pltpu


_DC_SUFFIXES = ("w1", "b1", "g1", "be1", "w2", "b2", "g2", "be2")
_PARAM_KEYS = tuple(
    [f"x00_{s}" for s in _DC_SUFFIXES]
    + [f"x10_{s}" for s in _DC_SUFFIXES]
    + ["up_wt", "up_bt"]
    + [f"x01_{s}" for s in _DC_SUFFIXES]
    + ["o01_w", "o01_b", "o10_w", "o10_b"]
)


# ----------------------------------------------------------------------------
# Geometry constants (host-side, become compile-time constants under jit).
# Spatial shuffles (pool subsample, conv-transpose scatter) are expressed as
# 0/1 selector matrices so they stay lane-dense MXU matmuls in the kernel.
# ----------------------------------------------------------------------------

def _make_constants(N, H, W):
    P = H * W
    NPf = N * P
    H2, W2 = H // 2, W // 2
    P2 = H2 * W2
    NPh = N * P2

    pf = np.arange(NPf)
    yf = (pf % P) // W
    xf = pf % W
    mask_f = np.zeros((9, NPf), np.float32)
    for tap in range(9):
        oy, ox = tap // 3 - 1, tap % 3 - 1
        ok = (yf + oy >= 0) & (yf + oy < H) & (xf + ox >= 0) & (xf + ox < W)
        mask_f[tap] = ok.astype(np.float32)

    ph = np.arange(NPh)
    nh = ph // P2
    yh = (ph % P2) // W2
    xh = ph % W2
    mask_h = np.zeros((9, NPh), np.float32)
    for tap in range(9):
        oy, ox = tap // 3 - 1, tap % 3 - 1
        ok = (yh + oy >= 0) & (yh + oy < H2) & (xh + ox >= 0) & (xh + ox < W2)
        mask_h[tap] = ok.astype(np.float32)

    # 2x2 max-pool subsample selector: pooled[:, ph] = u[:, n*P + 2*y*W + 2*x]
    s_pool = np.zeros((NPf, NPh), np.float32)
    s_pool[nh * P + 2 * yh * W + 2 * xh, ph] = 1.0

    # ConvTranspose2d(k=2, s=2) scatter: tap (dy, dx) maps half-res pixel
    # (n, y, x) to full-res pixel (n, 2y+dy, 2x+dx).
    s_up = np.zeros((4, NPh, NPf), np.float32)
    for tap in range(4):
        dy, dx = tap // 2, tap % 2
        s_up[tap, ph, nh * P + (2 * yh + dy) * W + (2 * xh + dx)] = 1.0

    return dict(
        mask_f=jnp.asarray(mask_f),
        mask_h=jnp.asarray(mask_h),
        s_pool=jnp.asarray(s_pool),
        s_up=jnp.asarray(s_up),
    )


# ----------------------------------------------------------------------------
# Fused forward kernel
# ----------------------------------------------------------------------------

def _make_kernel(names, N, H, W):
    P = H * W
    NPf = N * P
    W2 = W // 2

    def kernel(*refs):
        d = dict(zip(names, refs))
        out01_ref = refs[len(names)]
        out10_ref = refs[len(names) + 1]

        mask_f = d["mask_f"][...]
        mask_h = d["mask_h"][...]

        def shift_lanes(x, s):
            # y[:, p] = x[:, (p + s) % npix]   (invalid wrap positions are
            # zeroed by the precomputed boundary masks)
            npix = x.shape[1]
            return pltpu.roll(x, (-s) % npix, axis=1)

        def conv3x3(x, prefix, idx, masks, w_img):
            """3x3 conv, stride 1, pad 1, + bias.  x: (Cin, NP) -> (Cout, NP)."""
            w_ref = d[f"{prefix}_w{idx}"]            # (9, Cout, Cin)
            b = d[f"{prefix}_b{idx}"][...]           # (Cout, 1)
            cout = w_ref.shape[1]
            npix = x.shape[1]
            acc = jnp.zeros((cout, npix), jnp.float32) + b
            for tap in range(9):
                oy, ox = tap // 3 - 1, tap % 3 - 1
                s = oy * w_img + ox
                if s == 0:
                    xs = x
                else:
                    xs = shift_lanes(x, s) * masks[tap:tap + 1, :]
                acc = acc + jnp.dot(w_ref[tap], xs,
                                    preferred_element_type=jnp.float32)
            return acc

        def bn_relu(x, prefix, idx, eps=1e-5):
            """BatchNorm2d (batch statistics over (N,H,W) = lane axis),
            fused affine + ReLU."""
            g = d[f"{prefix}_g{idx}"][...]           # (C, 1)
            be = d[f"{prefix}_be{idx}"][...]         # (C, 1)
            mean = jnp.mean(x, axis=1, keepdims=True)
            var = jnp.mean(jnp.square(x - mean), axis=1, keepdims=True)
            scale = g * jax.lax.rsqrt(var + eps)
            return jnp.maximum((x - mean) * scale + be, 0.0)

        def double_conv(x, prefix, masks, w_img):
            x = bn_relu(conv3x3(x, prefix, 1, masks, w_img), prefix, 1)
            x = bn_relu(conv3x3(x, prefix, 2, masks, w_img), prefix, 2)
            return x

        def maxpool2(x):
            """2x2 max-pool stride 2: two rolled maxes + subsample matmul."""
            t = jnp.maximum(x, shift_lanes(x, 1))     # horizontal pair max
            u = jnp.maximum(t, shift_lanes(t, W))     # vertical pair max
            return jnp.dot(u, d["s_pool"][...],
                           preferred_element_type=jnp.float32)

        def up2x2(x):
            """ConvTranspose2d(kernel=2, stride=2): 4 tap matmuls + scatter."""
            bt = d["up_bt"][...]                      # (Cout, 1)
            cout = d["up_wt"].shape[1]
            acc = jnp.zeros((cout, NPf), jnp.float32) + bt
            for tap in range(4):
                t = jnp.dot(d["up_wt"][tap], x,
                            preferred_element_type=jnp.float32)      # (Cout, NPh)
                acc = acc + jnp.dot(t, d["s_up"][tap],
                                    preferred_element_type=jnp.float32)
            return acc

        x_in = d["x"][...]                                       # (Cin, NPf)
        x00 = double_conv(x_in, "x00", mask_f, W)                # (f, NPf)
        x10 = double_conv(maxpool2(x00), "x10", mask_h, W2)      # (2f, NPh)
        up = up2x2(x10)                                          # (f, NPf)
        x01 = double_conv(jnp.concatenate([x00, up], axis=0),
                          "x01", mask_f, W)                      # (f, NPf)

        out01_ref[...] = (jnp.dot(d["o01_w"][...], x01,
                                  preferred_element_type=jnp.float32)
                          + d["o01_b"][...])
        out10_ref[...] = (jnp.dot(d["o10_w"][...], x10,
                                  preferred_element_type=jnp.float32)
                          + d["o10_b"][...])

    return kernel


# ----------------------------------------------------------------------------
# Forward wrapper (NCHW in / NCHW out, matching the PyTorch module)
# ----------------------------------------------------------------------------

def forward(x_nchw, params):
    N, cin, H, W = x_nchw.shape
    n_classes = params["o01_w"].shape[0]
    NPf = N * H * W
    NPh = N * (H // 2) * (W // 2)

    consts = _make_constants(N, H, W)
    x_flat = jnp.transpose(x_nchw, (1, 0, 2, 3)).reshape(cin, NPf)
    x_flat = x_flat.astype(jnp.float32)

    ordered = [("x", x_flat),
               ("mask_f", consts["mask_f"]),
               ("mask_h", consts["mask_h"]),
               ("s_pool", consts["s_pool"]),
               ("s_up", consts["s_up"])]
    ordered += [(k, params[k].astype(jnp.float32)) for k in _PARAM_KEYS]
    names = [n for n, _ in ordered]
    arrays = [a for _, a in ordered]

    def _full_spec(shape):
        nd = len(shape)
        return pl.BlockSpec(shape, lambda i, _nd=nd: (0,) * _nd)

    out01, out10 = pl.pallas_call(
        _make_kernel(names, N, H, W),
        out_shape=(jax.ShapeDtypeStruct((n_classes, NPf), jnp.float32),
                   jax.ShapeDtypeStruct((n_classes, NPh), jnp.float32)),
        grid=(1,),
        in_specs=[_full_spec(a.shape) for a in arrays],
        out_specs=(_full_spec((n_classes, NPf)),
                   _full_spec((n_classes, NPh))),
        compiler_params=pltpu.CompilerParams(
            dimension_semantics=("arbitrary",)),
    )(*arrays)

    out_01 = jnp.transpose(out01.reshape(n_classes, N, H, W), (1, 0, 2, 3))
    out_10 = jnp.transpose(out10.reshape(n_classes, N, H // 2, W // 2),
                           (1, 0, 2, 3))
    return [out_10, out_01], params["alpha_1"]


# ----------------------------------------------------------------------------
# Deterministic parameter initialization (kaiming-normal convs, N(1,0.02) BN)
# stored directly in the kernel's packed layouts.
# ----------------------------------------------------------------------------

def _kaiming_normal(key, shape, fan_in):
    return math.sqrt(2.0 / fan_in) * jax.random.normal(key, shape, jnp.float32)


def _uniform_bias(key, shape, fan_in):
    bound = 1.0 / math.sqrt(fan_in)
    return jax.random.uniform(key, shape, jnp.float32, -bound, bound)


def _init_double_conv(key, cin, cout, prefix):
    ks = jax.random.split(key, 6)
    p = {}
    p[f"{prefix}_w1"] = _kaiming_normal(ks[0], (9, cout, cin), cin * 9)
    p[f"{prefix}_b1"] = _uniform_bias(ks[1], (cout, 1), cin * 9)
    p[f"{prefix}_g1"] = 1.0 + 0.02 * jax.random.normal(ks[2], (cout, 1), jnp.float32)
    p[f"{prefix}_be1"] = jnp.zeros((cout, 1), jnp.float32)
    p[f"{prefix}_w2"] = _kaiming_normal(ks[3], (9, cout, cout), cout * 9)
    p[f"{prefix}_b2"] = _uniform_bias(ks[4], (cout, 1), cout * 9)
    p[f"{prefix}_g2"] = 1.0 + 0.02 * jax.random.normal(ks[5], (cout, 1), jnp.float32)
    p[f"{prefix}_be2"] = jnp.zeros((cout, 1), jnp.float32)
    return p


def init_params(key, n_channels, n_classes, filters):
    ks = jax.random.split(key, 8)
    p = {}
    p.update(_init_double_conv(ks[0], n_channels, filters, "x00"))          # X_00
    p.update(_init_double_conv(ks[1], filters, 2 * filters, "x10"))         # X_10 (Down)
    kt1, kt2 = jax.random.split(ks[2])
    fan_t = 2 * filters * 4
    # TODO(synk): PyTorch's default ConvTranspose2d init is kaiming_uniform(a=sqrt(5));
    # a scaled normal of the same magnitude is used here.
    p["up_wt"] = (1.0 / math.sqrt(fan_t)) * jax.random.normal(
        kt1, (4, filters, 2 * filters), jnp.float32)
    p["up_bt"] = _uniform_bias(kt2, (filters, 1), fan_t)
    p.update(_init_double_conv(ks[3], 2 * filters, filters, "x01"))         # up_10 DoubleConv
    kw1, kb1 = jax.random.split(ks[4])
    p["o01_w"] = _kaiming_normal(kw1, (n_classes, filters), filters)        # OutConv out_01
    p["o01_b"] = _uniform_bias(kb1, (n_classes, 1), filters)
    kw2, kb2 = jax.random.split(ks[5])
    p["o10_w"] = _kaiming_normal(kw2, (n_classes, 2 * filters), 2 * filters)  # OutConv out_10
    p["o10_b"] = _uniform_bias(kb2, (n_classes, 1), 2 * filters)
    p["alpha_1"] = jnp.full((1, 2), 0.5, jnp.float32)
    return p


# ----------------------------------------------------------------------------
# Main
# ----------------------------------------------------------------------------

if __name__ == "__main__":
    key = jax.random.PRNGKey(0)
    kx, kp = jax.random.split(key)

    # Small shapes consistent with the module: n_channels=3, n_classes=2,
    # filters=8, batch=2, spatial=16x16.
    N, C_IN, H, W = 2, 3, 16, 16
    FILTERS, N_CLASSES = 8, 2

    x = jax.random.normal(kx, (N, C_IN, H, W), jnp.float32)
    params = init_params(kp, C_IN, N_CLASSES, FILTERS)

    outs, alpha = jax.jit(forward)(x, params)
    jax.block_until_ready(outs)
    jax.block_until_ready(alpha)

    assert outs[0].shape == (N, N_CLASSES, H // 2, W // 2)   # out_10 (deep sup)
    assert outs[1].shape == (N, N_CLASSES, H, W)             # out_01
    assert alpha.shape == (1, 2)
    assert all(bool(jnp.all(jnp.isfinite(o))) for o in outs)

    print("KERNEL_OK")
</pallas_src>

<mosaic_0001>
module attributes {stable_mosaic.version = 11 : i64} {
  func.func @kernel(%arg0: i32, %arg1: memref<3x512xf32, #tpu.memory_space<vmem>>, %arg2: memref<9x512xf32, #tpu.memory_space<vmem>>, %arg3: memref<9x128xf32, #tpu.memory_space<vmem>>, %arg4: memref<512x128xf32, #tpu.memory_space<vmem>>, %arg5: memref<4x128x512xf32, #tpu.memory_space<vmem>>, %arg6: memref<9x8x3xf32, #tpu.memory_space<vmem>>, %arg7: memref<8x1xf32, #tpu.memory_space<vmem>>, %arg8: memref<8x1xf32, #tpu.memory_space<vmem>>, %arg9: memref<8x1xf32, #tpu.memory_space<vmem>>, %arg10: memref<9x8x8xf32, #tpu.memory_space<vmem>>, %arg11: memref<8x1xf32, #tpu.memory_space<vmem>>, %arg12: memref<8x1xf32, #tpu.memory_space<vmem>>, %arg13: memref<8x1xf32, #tpu.memory_space<vmem>>, %arg14: memref<9x16x8xf32, #tpu.memory_space<vmem>>, %arg15: memref<16x1xf32, #tpu.memory_space<vmem>>, %arg16: memref<16x1xf32, #tpu.memory_space<vmem>>, %arg17: memref<16x1xf32, #tpu.memory_space<vmem>>, %arg18: memref<9x16x16xf32, #tpu.memory_space<vmem>>, %arg19: memref<16x1xf32, #tpu.memory_space<vmem>>, %arg20: memref<16x1xf32, #tpu.memory_space<vmem>>, %arg21: memref<16x1xf32, #tpu.memory_space<vmem>>, %arg22: memref<4x8x16xf32, #tpu.memory_space<vmem>>, %arg23: memref<8x1xf32, #tpu.memory_space<vmem>>, %arg24: memref<9x8x16xf32, #tpu.memory_space<vmem>>, %arg25: memref<8x1xf32, #tpu.memory_space<vmem>>, %arg26: memref<8x1xf32, #tpu.memory_space<vmem>>, %arg27: memref<8x1xf32, #tpu.memory_space<vmem>>, %arg28: memref<9x8x8xf32, #tpu.memory_space<vmem>>, %arg29: memref<8x1xf32, #tpu.memory_space<vmem>>, %arg30: memref<8x1xf32, #tpu.memory_space<vmem>>, %arg31: memref<8x1xf32, #tpu.memory_space<vmem>>, %arg32: memref<2x8xf32, #tpu.memory_space<vmem>>, %arg33: memref<2x1xf32, #tpu.memory_space<vmem>>, %arg34: memref<2x16xf32, #tpu.memory_space<vmem>>, %arg35: memref<2x1xf32, #tpu.memory_space<vmem>>, %arg36: memref<2x512xf32, #tpu.memory_space<vmem>>, %arg37: memref<2x128xf32, #tpu.memory_space<vmem>>) attributes {dimension_semantics = [#tpu.dimension_semantics<arbitrary>], iteration_bounds = array<i64: 1>, scalar_prefetch = 0 : i64, scratch_operands = 0 : i64, tpu.core_type = #tpu.core_type<tc>, window_params = [{pipeline_mode = #tpu.pipeline_mode<synchronous>, transform_indices = @transform_0, window_bounds = array<i64: 3, 512>}, {pipeline_mode = #tpu.pipeline_mode<synchronous>, transform_indices = @transform_1, window_bounds = array<i64: 9, 512>}, {pipeline_mode = #tpu.pipeline_mode<synchronous>, transform_indices = @transform_2, window_bounds = array<i64: 9, 128>}, {pipeline_mode = #tpu.pipeline_mode<synchronous>, transform_indices = @transform_3, window_bounds = array<i64: 512, 128>}, {pipeline_mode = #tpu.pipeline_mode<synchronous>, transform_indices = @transform_4, window_bounds = array<i64: 4, 128, 512>}, {pipeline_mode = #tpu.pipeline_mode<synchronous>, transform_indices = @transform_5, window_bounds = array<i64: 9, 8, 3>}, {pipeline_mode = #tpu.pipeline_mode<synchronous>, transform_indices = @transform_6, window_bounds = array<i64: 8, 1>}, {pipeline_mode = #tpu.pipeline_mode<synchronous>, transform_indices = @transform_7, window_bounds = array<i64: 8, 1>}, {pipeline_mode = #tpu.pipeline_mode<synchronous>, transform_indices = @transform_8, window_bounds = array<i64: 8, 1>}, {pipeline_mode = #tpu.pipeline_mode<synchronous>, transform_indices = @transform_9, window_bounds = array<i64: 9, 8, 8>}, {pipeline_mode = #tpu.pipeline_mode<synchronous>, transform_indices = @transform_10, window_bounds = array<i64: 8, 1>}, {pipeline_mode = #tpu.pipeline_mode<synchronous>, transform_indices = @transform_11, window_bounds = array<i64: 8, 1>}, {pipeline_mode = #tpu.pipeline_mode<synchronous>, transform_indices = @transform_12, window_bounds = array<i64: 8, 1>}, {pipeline_mode = #tpu.pipeline_mode<synchronous>, transform_indices = @transform_13, window_bounds = array<i64: 9, 16, 8>}, {pipeline_mode = #tpu.pipeline_mode<synchronous>, transform_indices = @transform_14, window_bounds = array<i64: 16, 1>}, {pipeline_mode = #tpu.pipeline_mode<synchronous>, transform_indices = @transform_15, window_bounds = array<i64: 16, 1>}, {pipeline_mode = #tpu.pipeline_mode<synchronous>, transform_indices = @transform_16, window_bounds = array<i64: 16, 1>}, {pipeline_mode = #tpu.pipeline_mode<synchronous>, transform_indices = @transform_17, window_bounds = array<i64: 9, 16, 16>}, {pipeline_mode = #tpu.pipeline_mode<synchronous>, transform_indices = @transform_18, window_bounds = array<i64: 16, 1>}, {pipeline_mode = #tpu.pipeline_mode<synchronous>, transform_indices = @transform_19, window_bounds = array<i64: 16, 1>}, {pipeline_mode = #tpu.pipeline_mode<synchronous>, transform_indices = @transform_20, window_bounds = array<i64: 16, 1>}, {pipeline_mode = #tpu.pipeline_mode<synchronous>, transform_indices = @transform_21, window_bounds = array<i64: 4, 8, 16>}, {pipeline_mode = #tpu.pipeline_mode<synchronous>, transform_indices = @transform_22, window_bounds = array<i64: 8, 1>}, {pipeline_mode = #tpu.pipeline_mode<synchronous>, transform_indices = @transform_23, window_bounds = array<i64: 9, 8, 16>}, {pipeline_mode = #tpu.pipeline_mode<synchronous>, transform_indices = @transform_24, window_bounds = array<i64: 8, 1>}, {pipeline_mode = #tpu.pipeline_mode<synchronous>, transform_indices = @transform_25, window_bounds = array<i64: 8, 1>}, {pipeline_mode = #tpu.pipeline_mode<synchronous>, transform_indices = @transform_26, window_bounds = array<i64: 8, 1>}, {pipeline_mode = #tpu.pipeline_mode<synchronous>, transform_indices = @transform_27, window_bounds = array<i64: 9, 8, 8>}, {pipeline_mode = #tpu.pipeline_mode<synchronous>, transform_indices = @transform_28, window_bounds = array<i64: 8, 1>}, {pipeline_mode = #tpu.pipeline_mode<synchronous>, transform_indices = @transform_29, window_bounds = array<i64: 8, 1>}, {pipeline_mode = #tpu.pipeline_mode<synchronous>, transform_indices = @transform_30, window_bounds = array<i64: 8, 1>}, {pipeline_mode = #tpu.pipeline_mode<synchronous>, transform_indices = @transform_31, window_bounds = array<i64: 2, 8>}, {pipeline_mode = #tpu.pipeline_mode<synchronous>, transform_indices = @transform_32, window_bounds = array<i64: 2, 1>}, {pipeline_mode = #tpu.pipeline_mode<synchronous>, transform_indices = @transform_33, window_bounds = array<i64: 2, 16>}, {pipeline_mode = #tpu.pipeline_mode<synchronous>, transform_indices = @transform_34, window_bounds = array<i64: 2, 1>}, {pipeline_mode = #tpu.pipeline_mode<synchronous>, transform_indices = @transform_35, window_bounds = array<i64: 2, 512>}, {pipeline_mode = #tpu.pipeline_mode<synchronous>, transform_indices = @transform_36, window_bounds = array<i64: 2, 128>}]} {
    %c0 = arith.constant 0 : index
    %c0_0 = arith.constant 0 : index
    %0 = vector.load %arg2[%c0, %c0_0] : memref<9x512xf32, #tpu.memory_space<vmem>>, vector<9x512xf32>
    %c0_1 = arith.constant 0 : index
    %c0_2 = arith.constant 0 : index
    %1 = vector.load %arg3[%c0_1, %c0_2] : memref<9x128xf32, #tpu.memory_space<vmem>>, vector<9x128xf32>
    %c0_3 = arith.constant 0 : index
    %c0_4 = arith.constant 0 : index
    %2 = vector.load %arg1[%c0_3, %c0_4] : memref<3x512xf32, #tpu.memory_space<vmem>>, vector<3x512xf32>
    %c0_5 = arith.constant 0 : index
    %c0_6 = arith.constant 0 : index
    %3 = vector.load %arg7[%c0_5, %c0_6] : memref<8x1xf32, #tpu.memory_space<vmem>>, vector<8x1xf32>
    %cst = arith.constant 0.000000e+00 : f32
    %4 = vector.broadcast %cst : f32 to vector<8x512xf32>
    %5 = vector.broadcast %3 : vector<8x1xf32> to vector<8x512xf32>
    %6 = arith.addf %4, %5 : vector<8x512xf32>
    %c17_i32 = arith.constant 17 : i32
    %7 = tpu.dynamic_rotate %2 by %c17_i32 dim 1 : vector<3x512xf32>, i32 -> vector<3x512xf32>
    %8 = vector.extract_strided_slice %0 {offsets = [0, 0], sizes = [1, 512], strides = [1, 1]} : vector<9x512xf32> to vector<1x512xf32>
    %9 = vector.broadcast %8 : vector<1x512xf32> to vector<3x512xf32>
    %10 = arith.mulf %7, %9 : vector<3x512xf32>
    %c0_7 = arith.constant 0 : index
    %c0_8 = arith.constant 0 : index
    %c0_9 = arith.constant 0 : index
    %11 = vector.load %arg6[%c0_7, %c0_8, %c0_9] : memref<9x8x3xf32, #tpu.memory_space<vmem>>, vector<1x8x3xf32>
    %12 = vector.shape_cast %11 : vector<1x8x3xf32> to vector<8x3xf32>
    %cst_10 = arith.constant dense<0.000000e+00> : vector<8x512xf32>
    %13 = tpu.matmul %12, %10, %cst_10 {dimension_numbers = #tpu.dot_dimension_numbers<[1], [0], [0], [1], [0, 0, 1, 1], [], []>} : vector<8x3xf32>, vector<3x512xf32>, vector<8x512xf32> -> vector<8x512xf32>
    %14 = arith.addf %6, %13 : vector<8x512xf32>
    %c16_i32 = arith.constant 16 : i32
    %15 = tpu.dynamic_rotate %2 by %c16_i32 dim 1 : vector<3x512xf32>, i32 -> vector<3x512xf32>
    %16 = vector.extract_strided_slice %0 {offsets = [1, 0], sizes = [1, 512], strides = [1, 1]} : vector<9x512xf32> to vector<1x512xf32>
    %17 = vector.broadcast %16 : vector<1x512xf32> to vector<3x512xf32>
    %18 = arith.mulf %15, %17 : vector<3x512xf32>
    %c1 = arith.constant 1 : index
    %c0_11 = arith.constant 0 : index
    %c0_12 = arith.constant 0 : index
    %19 = vector.load %arg6[%c1, %c0_11, %c0_12] : memref<9x8x3xf32, #tpu.memory_space<vmem>>, vector<1x8x3xf32>
    %20 = vector.shape_cast %19 : vector<1x8x3xf32> to vector<8x3xf32>
    %cst_13 = arith.constant dense<0.000000e+00> : vector<8x512xf32>
    %21 = tpu.matmul %20, %18, %cst_13 {dimension_numbers = #tpu.dot_dimension_numbers<[1], [0], [0], [1], [0, 0, 1, 1], [], []>} : vector<8x3xf32>, vector<3x512xf32>, vector<8x512xf32> -> vector<8x512xf32>
    %22 = arith.addf %14, %21 : vector<8x512xf32>
    %c15_i32 = arith.constant 15 : i32
    %23 = tpu.dynamic_rotate %2 by %c15_i32 dim 1 : vector<3x512xf32>, i32 -> vector<3x512xf32>
    %24 = vector.extract_strided_slice %0 {offsets = [2, 0], sizes = [1, 512], strides = [1, 1]} : vector<9x512xf32> to vector<1x512xf32>
    %25 = vector.broadcast %24 : vector<1x512xf32> to vector<3x512xf32>
    %26 = arith.mulf %23, %25 : vector<3x512xf32>
    %c2 = arith.constant 2 : index
    %c0_14 = arith.constant 0 : index
    %c0_15 = arith.constant 0 : index
    %27 = vector.load %arg6[%c2, %c0_14, %c0_15] : memref<9x8x3xf32, #tpu.memory_space<vmem>>, vector<1x8x3xf32>
    %28 = vector.shape_cast %27 : vector<1x8x3xf32> to vector<8x3xf32>
    %cst_16 = arith.constant dense<0.000000e+00> : vector<8x512xf32>
    %29 = tpu.matmul %28, %26, %cst_16 {dimension_numbers = #tpu.dot_dimension_numbers<[1], [0], [0], [1], [0, 0, 1, 1], [], []>} : vector<8x3xf32>, vector<3x512xf32>, vector<8x512xf32> -> vector<8x512xf32>
    %30 = arith.addf %22, %29 : vector<8x512xf32>
    %c1_i32 = arith.constant 1 : i32
    %31 = tpu.dynamic_rotate %2 by %c1_i32 dim 1 : vector<3x512xf32>, i32 -> vector<3x512xf32>
    %32 = vector.extract_strided_slice %0 {offsets = [3, 0], sizes = [1, 512], strides = [1, 1]} : vector<9x512xf32> to vector<1x512xf32>
    %33 = vector.broadcast %32 : vector<1x512xf32> to vector<3x512xf32>
    %34 = arith.mulf %31, %33 : vector<3x512xf32>
    %c3 = arith.constant 3 : index
    %c0_17 = arith.constant 0 : index
    %c0_18 = arith.constant 0 : index
    %35 = vector.load %arg6[%c3, %c0_17, %c0_18] : memref<9x8x3xf32, #tpu.memory_space<vmem>>, vector<1x8x3xf32>
    %36 = vector.shape_cast %35 : vector<1x8x3xf32> to vector<8x3xf32>
    %cst_19 = arith.constant dense<0.000000e+00> : vector<8x512xf32>
    %37 = tpu.matmul %36, %34, %cst_19 {dimension_numbers = #tpu.dot_dimension_numbers<[1], [0], [0], [1], [0, 0, 1, 1], [], []>} : vector<8x3xf32>, vector<3x512xf32>, vector<8x512xf32> -> vector<8x512xf32>
    %38 = arith.addf %30, %37 : vector<8x512xf32>
    %c4 = arith.constant 4 : index
    %c0_20 = arith.constant 0 : index
    %c0_21 = arith.constant 0 : index
    %39 = vector.load %arg6[%c4, %c0_20, %c0_21] : memref<9x8x3xf32, #tpu.memory_space<vmem>>, vector<1x8x3xf32>
    %40 = vector.shape_cast %39 : vector<1x8x3xf32> to vector<8x3xf32>
    %cst_22 = arith.constant dense<0.000000e+00> : vector<8x512xf32>
    %41 = tpu.matmul %40, %2, %cst_22 {dimension_numbers = #tpu.dot_dimension_numbers<[1], [0], [0], [1], [0, 0, 1, 1], [], []>} : vector<8x3xf32>, vector<3x512xf32>, vector<8x512xf32> -> vector<8x512xf32>
    %42 = arith.addf %38, %41 : vector<8x512xf32>
    %c511_i32 = arith.constant 511 : i32
    %43 = tpu.dynamic_rotate %2 by %c511_i32 dim 1 : vector<3x512xf32>, i32 -> vector<3x512xf32>
    %44 = vector.extract_strided_slice %0 {offsets = [5, 0], sizes = [1, 512], strides = [1, 1]} : vector<9x512xf32> to vector<1x512xf32>
    %45 = vector.broadcast %44 : vector<1x512xf32> to vector<3x512xf32>
    %46 = arith.mulf %43, %45 : vector<3x512xf32>
    %c5 = arith.constant 5 : index
    %c0_23 = arith.constant 0 : index
    %c0_24 = arith.constant 0 : index
    %47 = vector.load %arg6[%c5, %c0_23, %c0_24] : memref<9x8x3xf32, #tpu.memory_space<vmem>>, vector<1x8x3xf32>
    %48 = vector.shape_cast %47 : vector<1x8x3xf32> to vector<8x3xf32>
    %cst_25 = arith.constant dense<0.000000e+00> : vector<8x512xf32>
    %49 = tpu.matmul %48, %46, %cst_25 {dimension_numbers = #tpu.dot_dimension_numbers<[1], [0], [0], [1], [0, 0, 1, 1], [], []>} : vector<8x3xf32>, vector<3x512xf32>, vector<8x512xf32> -> vector<8x512xf32>
    %50 = arith.addf %42, %49 : vector<8x512xf32>
    %c497_i32 = arith.constant 497 : i32
    %51 = tpu.dynamic_rotate %2 by %c497_i32 dim 1 : vector<3x512xf32>, i32 -> vector<3x512xf32>
    %52 = vector.extract_strided_slice %0 {offsets = [6, 0], sizes = [1, 512], strides = [1, 1]} : vector<9x512xf32> to vector<1x512xf32>
    %53 = vector.broadcast %52 : vector<1x512xf32> to vector<3x512xf32>
    %54 = arith.mulf %51, %53 : vector<3x512xf32>
    %c6 = arith.constant 6 : index
    %c0_26 = arith.constant 0 : index
    %c0_27 = arith.constant 0 : index
    %55 = vector.load %arg6[%c6, %c0_26, %c0_27] : memref<9x8x3xf32, #tpu.memory_space<vmem>>, vector<1x8x3xf32>
    %56 = vector.shape_cast %55 : vector<1x8x3xf32> to vector<8x3xf32>
    %cst_28 = arith.constant dense<0.000000e+00> : vector<8x512xf32>
    %57 = tpu.matmul %56, %54, %cst_28 {dimension_numbers = #tpu.dot_dimension_numbers<[1], [0], [0], [1], [0, 0, 1, 1], [], []>} : vector<8x3xf32>, vector<3x512xf32>, vector<8x512xf32> -> vector<8x512xf32>
    %58 = arith.addf %50, %57 : vector<8x512xf32>
    %c496_i32 = arith.constant 496 : i32
    %59 = tpu.dynamic_rotate %2 by %c496_i32 dim 1 : vector<3x512xf32>, i32 -> vector<3x512xf32>
    %60 = vector.extract_strided_slice %0 {offsets = [7, 0], sizes = [1, 512], strides = [1, 1]} : vector<9x512xf32> to vector<1x512xf32>
    %61 = vector.broadcast %60 : vector<1x512xf32> to vector<3x512xf32>
    %62 = arith.mulf %59, %61 : vector<3x512xf32>
    %c7 = arith.constant 7 : index
    %c0_29 = arith.constant 0 : index
    %c0_30 = arith.constant 0 : index
    %63 = vector.load %arg6[%c7, %c0_29, %c0_30] : memref<9x8x3xf32, #tpu.memory_space<vmem>>, vector<1x8x3xf32>
    %64 = vector.shape_cast %63 : vector<1x8x3xf32> to vector<8x3xf32>
    %cst_31 = arith.constant dense<0.000000e+00> : vector<8x512xf32>
    %65 = tpu.matmul %64, %62, %cst_31 {dimension_numbers = #tpu.dot_dimension_numbers<[1], [0], [0], [1], [0, 0, 1, 1], [], []>} : vector<8x3xf32>, vector<3x512xf32>, vector<8x512xf32> -> vector<8x512xf32>
    %66 = arith.addf %58, %65 : vector<8x512xf32>
    %c495_i32 = arith.constant 495 : i32
    %67 = tpu.dynamic_rotate %2 by %c495_i32 dim 1 : vector<3x512xf32>, i32 -> vector<3x512xf32>
    %68 = vector.extract_strided_slice %0 {offsets = [8, 0], sizes = [1, 512], strides = [1, 1]} : vector<9x512xf32> to vector<1x512xf32>
    %69 = vector.broadcast %68 : vector<1x512xf32> to vector<3x512xf32>
    %70 = arith.mulf %67, %69 : vector<3x512xf32>
    %c8 = arith.constant 8 : index
    %c0_32 = arith.constant 0 : index
    %c0_33 = arith.constant 0 : index
    %71 = vector.load %arg6[%c8, %c0_32, %c0_33] : memref<9x8x3xf32, #tpu.memory_space<vmem>>, vector<1x8x3xf32>
    %72 = vector.shape_cast %71 : vector<1x8x3xf32> to vector<8x3xf32>
    %cst_34 = arith.constant dense<0.000000e+00> : vector<8x512xf32>
    %73 = tpu.matmul %72, %70, %cst_34 {dimension_numbers = #tpu.dot_dimension_numbers<[1], [0], [0], [1], [0, 0, 1, 1], [], []>} : vector<8x3xf32>, vector<3x512xf32>, vector<8x512xf32> -> vector<8x512xf32>
    %74 = arith.addf %66, %73 : vector<8x512xf32>
    %c0_35 = arith.constant 0 : index
    %c0_36 = arith.constant 0 : index
    %75 = vector.load %arg8[%c0_35, %c0_36] : memref<8x1xf32, #tpu.memory_space<vmem>>, vector<8x1xf32>
    %c0_37 = arith.constant 0 : index
    %c0_38 = arith.constant 0 : index
    %76 = vector.load %arg9[%c0_37, %c0_38] : memref<8x1xf32, #tpu.memory_space<vmem>>, vector<8x1xf32>
    %cst_39 = arith.constant dense<0.000000e+00> : vector<8xf32>
    %77 = vector.multi_reduction <add>, %74, %cst_39 [1] : vector<8x512xf32> to vector<8xf32>
    %78 = vector.shape_cast %77 : vector<8xf32> to vector<8x1xf32>
    %cst_40 = arith.constant 5.120000e+02 : f32
    %79 = vector.broadcast %cst_40 : f32 to vector<8x1xf32>
    %80 = arith.divf %78, %79 : vector<8x1xf32>
    %81 = vector.broadcast %80 : vector<8x1xf32> to vector<8x512xf32>
    %82 = arith.subf %74, %81 : vector<8x512xf32>
    %83 = arith.mulf %82, %82 : vector<8x512xf32>
    %cst_41 = arith.constant dense<0.000000e+00> : vector<8xf32>
    %84 = vector.multi_reduction <add>, %83, %cst_41 [1] : vector<8x512xf32> to vector<8xf32>
    %85 = vector.shape_cast %84 : vector<8xf32> to vector<8x1xf32>
    %cst_42 = arith.constant 5.120000e+02 : f32
    %86 = vector.broadcast %cst_42 : f32 to vector<8x1xf32>
    %87 = arith.divf %85, %86 : vector<8x1xf32>
    %cst_43 = arith.constant 9.99999974E-6 : f32
    %88 = vector.broadcast %cst_43 : f32 to vector<8x1xf32>
    %89 = arith.addf %87, %88 : vector<8x1xf32>
    %90 = math.rsqrt %89 : vector<8x1xf32>
    %91 = arith.mulf %75, %90 : vector<8x1xf32>
    %92 = vector.broadcast %80 : vector<8x1xf32> to vector<8x512xf32>
    %93 = arith.subf %74, %92 : vector<8x512xf32>
    %94 = vector.broadcast %91 : vector<8x1xf32> to vector<8x512xf32>
    %95 = arith.mulf %93, %94 : vector<8x512xf32>
    %96 = vector.broadcast %76 : vector<8x1xf32> to vector<8x512xf32>
    %97 = arith.addf %95, %96 : vector<8x512xf32>
    %cst_44 = arith.constant 0.000000e+00 : f32
    %98 = vector.broadcast %cst_44 : f32 to vector<8x512xf32>
    %99 = arith.maximumf %97, %98 : vector<8x512xf32>
    %c0_45 = arith.constant 0 : index
    %c0_46 = arith.constant 0 : index
    %100 = vector.load %arg11[%c0_45, %c0_46] : memref<8x1xf32, #tpu.memory_space<vmem>>, vector<8x1xf32>
    %cst_47 = arith.constant 0.000000e+00 : f32
    %101 = vector.broadcast %cst_47 : f32 to vector<8x512xf32>
    %102 = vector.broadcast %100 : vector<8x1xf32> to vector<8x512xf32>
    %103 = arith.addf %101, %102 : vector<8x512xf32>
    %c17_i32_48 = arith.constant 17 : i32
    %104 = tpu.dynamic_rotate %99 by %c17_i32_48 dim 1 : vector<8x512xf32>, i32 -> vector<8x512xf32>
    %105 = vector.extract_strided_slice %0 {offsets = [0, 0], sizes = [1, 512], strides = [1, 1]} : vector<9x512xf32> to vector<1x512xf32>
    %106 = vector.broadcast %105 : vector<1x512xf32> to vector<8x512xf32>
    %107 = arith.mulf %104, %106 : vector<8x512xf32>
    %c0_49 = arith.constant 0 : index
    %c0_50 = arith.constant 0 : index
    %c0_51 = arith.constant 0 : index
    %108 = vector.load %arg10[%c0_49, %c0_50, %c0_51] : memref<9x8x8xf32, #tpu.memory_space<vmem>>, vector<1x8x8xf32>
    %109 = vector.shape_cast %108 : vector<1x8x8xf32> to vector<8x8xf32>
    %cst_52 = arith.constant dense<0.000000e+00> : vector<8x512xf32>
    %110 = tpu.matmul %109, %107, %cst_52 {dimension_numbers = #tpu.dot_dimension_numbers<[1], [0], [0], [1], [0, 0, 1, 1], [], []>} : vector<8x8xf32>, vector<8x512xf32>, vector<8x512xf32> -> vector<8x512xf32>
    %111 = arith.addf %103, %110 : vector<8x512xf32>
    %c16_i32_53 = arith.constant 16 : i32
    %112 = tpu.dynamic_rotate %99 by %c16_i32_53 dim 1 : vector<8x512xf32>, i32 -> vector<8x512xf32>
    %113 = vector.extract_strided_slice %0 {offsets = [1, 0], sizes = [1, 512], strides = [1, 1]} : vector<9x512xf32> to vector<1x512xf32>
    %114 = vector.broadcast %113 : vector<1x512xf32> to vector<8x512xf32>
    %115 = arith.mulf %112, %114 : vector<8x512xf32>
    %c1_54 = arith.constant 1 : index
    %c0_55 = arith.constant 0 : index
    %c0_56 = arith.constant 0 : index
    %116 = vector.load %arg10[%c1_54, %c0_55, %c0_56] : memref<9x8x8xf32, #tpu.memory_space<vmem>>, vector<1x8x8xf32>
    %117 = vector.shape_cast %116 : vector<1x8x8xf32> to vector<8x8xf32>
    %cst_57 = arith.constant dense<0.000000e+00> : vector<8x512xf32>
    %118 = tpu.matmul %117, %115, %cst_57 {dimension_numbers = #tpu.dot_dimension_numbers<[1], [0], [0], [1], [0, 0, 1, 1], [], []>} : vector<8x8xf32>, vector<8x512xf32>, vector<8x512xf32> -> vector<8x512xf32>
    %119 = arith.addf %111, %118 : vector<8x512xf32>
    %c15_i32_58 = arith.constant 15 : i32
    %120 = tpu.dynamic_rotate %99 by %c15_i32_58 dim 1 : vector<8x512xf32>, i32 -> vector<8x512xf32>
    %121 = vector.extract_strided_slice %0 {offsets = [2, 0], sizes = [1, 512], strides = [1, 1]} : vector<9x512xf32> to vector<1x512xf32>
    %122 = vector.broadcast %121 : vector<1x512xf32> to vector<8x512xf32>
    %123 = arith.mulf %120, %122 : vector<8x512xf32>
    %c2_59 = arith.constant 2 : index
    %c0_60 = arith.constant 0 : index
    %c0_61 = arith.constant 0 : index
    %124 = vector.load %arg10[%c2_59, %c0_60, %c0_61] : memref<9x8x8xf32, #tpu.memory_space<vmem>>, vector<1x8x8xf32>
    %125 = vector.shape_cast %124 : vector<1x8x8xf32> to vector<8x8xf32>
    %cst_62 = arith.constant dense<0.000000e+00> : vector<8x512xf32>
    %126 = tpu.matmul %125, %123, %cst_62 {dimension_numbers = #tpu.dot_dimension_numbers<[1], [0], [0], [1], [0, 0, 1, 1], [], []>} : vector<8x8xf32>, vector<8x512xf32>, vector<8x512xf32> -> vector<8x512xf32>
    %127 = arith.addf %119, %126 : vector<8x512xf32>
    %c1_i32_63 = arith.constant 1 : i32
    %128 = tpu.dynamic_rotate %99 by %c1_i32_63 dim 1 : vector<8x512xf32>, i32 -> vector<8x512xf32>
    %129 = vector.extract_strided_slice %0 {offsets = [3, 0], sizes = [1, 512], strides = [1, 1]} : vector<9x512xf32> to vector<1x512xf32>
    %130 = vector.broadcast %129 : vector<1x512xf32> to vector<8x512xf32>
    %131 = arith.mulf %128, %130 : vector<8x512xf32>
    %c3_64 = arith.constant 3 : index
    %c0_65 = arith.constant 0 : index
    %c0_66 = arith.constant 0 : index
    %132 = vector.load %arg10[%c3_64, %c0_65, %c0_66] : memref<9x8x8xf32, #tpu.memory_space<vmem>>, vector<1x8x8xf32>
    %133 = vector.shape_cast %132 : vector<1x8x8xf32> to vector<8x8xf32>
    %cst_67 = arith.constant dense<0.000000e+00> : vector<8x512xf32>
    %134 = tpu.matmul %133, %131, %cst_67 {dimension_numbers = #tpu.dot_dimension_numbers<[1], [0], [0], [1], [0, 0, 1, 1], [], []>} : vector<8x8xf32>, vector<8x512xf32>, vector<8x512xf32> -> vector<8x512xf32>
    %135 = arith.addf %127, %134 : vector<8x512xf32>
    %c4_68 = arith.constant 4 : index
    %c0_69 = arith.constant 0 : index
    %c0_70 = arith.constant 0 : index
    %136 = vector.load %arg10[%c4_68, %c0_69, %c0_70] : memref<9x8x8xf32, #tpu.memory_space<vmem>>, vector<1x8x8xf32>
    %137 = vector.shape_cast %136 : vector<1x8x8xf32> to vector<8x8xf32>
    %cst_71 = arith.constant dense<0.000000e+00> : vector<8x512xf32>
    %138 = tpu.matmul %137, %99, %cst_71 {dimension_numbers = #tpu.dot_dimension_numbers<[1], [0], [0], [1], [0, 0, 1, 1], [], []>} : vector<8x8xf32>, vector<8x512xf32>, vector<8x512xf32> -> vector<8x512xf32>
    %139 = arith.addf %135, %138 : vector<8x512xf32>
    %c511_i32_72 = arith.constant 511 : i32
    %140 = tpu.dynamic_rotate %99 by %c511_i32_72 dim 1 : vector<8x512xf32>, i32 -> vector<8x512xf32>
    %141 = vector.extract_strided_slice %0 {offsets = [5, 0], sizes = [1, 512], strides = [1, 1]} : vector<9x512xf32> to vector<1x512xf32>
    %142 = vector.broadcast %141 : vector<1x512xf32> to vector<8x512xf32>
    %143 = arith.mulf %140, %142 : vector<8x512xf32>
    %c5_73 = arith.constant 5 : index
    %c0_74 = arith.constant 0 : index
    %c0_75 = arith.constant 0 : index
    %144 = vector.load %arg10[%c5_73, %c0_74, %c0_75] : memref<9x8x8xf32, #tpu.memory_space<vmem>>, vector<1x8x8xf32>
    %145 = vector.shape_cast %144 : vector<1x8x8xf32> to vector<8x8xf32>
    %cst_76 = arith.constant dense<0.000000e+00> : vector<8x512xf32>
    %146 = tpu.matmul %145, %143, %cst_76 {dimension_numbers = #tpu.dot_dimension_numbers<[1], [0], [0], [1], [0, 0, 1, 1], [], []>} : vector<8x8xf32>, vector<8x512xf32>, vector<8x512xf32> -> vector<8x512xf32>
    %147 = arith.addf %139, %146 : vector<8x512xf32>
    %c497_i32_77 = arith.constant 497 : i32
    %148 = tpu.dynamic_rotate %99 by %c497_i32_77 dim 1 : vector<8x512xf32>, i32 -> vector<8x512xf32>
    %149 = vector.extract_strided_slice %0 {offsets = [6, 0], sizes = [1, 512], strides = [1, 1]} : vector<9x512xf32> to vector<1x512xf32>
    %150 = vector.broadcast %149 : vector<1x512xf32> to vector<8x512xf32>
    %151 = arith.mulf %148, %150 : vector<8x512xf32>
    %c6_78 = arith.constant 6 : index
    %c0_79 = arith.constant 0 : index
    %c0_80 = arith.constant 0 : index
    %152 = vector.load %arg10[%c6_78, %c0_79, %c0_80] : memref<9x8x8xf32, #tpu.memory_space<vmem>>, vector<1x8x8xf32>
    %153 = vector.shape_cast %152 : vector<1x8x8xf32> to vector<8x8xf32>
    %cst_81 = arith.constant dense<0.000000e+00> : vector<8x512xf32>
    %154 = tpu.matmul %153, %151, %cst_81 {dimension_numbers = #tpu.dot_dimension_numbers<[1], [0], [0], [1], [0, 0, 1, 1], [], []>} : vector<8x8xf32>, vector<8x512xf32>, vector<8x512xf32> -> vector<8x512xf32>
    %155 = arith.addf %147, %154 : vector<8x512xf32>
    %c496_i32_82 = arith.constant 496 : i32
    %156 = tpu.dynamic_rotate %99 by %c496_i32_82 dim 1 : vector<8x512xf32>, i32 -> vector<8x512xf32>
    %157 = vector.extract_strided_slice %0 {offsets = [7, 0], sizes = [1, 512], strides = [1, 1]} : vector<9x512xf32> to vector<1x512xf32>
    %158 = vector.broadcast %157 : vector<1x512xf32> to vector<8x512xf32>
    %159 = arith.mulf %156, %158 : vector<8x512xf32>
    %c7_83 = arith.constant 7 : index
    %c0_84 = arith.constant 0 : index
    %c0_85 = arith.constant 0 : index
    %160 = vector.load %arg10[%c7_83, %c0_84, %c0_85] : memref<9x8x8xf32, #tpu.memory_space<vmem>>, vector<1x8x8xf32>
    %161 = vector.shape_cast %160 : vector<1x8x8xf32> to vector<8x8xf32>
    %cst_86 = arith.constant dense<0.000000e+00> : vector<8x512xf32>
    %162 = tpu.matmul %161, %159, %cst_86 {dimension_numbers = #tpu.dot_dimension_numbers<[1], [0], [0], [1], [0, 0, 1, 1], [], []>} : vector<8x8xf32>, vector<8x512xf32>, vector<8x512xf32> -> vector<8x512xf32>
    %163 = arith.addf %155, %162 : vector<8x512xf32>
    %c495_i32_87 = arith.constant 495 : i32
    %164 = tpu.dynamic_rotate %99 by %c495_i32_87 dim 1 : vector<8x512xf32>, i32 -> vector<8x512xf32>
    %165 = vector.extract_strided_slice %0 {offsets = [8, 0], sizes = [1, 512], strides = [1, 1]} : vector<9x512xf32> to vector<1x512xf32>
    %166 = vector.broadcast %165 : vector<1x512xf32> to vector<8x512xf32>
    %167 = arith.mulf %164, %166 : vector<8x512xf32>
    %c8_88 = arith.constant 8 : index
    %c0_89 = arith.constant 0 : index
    %c0_90 = arith.constant 0 : index
    %168 = vector.load %arg10[%c8_88, %c0_89, %c0_90] : memref<9x8x8xf32, #tpu.memory_space<vmem>>, vector<1x8x8xf32>
    %169 = vector.shape_cast %168 : vector<1x8x8xf32> to vector<8x8xf32>
    %cst_91 = arith.constant dense<0.000000e+00> : vector<8x512xf32>
    %170 = tpu.matmul %169, %167, %cst_91 {dimension_numbers = #tpu.dot_dimension_numbers<[1], [0], [0], [1], [0, 0, 1, 1], [], []>} : vector<8x8xf32>, vector<8x512xf32>, vector<8x512xf32> -> vector<8x512xf32>
    %171 = arith.addf %163, %170 : vector<8x512xf32>
    %c0_92 = arith.constant 0 : index
    %c0_93 = arith.constant 0 : index
    %172 = vector.load %arg12[%c0_92, %c0_93] : memref<8x1xf32, #tpu.memory_space<vmem>>, vector<8x1xf32>
    %c0_94 = arith.constant 0 : index
    %c0_95 = arith.constant 0 : index
    %173 = vector.load %arg13[%c0_94, %c0_95] : memref<8x1xf32, #tpu.memory_space<vmem>>, vector<8x1xf32>
    %cst_96 = arith.constant dense<0.000000e+00> : vector<8xf32>
    %174 = vector.multi_reduction <add>, %171, %cst_96 [1] : vector<8x512xf32> to vector<8xf32>
    %175 = vector.shape_cast %174 : vector<8xf32> to vector<8x1xf32>
    %cst_97 = arith.constant 5.120000e+02 : f32
    %176 = vector.broadcast %cst_97 : f32 to vector<8x1xf32>
    %177 = arith.divf %175, %176 : vector<8x1xf32>
    %178 = vector.broadcast %177 : vector<8x1xf32> to vector<8x512xf32>
    %179 = arith.subf %171, %178 : vector<8x512xf32>
    %180 = arith.mulf %179, %179 : vector<8x512xf32>
    %cst_98 = arith.constant dense<0.000000e+00> : vector<8xf32>
    %181 = vector.multi_reduction <add>, %180, %cst_98 [1] : vector<8x512xf32> to vector<8xf32>
    %182 = vector.shape_cast %181 : vector<8xf32> to vector<8x1xf32>
    %cst_99 = arith.constant 5.120000e+02 : f32
    %183 = vector.broadcast %cst_99 : f32 to vector<8x1xf32>
    %184 = arith.divf %182, %183 : vector<8x1xf32>
    %cst_100 = arith.constant 9.99999974E-6 : f32
    %185 = vector.broadcast %cst_100 : f32 to vector<8x1xf32>
    %186 = arith.addf %184, %185 : vector<8x1xf32>
    %187 = math.rsqrt %186 : vector<8x1xf32>
    %188 = arith.mulf %172, %187 : vector<8x1xf32>
    %189 = vector.broadcast %177 : vector<8x1xf32> to vector<8x512xf32>
    %190 = arith.subf %171, %189 : vector<8x512xf32>
    %191 = vector.broadcast %188 : vector<8x1xf32> to vector<8x512xf32>
    %192 = arith.mulf %190, %191 : vector<8x512xf32>
    %193 = vector.broadcast %173 : vector<8x1xf32> to vector<8x512xf32>
    %194 = arith.addf %192, %193 : vector<8x512xf32>
    %cst_101 = arith.constant 0.000000e+00 : f32
    %195 = vector.broadcast %cst_101 : f32 to vector<8x512xf32>
    %196 = arith.maximumf %194, %195 : vector<8x512xf32>
    %c511_i32_102 = arith.constant 511 : i32
    %197 = tpu.dynamic_rotate %196 by %c511_i32_102 dim 1 : vector<8x512xf32>, i32 -> vector<8x512xf32>
    %198 = arith.maximumf %196, %197 : vector<8x512xf32>
    %c496_i32_103 = arith.constant 496 : i32
    %199 = tpu.dynamic_rotate %198 by %c496_i32_103 dim 1 : vector<8x512xf32>, i32 -> vector<8x512xf32>
    %200 = arith.maximumf %198, %199 : vector<8x512xf32>
    %c0_104 = arith.constant 0 : index
    %c0_105 = arith.constant 0 : index
    %201 = vector.load %arg4[%c0_104, %c0_105] : memref<512x128xf32, #tpu.memory_space<vmem>>, vector<512x128xf32>
    %cst_106 = arith.constant dense<0.000000e+00> : vector<8x128xf32>
    %202 = tpu.matmul %200, %201, %cst_106 {dimension_numbers = #tpu.dot_dimension_numbers<[1], [0], [0], [1], [0, 0, 1, 1], [], []>} : vector<8x512xf32>, vector<512x128xf32>, vector<8x128xf32> -> vector<8x128xf32>
    %c0_107 = arith.constant 0 : index
    %c0_108 = arith.constant 0 : index
    %203 = vector.load %arg15[%c0_107, %c0_108] : memref<16x1xf32, #tpu.memory_space<vmem>>, vector<16x1xf32>
    %cst_109 = arith.constant 0.000000e+00 : f32
    %204 = vector.broadcast %cst_109 : f32 to vector<16x128xf32>
    %205 = vector.broadcast %203 : vector<16x1xf32> to vector<16x128xf32>
    %206 = arith.addf %204, %205 : vector<16x128xf32>
    %c9_i32 = arith.constant 9 : i32
    %207 = tpu.dynamic_rotate %202 by %c9_i32 dim 1 : vector<8x128xf32>, i32 -> vector<8x128xf32>
    %208 = vector.extract_strided_slice %1 {offsets = [0, 0], sizes = [1, 128], strides = [1, 1]} : vector<9x128xf32> to vector<1x128xf32>
    %209 = vector.broadcast %208 : vector<1x128xf32> to vector<8x128xf32>
    %210 = arith.mulf %207, %209 : vector<8x128xf32>
    %c0_110 = arith.constant 0 : index
    %c0_111 = arith.constant 0 : index
    %c0_112 = arith.constant 0 : index
    %211 = vector.load %arg14[%c0_110, %c0_111, %c0_112] : memref<9x16x8xf32, #tpu.memory_space<vmem>>, vector<1x16x8xf32>
    %212 = vector.shape_cast %211 : vector<1x16x8xf32> to vector<16x8xf32>
    %cst_113 = arith.constant dense<0.000000e+00> : vector<16x128xf32>
    %213 = tpu.matmul %212, %210, %cst_113 {dimension_numbers = #tpu.dot_dimension_numbers<[1], [0], [0], [1], [0, 0, 1, 1], [], []>} : vector<16x8xf32>, vector<8x128xf32>, vector<16x128xf32> -> vector<16x128xf32>
    %214 = arith.addf %206, %213 : vector<16x128xf32>
    %c8_i32 = arith.constant 8 : i32
    %215 = tpu.dynamic_rotate %202 by %c8_i32 dim 1 : vector<8x128xf32>, i32 -> vector<8x128xf32>
    %216 = vector.extract_strided_slice %1 {offsets = [1, 0], sizes = [1, 128], strides = [1, 1]} : vector<9x128xf32> to vector<1x128xf32>
    %217 = vector.broadcast %216 : vector<1x128xf32> to vector<8x128xf32>
    %218 = arith.mulf %215, %217 : vector<8x128xf32>
    %c1_114 = arith.constant 1 : index
    %c0_115 = arith.constant 0 : index
    %c0_116 = arith.constant 0 : index
    %219 = vector.load %arg14[%c1_114, %c0_115, %c0_116] : memref<9x16x8xf32, #tpu.memory_space<vmem>>, vector<1x16x8xf32>
    %220 = vector.shape_cast %219 : vector<1x16x8xf32> to vector<16x8xf32>
    %cst_117 = arith.constant dense<0.000000e+00> : vector<16x128xf32>
    %221 = tpu.matmul %220, %218, %cst_117 {dimension_numbers = #tpu.dot_dimension_numbers<[1], [0], [0], [1], [0, 0, 1, 1], [], []>} : vector<16x8xf32>, vector<8x128xf32>, vector<16x128xf32> -> vector<16x128xf32>
    %222 = arith.addf %214, %221 : vector<16x128xf32>
    %c7_i32 = arith.constant 7 : i32
    %223 = tpu.dynamic_rotate %202 by %c7_i32 dim 1 : vector<8x128xf32>, i32 -> vector<8x128xf32>
    %224 = vector.extract_strided_slice %1 {offsets = [2, 0], sizes = [1, 128], strides = [1, 1]} : vector<9x128xf32> to vector<1x128xf32>
    %225 = vector.broadcast %224 : vector<1x128xf32> to vector<8x128xf32>
    %226 = arith.mulf %223, %225 : vector<8x128xf32>
    %c2_118 = arith.constant 2 : index
    %c0_119 = arith.constant 0 : index
    %c0_120 = arith.constant 0 : index
    %227 = vector.load %arg14[%c2_118, %c0_119, %c0_120] : memref<9x16x8xf32, #tpu.memory_space<vmem>>, vector<1x16x8xf32>
    %228 = vector.shape_cast %227 : vector<1x16x8xf32> to vector<16x8xf32>
    %cst_121 = arith.constant dense<0.000000e+00> : vector<16x128xf32>
    %229 = tpu.matmul %228, %226, %cst_121 {dimension_numbers = #tpu.dot_dimension_numbers<[1], [0], [0], [1], [0, 0, 1, 1], [], []>} : vector<16x8xf32>, vector<8x128xf32>, vector<16x128xf32> -> vector<16x128xf32>
    %230 = arith.addf %222, %229 : vector<16x128xf32>
    %c1_i32_122 = arith.constant 1 : i32
    %231 = tpu.dynamic_rotate %202 by %c1_i32_122 dim 1 : vector<8x128xf32>, i32 -> vector<8x128xf32>
    %232 = vector.extract_strided_slice %1 {offsets = [3, 0], sizes = [1, 128], strides = [1, 1]} : vector<9x128xf32> to vector<1x128xf32>
    %233 = vector.broadcast %232 : vector<1x128xf32> to vector<8x128xf32>
    %234 = arith.mulf %231, %233 : vector<8x128xf32>
    %c3_123 = arith.constant 3 : index
    %c0_124 = arith.constant 0 : index
    %c0_125 = arith.constant 0 : index
    %235 = vector.load %arg14[%c3_123, %c0_124, %c0_125] : memref<9x16x8xf32, #tpu.memory_space<vmem>>, vector<1x16x8xf32>
    %236 = vector.shape_cast %235 : vector<1x16x8xf32> to vector<16x8xf32>
    %cst_126 = arith.constant dense<0.000000e+00> : vector<16x128xf32>
    %237 = tpu.matmul %236, %234, %cst_126 {dimension_numbers = #tpu.dot_dimension_numbers<[1], [0], [0], [1], [0, 0, 1, 1], [], []>} : vector<16x8xf32>, vector<8x128xf32>, vector<16x128xf32> -> vector<16x128xf32>
    %238 = arith.addf %230, %237 : vector<16x128xf32>
    %c4_127 = arith.constant 4 : index
    %c0_128 = arith.constant 0 : index
    %c0_129 = arith.constant 0 : index
    %239 = vector.load %arg14[%c4_127, %c0_128, %c0_129] : memref<9x16x8xf32, #tpu.memory_space<vmem>>, vector<1x16x8xf32>
    %240 = vector.shape_cast %239 : vector<1x16x8xf32> to vector<16x8xf32>
    %cst_130 = arith.constant dense<0.000000e+00> : vector<16x128xf32>
    %241 = tpu.matmul %240, %202, %cst_130 {dimension_numbers = #tpu.dot_dimension_numbers<[1], [0], [0], [1], [0, 0, 1, 1], [], []>} : vector<16x8xf32>, vector<8x128xf32>, vector<16x128xf32> -> vector<16x128xf32>
    %242 = arith.addf %238, %241 : vector<16x128xf32>
    %c127_i32 = arith.constant 127 : i32
    %243 = tpu.dynamic_rotate %202 by %c127_i32 dim 1 : vector<8x128xf32>, i32 -> vector<8x128xf32>
    %244 = vector.extract_strided_slice %1 {offsets = [5, 0], sizes = [1, 128], strides = [1, 1]} : vector<9x128xf32> to vector<1x128xf32>
    %245 = vector.broadcast %244 : vector<1x128xf32> to vector<8x128xf32>
    %246 = arith.mulf %243, %245 : vector<8x128xf32>
    %c5_131 = arith.constant 5 : index
    %c0_132 = arith.constant 0 : index
    %c0_133 = arith.constant 0 : index
    %247 = vector.load %arg14[%c5_131, %c0_132, %c0_133] : memref<9x16x8xf32, #tpu.memory_space<vmem>>, vector<1x16x8xf32>
    %248 = vector.shape_cast %247 : vector<1x16x8xf32> to vector<16x8xf32>
    %cst_134 = arith.constant dense<0.000000e+00> : vector<16x128xf32>
    %249 = tpu.matmul %248, %246, %cst_134 {dimension_numbers = #tpu.dot_dimension_numbers<[1], [0], [0], [1], [0, 0, 1, 1], [], []>} : vector<16x8xf32>, vector<8x128xf32>, vector<16x128xf32> -> vector<16x128xf32>
    %250 = arith.addf %242, %249 : vector<16x128xf32>
    %c121_i32 = arith.constant 121 : i32
    %251 = tpu.dynamic_rotate %202 by %c121_i32 dim 1 : vector<8x128xf32>, i32 -> vector<8x128xf32>
    %252 = vector.extract_strided_slice %1 {offsets = [6, 0], sizes = [1, 128], strides = [1, 1]} : vector<9x128xf32> to vector<1x128xf32>
    %253 = vector.broadcast %252 : vector<1x128xf32> to vector<8x128xf32>
    %254 = arith.mulf %251, %253 : vector<8x128xf32>
    %c6_135 = arith.constant 6 : index
    %c0_136 = arith.constant 0 : index
    %c0_137 = arith.constant 0 : index
    %255 = vector.load %arg14[%c6_135, %c0_136, %c0_137] : memref<9x16x8xf32, #tpu.memory_space<vmem>>, vector<1x16x8xf32>
    %256 = vector.shape_cast %255 : vector<1x16x8xf32> to vector<16x8xf32>
    %cst_138 = arith.constant dense<0.000000e+00> : vector<16x128xf32>
    %257 = tpu.matmul %256, %254, %cst_138 {dimension_numbers = #tpu.dot_dimension_numbers<[1], [0], [0], [1], [0, 0, 1, 1], [], []>} : vector<16x8xf32>, vector<8x128xf32>, vector<16x128xf32> -> vector<16x128xf32>
    %258 = arith.addf %250, %257 : vector<16x128xf32>
    %c120_i32 = arith.constant 120 : i32
    %259 = tpu.dynamic_rotate %202 by %c120_i32 dim 1 : vector<8x128xf32>, i32 -> vector<8x128xf32>
    %260 = vector.extract_strided_slice %1 {offsets = [7, 0], sizes = [1, 128], strides = [1, 1]} : vector<9x128xf32> to vector<1x128xf32>
    %261 = vector.broadcast %260 : vector<1x128xf32> to vector<8x128xf32>
    %262 = arith.mulf %259, %261 : vector<8x128xf32>
    %c7_139 = arith.constant 7 : index
    %c0_140 = arith.constant 0 : index
    %c0_141 = arith.constant 0 : index
    %263 = vector.load %arg14[%c7_139, %c0_140, %c0_141] : memref<9x16x8xf32, #tpu.memory_space<vmem>>, vector<1x16x8xf32>
    %264 = vector.shape_cast %263 : vector<1x16x8xf32> to vector<16x8xf32>
    %cst_142 = arith.constant dense<0.000000e+00> : vector<16x128xf32>
    %265 = tpu.matmul %264, %262, %cst_142 {dimension_numbers = #tpu.dot_dimension_numbers<[1], [0], [0], [1], [0, 0, 1, 1], [], []>} : vector<16x8xf32>, vector<8x128xf32>, vector<16x128xf32> -> vector<16x128xf32>
    %266 = arith.addf %258, %265 : vector<16x128xf32>
    %c119_i32 = arith.constant 119 : i32
    %267 = tpu.dynamic_rotate %202 by %c119_i32 dim 1 : vector<8x128xf32>, i32 -> vector<8x128xf32>
    %268 = vector.extract_strided_slice %1 {offsets = [8, 0], sizes = [1, 128], strides = [1, 1]} : vector<9x128xf32> to vector<1x128xf32>
    %269 = vector.broadcast %268 : vector<1x128xf32> to vector<8x128xf32>
    %270 = arith.mulf %267, %269 : vector<8x128xf32>
    %c8_143 = arith.constant 8 : index
    %c0_144 = arith.constant 0 : index
    %c0_145 = arith.constant 0 : index
    %271 = vector.load %arg14[%c8_143, %c0_144, %c0_145] : memref<9x16x8xf32, #tpu.memory_space<vmem>>, vector<1x16x8xf32>
    %272 = vector.shape_cast %271 : vector<1x16x8xf32> to vector<16x8xf32>
    %cst_146 = arith.constant dense<0.000000e+00> : vector<16x128xf32>
    %273 = tpu.matmul %272, %270, %cst_146 {dimension_numbers = #tpu.dot_dimension_numbers<[1], [0], [0], [1], [0, 0, 1, 1], [], []>} : vector<16x8xf32>, vector<8x128xf32>, vector<16x128xf32> -> vector<16x128xf32>
    %274 = arith.addf %266, %273 : vector<16x128xf32>
    %c0_147 = arith.constant 0 : index
    %c0_148 = arith.constant 0 : index
    %275 = vector.load %arg16[%c0_147, %c0_148] : memref<16x1xf32, #tpu.memory_space<vmem>>, vector<16x1xf32>
    %c0_149 = arith.constant 0 : index
    %c0_150 = arith.constant 0 : index
    %276 = vector.load %arg17[%c0_149, %c0_150] : memref<16x1xf32, #tpu.memory_space<vmem>>, vector<16x1xf32>
    %cst_151 = arith.constant dense<0.000000e+00> : vector<16xf32>
    %277 = vector.multi_reduction <add>, %274, %cst_151 [1] : vector<16x128xf32> to vector<16xf32>
    %278 = vector.shape_cast %277 : vector<16xf32> to vector<16x1xf32>
    %cst_152 = arith.constant 1.280000e+02 : f32
    %279 = vector.broadcast %cst_152 : f32 to vector<16x1xf32>
    %280 = arith.divf %278, %279 : vector<16x1xf32>
    %281 = vector.broadcast %280 : vector<16x1xf32> to vector<16x128xf32>
    %282 = arith.subf %274, %281 : vector<16x128xf32>
    %283 = arith.mulf %282, %282 : vector<16x128xf32>
    %cst_153 = arith.constant dense<0.000000e+00> : vector<16xf32>
    %284 = vector.multi_reduction <add>, %283, %cst_153 [1] : vector<16x128xf32> to vector<16xf32>
    %285 = vector.shape_cast %284 : vector<16xf32> to vector<16x1xf32>
    %cst_154 = arith.constant 1.280000e+02 : f32
    %286 = vector.broadcast %cst_154 : f32 to vector<16x1xf32>
    %287 = arith.divf %285, %286 : vector<16x1xf32>
    %cst_155 = arith.constant 9.99999974E-6 : f32
    %288 = vector.broadcast %cst_155 : f32 to vector<16x1xf32>
    %289 = arith.addf %287, %288 : vector<16x1xf32>
    %290 = math.rsqrt %289 : vector<16x1xf32>
    %291 = arith.mulf %275, %290 : vector<16x1xf32>
    %292 = vector.broadcast %280 : vector<16x1xf32> to vector<16x128xf32>
    %293 = arith.subf %274, %292 : vector<16x128xf32>
    %294 = vector.broadcast %291 : vector<16x1xf32> to vector<16x128xf32>
    %295 = arith.mulf %293, %294 : vector<16x128xf32>
    %296 = vector.broadcast %276 : vector<16x1xf32> to vector<16x128xf32>
    %297 = arith.addf %295, %296 : vector<16x128xf32>
    %cst_156 = arith.constant 0.000000e+00 : f32
    %298 = vector.broadcast %cst_156 : f32 to vector<16x128xf32>
    %299 = arith.maximumf %297, %298 : vector<16x128xf32>
    %c0_157 = arith.constant 0 : index
    %c0_158 = arith.constant 0 : index
    %300 = vector.load %arg19[%c0_157, %c0_158] : memref<16x1xf32, #tpu.memory_space<vmem>>, vector<16x1xf32>
    %cst_159 = arith.constant 0.000000e+00 : f32
    %301 = vector.broadcast %cst_159 : f32 to vector<16x128xf32>
    %302 = vector.broadcast %300 : vector<16x1xf32> to vector<16x128xf32>
    %303 = arith.addf %301, %302 : vector<16x128xf32>
    %c9_i32_160 = arith.constant 9 : i32
    %304 = tpu.dynamic_rotate %299 by %c9_i32_160 dim 1 : vector<16x128xf32>, i32 -> vector<16x128xf32>
    %305 = vector.extract_strided_slice %1 {offsets = [0, 0], sizes = [1, 128], strides = [1, 1]} : vector<9x128xf32> to vector<1x128xf32>
    %306 = vector.broadcast %305 : vector<1x128xf32> to vector<16x128xf32>
    %307 = arith.mulf %304, %306 : vector<16x128xf32>
    %c0_161 = arith.constant 0 : index
    %c0_162 = arith.constant 0 : index
    %c0_163 = arith.constant 0 : index
    %308 = vector.load %arg18[%c0_161, %c0_162, %c0_163] : memref<9x16x16xf32, #tpu.memory_space<vmem>>, vector<1x16x16xf32>
    %309 = vector.shape_cast %308 : vector<1x16x16xf32> to vector<16x16xf32>
    %cst_164 = arith.constant dense<0.000000e+00> : vector<16x128xf32>
    %310 = tpu.matmul %309, %307, %cst_164 {dimension_numbers = #tpu.dot_dimension_numbers<[1], [0], [0], [1], [0, 0, 1, 1], [], []>} : vector<16x16xf32>, vector<16x128xf32>, vector<16x128xf32> -> vector<16x128xf32>
    %311 = arith.addf %303, %310 : vector<16x128xf32>
    %c8_i32_165 = arith.constant 8 : i32
    %312 = tpu.dynamic_rotate %299 by %c8_i32_165 dim 1 : vector<16x128xf32>, i32 -> vector<16x128xf32>
    %313 = vector.extract_strided_slice %1 {offsets = [1, 0], sizes = [1, 128], strides = [1, 1]} : vector<9x128xf32> to vector<1x128xf32>
    %314 = vector.broadcast %313 : vector<1x128xf32> to vector<16x128xf32>
    %315 = arith.mulf %312, %314 : vector<16x128xf32>
    %c1_166 = arith.constant 1 : index
    %c0_167 = arith.constant 0 : index
    %c0_168 = arith.constant 0 : index
    %316 = vector.load %arg18[%c1_166, %c0_167, %c0_168] : memref<9x16x16xf32, #tpu.memory_space<vmem>>, vector<1x16x16xf32>
    %317 = vector.shape_cast %316 : vector<1x16x16xf32> to vector<16x16xf32>
    %cst_169 = arith.constant dense<0.000000e+00> : vector<16x128xf32>
    %318 = tpu.matmul %317, %315, %cst_169 {dimension_numbers = #tpu.dot_dimension_numbers<[1], [0], [0], [1], [0, 0, 1, 1], [], []>} : vector<16x16xf32>, vector<16x128xf32>, vector<16x128xf32> -> vector<16x128xf32>
    %319 = arith.addf %311, %318 : vector<16x128xf32>
    %c7_i32_170 = arith.constant 7 : i32
    %320 = tpu.dynamic_rotate %299 by %c7_i32_170 dim 1 : vector<16x128xf32>, i32 -> vector<16x128xf32>
    %321 = vector.extract_strided_slice %1 {offsets = [2, 0], sizes = [1, 128], strides = [1, 1]} : vector<9x128xf32> to vector<1x128xf32>
    %322 = vector.broadcast %321 : vector<1x128xf32> to vector<16x128xf32>
    %323 = arith.mulf %320, %322 : vector<16x128xf32>
    %c2_171 = arith.constant 2 : index
    %c0_172 = arith.constant 0 : index
    %c0_173 = arith.constant 0 : index
    %324 = vector.load %arg18[%c2_171, %c0_172, %c0_173] : memref<9x16x16xf32, #tpu.memory_space<vmem>>, vector<1x16x16xf32>
    %325 = vector.shape_cast %324 : vector<1x16x16xf32> to vector<16x16xf32>
    %cst_174 = arith.constant dense<0.000000e+00> : vector<16x128xf32>
    %326 = tpu.matmul %325, %323, %cst_174 {dimension_numbers = #tpu.dot_dimension_numbers<[1], [0], [0], [1], [0, 0, 1, 1], [], []>} : vector<16x16xf32>, vector<16x128xf32>, vector<16x128xf32> -> vector<16x128xf32>
    %327 = arith.addf %319, %326 : vector<16x128xf32>
    %c1_i32_175 = arith.constant 1 : i32
    %328 = tpu.dynamic_rotate %299 by %c1_i32_175 dim 1 : vector<16x128xf32>, i32 -> vector<16x128xf32>
    %329 = vector.extract_strided_slice %1 {offsets = [3, 0], sizes = [1, 128], strides = [1, 1]} : vector<9x128xf32> to vector<1x128xf32>
    %330 = vector.broadcast %329 : vector<1x128xf32> to vector<16x128xf32>
    %331 = arith.mulf %328, %330 : vector<16x128xf32>
    %c3_176 = arith.constant 3 : index
    %c0_177 = arith.constant 0 : index
    %c0_178 = arith.constant 0 : index
    %332 = vector.load %arg18[%c3_176, %c0_177, %c0_178] : memref<9x16x16xf32, #tpu.memory_space<vmem>>, vector<1x16x16xf32>
    %333 = vector.shape_cast %332 : vector<1x16x16xf32> to vector<16x16xf32>
    %cst_179 = arith.constant dense<0.000000e+00> : vector<16x128xf32>
    %334 = tpu.matmul %333, %331, %cst_179 {dimension_numbers = #tpu.dot_dimension_numbers<[1], [0], [0], [1], [0, 0, 1, 1], [], []>} : vector<16x16xf32>, vector<16x128xf32>, vector<16x128xf32> -> vector<16x128xf32>
    %335 = arith.addf %327, %334 : vector<16x128xf32>
    %c4_180 = arith.constant 4 : index
    %c0_181 = arith.constant 0 : index
    %c0_182 = arith.constant 0 : index
    %336 = vector.load %arg18[%c4_180, %c0_181, %c0_182] : memref<9x16x16xf32, #tpu.memory_space<vmem>>, vector<1x16x16xf32>
    %337 = vector.shape_cast %336 : vector<1x16x16xf32> to vector<16x16xf32>
    %cst_183 = arith.constant dense<0.000000e+00> : vector<16x128xf32>
    %338 = tpu.matmul %337, %299, %cst_183 {dimension_numbers = #tpu.dot_dimension_numbers<[1], [0], [0], [1], [0, 0, 1, 1], [], []>} : vector<16x16xf32>, vector<16x128xf32>, vector<16x128xf32> -> vector<16x128xf32>
    %339 = arith.addf %335, %338 : vector<16x128xf32>
    %c127_i32_184 = arith.constant 127 : i32
    %340 = tpu.dynamic_rotate %299 by %c127_i32_184 dim 1 : vector<16x128xf32>, i32 -> vector<16x128xf32>
    %341 = vector.extract_strided_slice %1 {offsets = [5, 0], sizes = [1, 128], strides = [1, 1]} : vector<9x128xf32> to vector<1x128xf32>
    %342 = vector.broadcast %341 : vector<1x128xf32> to vector<16x128xf32>
    %343 = arith.mulf %340, %342 : vector<16x128xf32>
    %c5_185 = arith.constant 5 : index
    %c0_186 = arith.constant 0 : index
    %c0_187 = arith.constant 0 : index
    %344 = vector.load %arg18[%c5_185, %c0_186, %c0_187] : memref<9x16x16xf32, #tpu.memory_space<vmem>>, vector<1x16x16xf32>
    %345 = vector.shape_cast %344 : vector<1x16x16xf32> to vector<16x16xf32>
    %cst_188 = arith.constant dense<0.000000e+00> : vector<16x128xf32>
    %346 = tpu.matmul %345, %343, %cst_188 {dimension_numbers = #tpu.dot_dimension_numbers<[1], [0], [0], [1], [0, 0, 1, 1], [], []>} : vector<16x16xf32>, vector<16x128xf32>, vector<16x128xf32> -> vector<16x128xf32>
    %347 = arith.addf %339, %346 : vector<16x128xf32>
    %c121_i32_189 = arith.constant 121 : i32
    %348 = tpu.dynamic_rotate %299 by %c121_i32_189 dim 1 : vector<16x128xf32>, i32 -> vector<16x128xf32>
    %349 = vector.extract_strided_slice %1 {offsets = [6, 0], sizes = [1, 128], strides = [1, 1]} : vector<9x128xf32> to vector<1x128xf32>
    %350 = vector.broadcast %349 : vector<1x128xf32> to vector<16x128xf32>
    %351 = arith.mulf %348, %350 : vector<16x128xf32>
    %c6_190 = arith.constant 6 : index
    %c0_191 = arith.constant 0 : index
    %c0_192 = arith.constant 0 : index
    %352 = vector.load %arg18[%c6_190, %c0_191, %c0_192] : memref<9x16x16xf32, #tpu.memory_space<vmem>>, vector<1x16x16xf32>
    %353 = vector.shape_cast %352 : vector<1x16x16xf32> to vector<16x16xf32>
    %cst_193 = arith.constant dense<0.000000e+00> : vector<16x128xf32>
    %354 = tpu.matmul %353, %351, %cst_193 {dimension_numbers = #tpu.dot_dimension_numbers<[1], [0], [0], [1], [0, 0, 1, 1], [], []>} : vector<16x16xf32>, vector<16x128xf32>, vector<16x128xf32> -> vector<16x128xf32>
    %355 = arith.addf %347, %354 : vector<16x128xf32>
    %c120_i32_194 = arith.constant 120 : i32
    %356 = tpu.dynamic_rotate %299 by %c120_i32_194 dim 1 : vector<16x128xf32>, i32 -> vector<16x128xf32>
    %357 = vector.extract_strided_slice %1 {offsets = [7, 0], sizes = [1, 128], strides = [1, 1]} : vector<9x128xf32> to vector<1x128xf32>
    %358 = vector.broadcast %357 : vector<1x128xf32> to vector<16x128xf32>
    %359 = arith.mulf %356, %358 : vector<16x128xf32>
    %c7_195 = arith.constant 7 : index
    %c0_196 = arith.constant 0 : index
    %c0_197 = arith.constant 0 : index
    %360 = vector.load %arg18[%c7_195, %c0_196, %c0_197] : memref<9x16x16xf32, #tpu.memory_space<vmem>>, vector<1x16x16xf32>
    %361 = vector.shape_cast %360 : vector<1x16x16xf32> to vector<16x16xf32>
    %cst_198 = arith.constant dense<0.000000e+00> : vector<16x128xf32>
    %362 = tpu.matmul %361, %359, %cst_198 {dimension_numbers = #tpu.dot_dimension_numbers<[1], [0], [0], [1], [0, 0, 1, 1], [], []>} : vector<16x16xf32>, vector<16x128xf32>, vector<16x128xf32> -> vector<16x128xf32>
    %363 = arith.addf %355, %362 : vector<16x128xf32>
    %c119_i32_199 = arith.constant 119 : i32
    %364 = tpu.dynamic_rotate %299 by %c119_i32_199 dim 1 : vector<16x128xf32>, i32 -> vector<16x128xf32>
    %365 = vector.extract_strided_slice %1 {offsets = [8, 0], sizes = [1, 128], strides = [1, 1]} : vector<9x128xf32> to vector<1x128xf32>
    %366 = vector.broadcast %365 : vector<1x128xf32> to vector<16x128xf32>
    %367 = arith.mulf %364, %366 : vector<16x128xf32>
    %c8_200 = arith.constant 8 : index
    %c0_201 = arith.constant 0 : index
    %c0_202 = arith.constant 0 : index
    %368 = vector.load %arg18[%c8_200, %c0_201, %c0_202] : memref<9x16x16xf32, #tpu.memory_space<vmem>>, vector<1x16x16xf32>
    %369 = vector.shape_cast %368 : vector<1x16x16xf32> to vector<16x16xf32>
    %cst_203 = arith.constant dense<0.000000e+00> : vector<16x128xf32>
    %370 = tpu.matmul %369, %367, %cst_203 {dimension_numbers = #tpu.dot_dimension_numbers<[1], [0], [0], [1], [0, 0, 1, 1], [], []>} : vector<16x16xf32>, vector<16x128xf32>, vector<16x128xf32> -> vector<16x128xf32>
    %371 = arith.addf %363, %370 : vector<16x128xf32>
    %c0_204 = arith.constant 0 : index
    %c0_205 = arith.constant 0 : index
    %372 = vector.load %arg20[%c0_204, %c0_205] : memref<16x1xf32, #tpu.memory_space<vmem>>, vector<16x1xf32>
    %c0_206 = arith.constant 0 : index
    %c0_207 = arith.constant 0 : index
    %373 = vector.load %arg21[%c0_206, %c0_207] : memref<16x1xf32, #tpu.memory_space<vmem>>, vector<16x1xf32>
    %cst_208 = arith.constant dense<0.000000e+00> : vector<16xf32>
    %374 = vector.multi_reduction <add>, %371, %cst_208 [1] : vector<16x128xf32> to vector<16xf32>
    %375 = vector.shape_cast %374 : vector<16xf32> to vector<16x1xf32>
    %cst_209 = arith.constant 1.280000e+02 : f32
    %376 = vector.broadcast %cst_209 : f32 to vector<16x1xf32>
    %377 = arith.divf %375, %376 : vector<16x1xf32>
    %378 = vector.broadcast %377 : vector<16x1xf32> to vector<16x128xf32>
    %379 = arith.subf %371, %378 : vector<16x128xf32>
    %380 = arith.mulf %379, %379 : vector<16x128xf32>
    %cst_210 = arith.constant dense<0.000000e+00> : vector<16xf32>
    %381 = vector.multi_reduction <add>, %380, %cst_210 [1] : vector<16x128xf32> to vector<16xf32>
    %382 = vector.shape_cast %381 : vector<16xf32> to vector<16x1xf32>
    %cst_211 = arith.constant 1.280000e+02 : f32
    %383 = vector.broadcast %cst_211 : f32 to vector<16x1xf32>
    %384 = arith.divf %382, %383 : vector<16x1xf32>
    %cst_212 = arith.constant 9.99999974E-6 : f32
    %385 = vector.broadcast %cst_212 : f32 to vector<16x1xf32>
    %386 = arith.addf %384, %385 : vector<16x1xf32>
    %387 = math.rsqrt %386 : vector<16x1xf32>
    %388 = arith.mulf %372, %387 : vector<16x1xf32>
    %389 = vector.broadcast %377 : vector<16x1xf32> to vector<16x128xf32>
    %390 = arith.subf %371, %389 : vector<16x128xf32>
    %391 = vector.broadcast %388 : vector<16x1xf32> to vector<16x128xf32>
    %392 = arith.mulf %390, %391 : vector<16x128xf32>
    %393 = vector.broadcast %373 : vector<16x1xf32> to vector<16x128xf32>
    %394 = arith.addf %392, %393 : vector<16x128xf32>
    %cst_213 = arith.constant 0.000000e+00 : f32
    %395 = vector.broadcast %cst_213 : f32 to vector<16x128xf32>
    %396 = arith.maximumf %394, %395 : vector<16x128xf32>
    %c0_214 = arith.constant 0 : index
    %c0_215 = arith.constant 0 : index
    %397 = vector.load %arg23[%c0_214, %c0_215] : memref<8x1xf32, #tpu.memory_space<vmem>>, vector<8x1xf32>
    %cst_216 = arith.constant 0.000000e+00 : f32
    %398 = vector.broadcast %cst_216 : f32 to vector<8x512xf32>
    %399 = vector.broadcast %397 : vector<8x1xf32> to vector<8x512xf32>
    %400 = arith.addf %398, %399 : vector<8x512xf32>
    %c0_217 = arith.constant 0 : index
    %c0_218 = arith.constant 0 : index
    %c0_219 = arith.constant 0 : index
    %401 = vector.load %arg22[%c0_217, %c0_218, %c0_219] : memref<4x8x16xf32, #tpu.memory_space<vmem>>, vector<1x8x16xf32>
    %402 = vector.shape_cast %401 : vector<1x8x16xf32> to vector<8x16xf32>
    %cst_220 = arith.constant dense<0.000000e+00> : vector<8x128xf32>
    %403 = tpu.matmul %402, %396, %cst_220 {dimension_numbers = #tpu.dot_dimension_numbers<[1], [0], [0], [1], [0, 0, 1, 1], [], []>} : vector<8x16xf32>, vector<16x128xf32>, vector<8x128xf32> -> vector<8x128xf32>
    %c0_221 = arith.constant 0 : index
    %c0_222 = arith.constant 0 : index
    %c0_223 = arith.constant 0 : index
    %404 = vector.load %arg5[%c0_221, %c0_222, %c0_223] : memref<4x128x512xf32, #tpu.memory_space<vmem>>, vector<1x128x512xf32>
    %405 = vector.shape_cast %404 : vector<1x128x512xf32> to vector<128x512xf32>
    %cst_224 = arith.constant dense<0.000000e+00> : vector<8x512xf32>
    %406 = tpu.matmul %403, %405, %cst_224 {dimension_numbers = #tpu.dot_dimension_numbers<[1], [0], [0], [1], [0, 0, 1, 1], [], []>} : vector<8x128xf32>, vector<128x512xf32>, vector<8x512xf32> -> vector<8x512xf32>
    %407 = arith.addf %400, %406 : vector<8x512xf32>
    %c1_225 = arith.constant 1 : index
    %c0_226 = arith.constant 0 : index
    %c0_227 = arith.constant 0 : index
    %408 = vector.load %arg22[%c1_225, %c0_226, %c0_227] : memref<4x8x16xf32, #tpu.memory_space<vmem>>, vector<1x8x16xf32>
    %409 = vector.shape_cast %408 : vector<1x8x16xf32> to vector<8x16xf32>
    %cst_228 = arith.constant dense<0.000000e+00> : vector<8x128xf32>
    %410 = tpu.matmul %409, %396, %cst_228 {dimension_numbers = #tpu.dot_dimension_numbers<[1], [0], [0], [1], [0, 0, 1, 1], [], []>} : vector<8x16xf32>, vector<16x128xf32>, vector<8x128xf32> -> vector<8x128xf32>
    %c1_229 = arith.constant 1 : index
    %c0_230 = arith.constant 0 : index
    %c0_231 = arith.constant 0 : index
    %411 = vector.load %arg5[%c1_229, %c0_230, %c0_231] : memref<4x128x512xf32, #tpu.memory_space<vmem>>, vector<1x128x512xf32>
    %412 = vector.shape_cast %411 : vector<1x128x512xf32> to vector<128x512xf32>
    %cst_232 = arith.constant dense<0.000000e+00> : vector<8x512xf32>
    %413 = tpu.matmul %410, %412, %cst_232 {dimension_numbers = #tpu.dot_dimension_numbers<[1], [0], [0], [1], [0, 0, 1, 1], [], []>} : vector<8x128xf32>, vector<128x512xf32>, vector<8x512xf32> -> vector<8x512xf32>
    %414 = arith.addf %407, %413 : vector<8x512xf32>
    %c2_233 = arith.constant 2 : index
    %c0_234 = arith.constant 0 : index
    %c0_235 = arith.constant 0 : index
    %415 = vector.load %arg22[%c2_233, %c0_234, %c0_235] : memref<4x8x16xf32, #tpu.memory_space<vmem>>, vector<1x8x16xf32>
    %416 = vector.shape_cast %415 : vector<1x8x16xf32> to vector<8x16xf32>
    %cst_236 = arith.constant dense<0.000000e+00> : vector<8x128xf32>
    %417 = tpu.matmul %416, %396, %cst_236 {dimension_numbers = #tpu.dot_dimension_numbers<[1], [0], [0], [1], [0, 0, 1, 1], [], []>} : vector<8x16xf32>, vector<16x128xf32>, vector<8x128xf32> -> vector<8x128xf32>
    %c2_237 = arith.constant 2 : index
    %c0_238 = arith.constant 0 : index
    %c0_239 = arith.constant 0 : index
    %418 = vector.load %arg5[%c2_237, %c0_238, %c0_239] : memref<4x128x512xf32, #tpu.memory_space<vmem>>, vector<1x128x512xf32>
    %419 = vector.shape_cast %418 : vector<1x128x512xf32> to vector<128x512xf32>
    %cst_240 = arith.constant dense<0.000000e+00> : vector<8x512xf32>
    %420 = tpu.matmul %417, %419, %cst_240 {dimension_numbers = #tpu.dot_dimension_numbers<[1], [0], [0], [1], [0, 0, 1, 1], [], []>} : vector<8x128xf32>, vector<128x512xf32>, vector<8x512xf32> -> vector<8x512xf32>
    %421 = arith.addf %414, %420 : vector<8x512xf32>
    %c3_241 = arith.constant 3 : index
    %c0_242 = arith.constant 0 : index
    %c0_243 = arith.constant 0 : index
    %422 = vector.load %arg22[%c3_241, %c0_242, %c0_243] : memref<4x8x16xf32, #tpu.memory_space<vmem>>, vector<1x8x16xf32>
    %423 = vector.shape_cast %422 : vector<1x8x16xf32> to vector<8x16xf32>
    %cst_244 = arith.constant dense<0.000000e+00> : vector<8x128xf32>
    %424 = tpu.matmul %423, %396, %cst_244 {dimension_numbers = #tpu.dot_dimension_numbers<[1], [0], [0], [1], [0, 0, 1, 1], [], []>} : vector<8x16xf32>, vector<16x128xf32>, vector<8x128xf32> -> vector<8x128xf32>
    %c3_245 = arith.constant 3 : index
    %c0_246 = arith.constant 0 : index
    %c0_247 = arith.constant 0 : index
    %425 = vector.load %arg5[%c3_245, %c0_246, %c0_247] : memref<4x128x512xf32, #tpu.memory_space<vmem>>, vector<1x128x512xf32>
    %426 = vector.shape_cast %425 : vector<1x128x512xf32> to vector<128x512xf32>
    %cst_248 = arith.constant dense<0.000000e+00> : vector<8x512xf32>
    %427 = tpu.matmul %424, %426, %cst_248 {dimension_numbers = #tpu.dot_dimension_numbers<[1], [0], [0], [1], [0, 0, 1, 1], [], []>} : vector<8x128xf32>, vector<128x512xf32>, vector<8x512xf32> -> vector<8x512xf32>
    %428 = arith.addf %421, %427 : vector<8x512xf32>
    %429 = tpu.concatenate %196, %428 in 0 : vector<8x512xf32>, vector<8x512xf32> -> vector<16x512xf32>
    %c0_249 = arith.constant 0 : index
    %c0_250 = arith.constant 0 : index
    %430 = vector.load %arg25[%c0_249, %c0_250] : memref<8x1xf32, #tpu.memory_space<vmem>>, vector<8x1xf32>
    %cst_251 = arith.constant 0.000000e+00 : f32
    %431 = vector.broadcast %cst_251 : f32 to vector<8x512xf32>
    %432 = vector.broadcast %430 : vector<8x1xf32> to vector<8x512xf32>
    %433 = arith.addf %431, %432 : vector<8x512xf32>
    %c17_i32_252 = arith.constant 17 : i32
    %434 = tpu.dynamic_rotate %429 by %c17_i32_252 dim 1 : vector<16x512xf32>, i32 -> vector<16x512xf32>
    %435 = vector.extract_strided_slice %0 {offsets = [0, 0], sizes = [1, 512], strides = [1, 1]} : vector<9x512xf32> to vector<1x512xf32>
    %436 = vector.broadcast %435 : vector<1x512xf32> to vector<16x512xf32>
    %437 = arith.mulf %434, %436 : vector<16x512xf32>
    %c0_253 = arith.constant 0 : index
    %c0_254 = arith.constant 0 : index
    %c0_255 = arith.constant 0 : index
    %438 = vector.load %arg24[%c0_253, %c0_254, %c0_255] : memref<9x8x16xf32, #tpu.memory_space<vmem>>, vector<1x8x16xf32>
    %439 = vector.shape_cast %438 : vector<1x8x16xf32> to vector<8x16xf32>
    %cst_256 = arith.constant dense<0.000000e+00> : vector<8x512xf32>
    %440 = tpu.matmul %439, %437, %cst_256 {dimension_numbers = #tpu.dot_dimension_numbers<[1], [0], [0], [1], [0, 0, 1, 1], [], []>} : vector<8x16xf32>, vector<16x512xf32>, vector<8x512xf32> -> vector<8x512xf32>
    %441 = arith.addf %433, %440 : vector<8x512xf32>
    %c16_i32_257 = arith.constant 16 : i32
    %442 = tpu.dynamic_rotate %429 by %c16_i32_257 dim 1 : vector<16x512xf32>, i32 -> vector<16x512xf32>
    %443 = vector.extract_strided_slice %0 {offsets = [1, 0], sizes = [1, 512], strides = [1, 1]} : vector<9x512xf32> to vector<1x512xf32>
    %444 = vector.broadcast %443 : vector<1x512xf32> to vector<16x512xf32>
    %445 = arith.mulf %442, %444 : vector<16x512xf32>
    %c1_258 = arith.constant 1 : index
    %c0_259 = arith.constant 0 : index
    %c0_260 = arith.constant 0 : index
    %446 = vector.load %arg24[%c1_258, %c0_259, %c0_260] : memref<9x8x16xf32, #tpu.memory_space<vmem>>, vector<1x8x16xf32>
    %447 = vector.shape_cast %446 : vector<1x8x16xf32> to vector<8x16xf32>
    %cst_261 = arith.constant dense<0.000000e+00> : vector<8x512xf32>
    %448 = tpu.matmul %447, %445, %cst_261 {dimension_numbers = #tpu.dot_dimension_numbers<[1], [0], [0], [1], [0, 0, 1, 1], [], []>} : vector<8x16xf32>, vector<16x512xf32>, vector<8x512xf32> -> vector<8x512xf32>
    %449 = arith.addf %441, %448 : vector<8x512xf32>
    %c15_i32_262 = arith.constant 15 : i32
    %450 = tpu.dynamic_rotate %429 by %c15_i32_262 dim 1 : vector<16x512xf32>, i32 -> vector<16x512xf32>
    %451 = vector.extract_strided_slice %0 {offsets = [2, 0], sizes = [1, 512], strides = [1, 1]} : vector<9x512xf32> to vector<1x512xf32>
    %452 = vector.broadcast %451 : vector<1x512xf32> to vector<16x512xf32>
    %453 = arith.mulf %450, %452 : vector<16x512xf32>
    %c2_263 = arith.constant 2 : index
    %c0_264 = arith.constant 0 : index
    %c0_265 = arith.constant 0 : index
    %454 = vector.load %arg24[%c2_263, %c0_264, %c0_265] : memref<9x8x16xf32, #tpu.memory_space<vmem>>, vector<1x8x16xf32>
    %455 = vector.shape_cast %454 : vector<1x8x16xf32> to vector<8x16xf32>
    %cst_266 = arith.constant dense<0.000000e+00> : vector<8x512xf32>
    %456 = tpu.matmul %455, %453, %cst_266 {dimension_numbers = #tpu.dot_dimension_numbers<[1], [0], [0], [1], [0, 0, 1, 1], [], []>} : vector<8x16xf32>, vector<16x512xf32>, vector<8x512xf32> -> vector<8x512xf32>
    %457 = arith.addf %449, %456 : vector<8x512xf32>
    %c1_i32_267 = arith.constant 1 : i32
    %458 = tpu.dynamic_rotate %429 by %c1_i32_267 dim 1 : vector<16x512xf32>, i32 -> vector<16x512xf32>
    %459 = vector.extract_strided_slice %0 {offsets = [3, 0], sizes = [1, 512], strides = [1, 1]} : vector<9x512xf32> to vector<1x512xf32>
    %460 = vector.broadcast %459 : vector<1x512xf32> to vector<16x512xf32>
    %461 = arith.mulf %458, %460 : vector<16x512xf32>
    %c3_268 = arith.constant 3 : index
    %c0_269 = arith.constant 0 : index
    %c0_270 = arith.constant 0 : index
    %462 = vector.load %arg24[%c3_268, %c0_269, %c0_270] : memref<9x8x16xf32, #tpu.memory_space<vmem>>, vector<1x8x16xf32>
    %463 = vector.shape_cast %462 : vector<1x8x16xf32> to vector<8x16xf32>
    %cst_271 = arith.constant dense<0.000000e+00> : vector<8x512xf32>
    %464 = tpu.matmul %463, %461, %cst_271 {dimension_numbers = #tpu.dot_dimension_numbers<[1], [0], [0], [1], [0, 0, 1, 1], [], []>} : vector<8x16xf32>, vector<16x512xf32>, vector<8x512xf32> -> vector<8x512xf32>
    %465 = arith.addf %457, %464 : vector<8x512xf32>
    %c4_272 = arith.constant 4 : index
    %c0_273 = arith.constant 0 : index
    %c0_274 = arith.constant 0 : index
    %466 = vector.load %arg24[%c4_272, %c0_273, %c0_274] : memref<9x8x16xf32, #tpu.memory_space<vmem>>, vector<1x8x16xf32>
    %467 = vector.shape_cast %466 : vector<1x8x16xf32> to vector<8x16xf32>
    %cst_275 = arith.constant dense<0.000000e+00> : vector<8x512xf32>
    %468 = tpu.matmul %467, %429, %cst_275 {dimension_numbers = #tpu.dot_dimension_numbers<[1], [0], [0], [1], [0, 0, 1, 1], [], []>} : vector<8x16xf32>, vector<16x512xf32>, vector<8x512xf32> -> vector<8x512xf32>
    %469 = arith.addf %465, %468 : vector<8x512xf32>
    %c511_i32_276 = arith.constant 511 : i32
    %470 = tpu.dynamic_rotate %429 by %c511_i32_276 dim 1 : vector<16x512xf32>, i32 -> vector<16x512xf32>
    %471 = vector.extract_strided_slice %0 {offsets = [5, 0], sizes = [1, 512], strides = [1, 1]} : vector<9x512xf32> to vector<1x512xf32>
    %472 = vector.broadcast %471 : vector<1x512xf32> to vector<16x512xf32>
    %473 = arith.mulf %470, %472 : vector<16x512xf32>
    %c5_277 = arith.constant 5 : index
    %c0_278 = arith.constant 0 : index
    %c0_279 = arith.constant 0 : index
    %474 = vector.load %arg24[%c5_277, %c0_278, %c0_279] : memref<9x8x16xf32, #tpu.memory_space<vmem>>, vector<1x8x16xf32>
    %475 = vector.shape_cast %474 : vector<1x8x16xf32> to vector<8x16xf32>
    %cst_280 = arith.constant dense<0.000000e+00> : vector<8x512xf32>
    %476 = tpu.matmul %475, %473, %cst_280 {dimension_numbers = #tpu.dot_dimension_numbers<[1], [0], [0], [1], [0, 0, 1, 1], [], []>} : vector<8x16xf32>, vector<16x512xf32>, vector<8x512xf32> -> vector<8x512xf32>
    %477 = arith.addf %469, %476 : vector<8x512xf32>
    %c497_i32_281 = arith.constant 497 : i32
    %478 = tpu.dynamic_rotate %429 by %c497_i32_281 dim 1 : vector<16x512xf32>, i32 -> vector<16x512xf32>
    %479 = vector.extract_strided_slice %0 {offsets = [6, 0], sizes = [1, 512], strides = [1, 1]} : vector<9x512xf32> to vector<1x512xf32>
    %480 = vector.broadcast %479 : vector<1x512xf32> to vector<16x512xf32>
    %481 = arith.mulf %478, %480 : vector<16x512xf32>
    %c6_282 = arith.constant 6 : index
    %c0_283 = arith.constant 0 : index
    %c0_284 = arith.constant 0 : index
    %482 = vector.load %arg24[%c6_282, %c0_283, %c0_284] : memref<9x8x16xf32, #tpu.memory_space<vmem>>, vector<1x8x16xf32>
    %483 = vector.shape_cast %482 : vector<1x8x16xf32> to vector<8x16xf32>
    %cst_285 = arith.constant dense<0.000000e+00> : vector<8x512xf32>
    %484 = tpu.matmul %483, %481, %cst_285 {dimension_numbers = #tpu.dot_dimension_numbers<[1], [0], [0], [1], [0, 0, 1, 1], [], []>} : vector<8x16xf32>, vector<16x512xf32>, vector<8x512xf32> -> vector<8x512xf32>
    %485 = arith.addf %477, %484 : vector<8x512xf32>
    %c496_i32_286 = arith.constant 496 : i32
    %486 = tpu.dynamic_rotate %429 by %c496_i32_286 dim 1 : vector<16x512xf32>, i32 -> vector<16x512xf32>
    %487 = vector.extract_strided_slice %0 {offsets = [7, 0], sizes = [1, 512], strides = [1, 1]} : vector<9x512xf32> to vector<1x512xf32>
    %488 = vector.broadcast %487 : vector<1x512xf32> to vector<16x512xf32>
    %489 = arith.mulf %486, %488 : vector<16x512xf32>
    %c7_287 = arith.constant 7 : index
    %c0_288 = arith.constant 0 : index
    %c0_289 = arith.constant 0 : index
    %490 = vector.load %arg24[%c7_287, %c0_288, %c0_289] : memref<9x8x16xf32, #tpu.memory_space<vmem>>, vector<1x8x16xf32>
    %491 = vector.shape_cast %490 : vector<1x8x16xf32> to vector<8x16xf32>
    %cst_290 = arith.constant dense<0.000000e+00> : vector<8x512xf32>
    %492 = tpu.matmul %491, %489, %cst_290 {dimension_numbers = #tpu.dot_dimension_numbers<[1], [0], [0], [1], [0, 0, 1, 1], [], []>} : vector<8x16xf32>, vector<16x512xf32>, vector<8x512xf32> -> vector<8x512xf32>
    %493 = arith.addf %485, %492 : vector<8x512xf32>
    %c495_i32_291 = arith.constant 495 : i32
    %494 = tpu.dynamic_rotate %429 by %c495_i32_291 dim 1 : vector<16x512xf32>, i32 -> vector<16x512xf32>
    %495 = vector.extract_strided_slice %0 {offsets = [8, 0], sizes = [1, 512], strides = [1, 1]} : vector<9x512xf32> to vector<1x512xf32>
    %496 = vector.broadcast %495 : vector<1x512xf32> to vector<16x512xf32>
    %497 = arith.mulf %494, %496 : vector<16x512xf32>
    %c8_292 = arith.constant 8 : index
    %c0_293 = arith.constant 0 : index
    %c0_294 = arith.constant 0 : index
    %498 = vector.load %arg24[%c8_292, %c0_293, %c0_294] : memref<9x8x16xf32, #tpu.memory_space<vmem>>, vector<1x8x16xf32>
    %499 = vector.shape_cast %498 : vector<1x8x16xf32> to vector<8x16xf32>
    %cst_295 = arith.constant dense<0.000000e+00> : vector<8x512xf32>
    %500 = tpu.matmul %499, %497, %cst_295 {dimension_numbers = #tpu.dot_dimension_numbers<[1], [0], [0], [1], [0, 0, 1, 1], [], []>} : vector<8x16xf32>, vector<16x512xf32>, vector<8x512xf32> -> vector<8x512xf32>
    %501 = arith.addf %493, %500 : vector<8x512xf32>
    %c0_296 = arith.constant 0 : index
    %c0_297 = arith.constant 0 : index
    %502 = vector.load %arg26[%c0_296, %c0_297] : memref<8x1xf32, #tpu.memory_space<vmem>>, vector<8x1xf32>
    %c0_298 = arith.constant 0 : index
    %c0_299 = arith.constant 0 : index
    %503 = vector.load %arg27[%c0_298, %c0_299] : memref<8x1xf32, #tpu.memory_space<vmem>>, vector<8x1xf32>
    %cst_300 = arith.constant dense<0.000000e+00> : vector<8xf32>
    %504 = vector.multi_reduction <add>, %501, %cst_300 [1] : vector<8x512xf32> to vector<8xf32>
    %505 = vector.shape_cast %504 : vector<8xf32> to vector<8x1xf32>
    %cst_301 = arith.constant 5.120000e+02 : f32
    %506 = vector.broadcast %cst_301 : f32 to vector<8x1xf32>
    %507 = arith.divf %505, %506 : vector<8x1xf32>
    %508 = vector.broadcast %507 : vector<8x1xf32> to vector<8x512xf32>
    %509 = arith.subf %501, %508 : vector<8x512xf32>
    %510 = arith.mulf %509, %509 : vector<8x512xf32>
    %cst_302 = arith.constant dense<0.000000e+00> : vector<8xf32>
    %511 = vector.multi_reduction <add>, %510, %cst_302 [1] : vector<8x512xf32> to vector<8xf32>
    %512 = vector.shape_cast %511 : vector<8xf32> to vector<8x1xf32>
    %cst_303 = arith.constant 5.120000e+02 : f32
    %513 = vector.broadcast %cst_303 : f32 to vector<8x1xf32>
    %514 = arith.divf %512, %513 : vector<8x1xf32>
    %cst_304 = arith.constant 9.99999974E-6 : f32
    %515 = vector.broadcast %cst_304 : f32 to vector<8x1xf32>
    %516 = arith.addf %514, %515 : vector<8x1xf32>
    %517 = math.rsqrt %516 : vector<8x1xf32>
    %518 = arith.mulf %502, %517 : vector<8x1xf32>
    %519 = vector.broadcast %507 : vector<8x1xf32> to vector<8x512xf32>
    %520 = arith.subf %501, %519 : vector<8x512xf32>
    %521 = vector.broadcast %518 : vector<8x1xf32> to vector<8x512xf32>
    %522 = arith.mulf %520, %521 : vector<8x512xf32>
    %523 = vector.broadcast %503 : vector<8x1xf32> to vector<8x512xf32>
    %524 = arith.addf %522, %523 : vector<8x512xf32>
    %cst_305 = arith.constant 0.000000e+00 : f32
    %525 = vector.broadcast %cst_305 : f32 to vector<8x512xf32>
    %526 = arith.maximumf %524, %525 : vector<8x512xf32>
    %c0_306 = arith.constant 0 : index
    %c0_307 = arith.constant 0 : index
    %527 = vector.load %arg29[%c0_306, %c0_307] : memref<8x1xf32, #tpu.memory_space<vmem>>, vector<8x1xf32>
    %cst_308 = arith.constant 0.000000e+00 : f32
    %528 = vector.broadcast %cst_308 : f32 to vector<8x512xf32>
    %529 = vector.broadcast %527 : vector<8x1xf32> to vector<8x512xf32>
    %530 = arith.addf %528, %529 : vector<8x512xf32>
    %c17_i32_309 = arith.constant 17 : i32
    %531 = tpu.dynamic_rotate %526 by %c17_i32_309 dim 1 : vector<8x512xf32>, i32 -> vector<8x512xf32>
    %532 = vector.extract_strided_slice %0 {offsets = [0, 0], sizes = [1, 512], strides = [1, 1]} : vector<9x512xf32> to vector<1x512xf32>
    %533 = vector.broadcast %532 : vector<1x512xf32> to vector<8x512xf32>
    %534 = arith.mulf %531, %533 : vector<8x512xf32>
    %c0_310 = arith.constant 0 : index
    %c0_311 = arith.constant 0 : index
    %c0_312 = arith.constant 0 : index
    %535 = vector.load %arg28[%c0_310, %c0_311, %c0_312] : memref<9x8x8xf32, #tpu.memory_space<vmem>>, vector<1x8x8xf32>
    %536 = vector.shape_cast %535 : vector<1x8x8xf32> to vector<8x8xf32>
    %cst_313 = arith.constant dense<0.000000e+00> : vector<8x512xf32>
    %537 = tpu.matmul %536, %534, %cst_313 {dimension_numbers = #tpu.dot_dimension_numbers<[1], [0], [0], [1], [0, 0, 1, 1], [], []>} : vector<8x8xf32>, vector<8x512xf32>, vector<8x512xf32> -> vector<8x512xf32>
    %538 = arith.addf %530, %537 : vector<8x512xf32>
    %c16_i32_314 = arith.constant 16 : i32
    %539 = tpu.dynamic_rotate %526 by %c16_i32_314 dim 1 : vector<8x512xf32>, i32 -> vector<8x512xf32>
    %540 = vector.extract_strided_slice %0 {offsets = [1, 0], sizes = [1, 512], strides = [1, 1]} : vector<9x512xf32> to vector<1x512xf32>
    %541 = vector.broadcast %540 : vector<1x512xf32> to vector<8x512xf32>
    %542 = arith.mulf %539, %541 : vector<8x512xf32>
    %c1_315 = arith.constant 1 : index
    %c0_316 = arith.constant 0 : index
    %c0_317 = arith.constant 0 : index
    %543 = vector.load %arg28[%c1_315, %c0_316, %c0_317] : memref<9x8x8xf32, #tpu.memory_space<vmem>>, vector<1x8x8xf32>
    %544 = vector.shape_cast %543 : vector<1x8x8xf32> to vector<8x8xf32>
    %cst_318 = arith.constant dense<0.000000e+00> : vector<8x512xf32>
    %545 = tpu.matmul %544, %542, %cst_318 {dimension_numbers = #tpu.dot_dimension_numbers<[1], [0], [0], [1], [0, 0, 1, 1], [], []>} : vector<8x8xf32>, vector<8x512xf32>, vector<8x512xf32> -> vector<8x512xf32>
    %546 = arith.addf %538, %545 : vector<8x512xf32>
    %c15_i32_319 = arith.constant 15 : i32
    %547 = tpu.dynamic_rotate %526 by %c15_i32_319 dim 1 : vector<8x512xf32>, i32 -> vector<8x512xf32>
    %548 = vector.extract_strided_slice %0 {offsets = [2, 0], sizes = [1, 512], strides = [1, 1]} : vector<9x512xf32> to vector<1x512xf32>
    %549 = vector.broadcast %548 : vector<1x512xf32> to vector<8x512xf32>
    %550 = arith.mulf %547, %549 : vector<8x512xf32>
    %c2_320 = arith.constant 2 : index
    %c0_321 = arith.constant 0 : index
    %c0_322 = arith.constant 0 : index
    %551 = vector.load %arg28[%c2_320, %c0_321, %c0_322] : memref<9x8x8xf32, #tpu.memory_space<vmem>>, vector<1x8x8xf32>
    %552 = vector.shape_cast %551 : vector<1x8x8xf32> to vector<8x8xf32>
    %cst_323 = arith.constant dense<0.000000e+00> : vector<8x512xf32>
    %553 = tpu.matmul %552, %550, %cst_323 {dimension_numbers = #tpu.dot_dimension_numbers<[1], [0], [0], [1], [0, 0, 1, 1], [], []>} : vector<8x8xf32>, vector<8x512xf32>, vector<8x512xf32> -> vector<8x512xf32>
    %554 = arith.addf %546, %553 : vector<8x512xf32>
    %c1_i32_324 = arith.constant 1 : i32
    %555 = tpu.dynamic_rotate %526 by %c1_i32_324 dim 1 : vector<8x512xf32>, i32 -> vector<8x512xf32>
    %556 = vector.extract_strided_slice %0 {offsets = [3, 0], sizes = [1, 512], strides = [1, 1]} : vector<9x512xf32> to vector<1x512xf32>
    %557 = vector.broadcast %556 : vector<1x512xf32> to vector<8x512xf32>
    %558 = arith.mulf %555, %557 : vector<8x512xf32>
    %c3_325 = arith.constant 3 : index
    %c0_326 = arith.constant 0 : index
    %c0_327 = arith.constant 0 : index
    %559 = vector.load %arg28[%c3_325, %c0_326, %c0_327] : memref<9x8x8xf32, #tpu.memory_space<vmem>>, vector<1x8x8xf32>
    %560 = vector.shape_cast %559 : vector<1x8x8xf32> to vector<8x8xf32>
    %cst_328 = arith.constant dense<0.000000e+00> : vector<8x512xf32>
    %561 = tpu.matmul %560, %558, %cst_328 {dimension_numbers = #tpu.dot_dimension_numbers<[1], [0], [0], [1], [0, 0, 1, 1], [], []>} : vector<8x8xf32>, vector<8x512xf32>, vector<8x512xf32> -> vector<8x512xf32>
    %562 = arith.addf %554, %561 : vector<8x512xf32>
    %c4_329 = arith.constant 4 : index
    %c0_330 = arith.constant 0 : index
    %c0_331 = arith.constant 0 : index
    %563 = vector.load %arg28[%c4_329, %c0_330, %c0_331] : memref<9x8x8xf32, #tpu.memory_space<vmem>>, vector<1x8x8xf32>
    %564 = vector.shape_cast %563 : vector<1x8x8xf32> to vector<8x8xf32>
    %cst_332 = arith.constant dense<0.000000e+00> : vector<8x512xf32>
    %565 = tpu.matmul %564, %526, %cst_332 {dimension_numbers = #tpu.dot_dimension_numbers<[1], [0], [0], [1], [0, 0, 1, 1], [], []>} : vector<8x8xf32>, vector<8x512xf32>, vector<8x512xf32> -> vector<8x512xf32>
    %566 = arith.addf %562, %565 : vector<8x512xf32>
    %c511_i32_333 = arith.constant 511 : i32
    %567 = tpu.dynamic_rotate %526 by %c511_i32_333 dim 1 : vector<8x512xf32>, i32 -> vector<8x512xf32>
    %568 = vector.extract_strided_slice %0 {offsets = [5, 0], sizes = [1, 512], strides = [1, 1]} : vector<9x512xf32> to vector<1x512xf32>
    %569 = vector.broadcast %568 : vector<1x512xf32> to vector<8x512xf32>
    %570 = arith.mulf %567, %569 : vector<8x512xf32>
    %c5_334 = arith.constant 5 : index
    %c0_335 = arith.constant 0 : index
    %c0_336 = arith.constant 0 : index
    %571 = vector.load %arg28[%c5_334, %c0_335, %c0_336] : memref<9x8x8xf32, #tpu.memory_space<vmem>>, vector<1x8x8xf32>
    %572 = vector.shape_cast %571 : vector<1x8x8xf32> to vector<8x8xf32>
    %cst_337 = arith.constant dense<0.000000e+00> : vector<8x512xf32>
    %573 = tpu.matmul %572, %570, %cst_337 {dimension_numbers = #tpu.dot_dimension_numbers<[1], [0], [0], [1], [0, 0, 1, 1], [], []>} : vector<8x8xf32>, vector<8x512xf32>, vector<8x512xf32> -> vector<8x512xf32>
    %574 = arith.addf %566, %573 : vector<8x512xf32>
    %c497_i32_338 = arith.constant 497 : i32
    %575 = tpu.dynamic_rotate %526 by %c497_i32_338 dim 1 : vector<8x512xf32>, i32 -> vector<8x512xf32>
    %576 = vector.extract_strided_slice %0 {offsets = [6, 0], sizes = [1, 512], strides = [1, 1]} : vector<9x512xf32> to vector<1x512xf32>
    %577 = vector.broadcast %576 : vector<1x512xf32> to vector<8x512xf32>
    %578 = arith.mulf %575, %577 : vector<8x512xf32>
    %c6_339 = arith.constant 6 : index
    %c0_340 = arith.constant 0 : index
    %c0_341 = arith.constant 0 : index
    %579 = vector.load %arg28[%c6_339, %c0_340, %c0_341] : memref<9x8x8xf32, #tpu.memory_space<vmem>>, vector<1x8x8xf32>
    %580 = vector.shape_cast %579 : vector<1x8x8xf32> to vector<8x8xf32>
    %cst_342 = arith.constant dense<0.000000e+00> : vector<8x512xf32>
    %581 = tpu.matmul %580, %578, %cst_342 {dimension_numbers = #tpu.dot_dimension_numbers<[1], [0], [0], [1], [0, 0, 1, 1], [], []>} : vector<8x8xf32>, vector<8x512xf32>, vector<8x512xf32> -> vector<8x512xf32>
    %582 = arith.addf %574, %581 : vector<8x512xf32>
    %c496_i32_343 = arith.constant 496 : i32
    %583 = tpu.dynamic_rotate %526 by %c496_i32_343 dim 1 : vector<8x512xf32>, i32 -> vector<8x512xf32>
    %584 = vector.extract_strided_slice %0 {offsets = [7, 0], sizes = [1, 512], strides = [1, 1]} : vector<9x512xf32> to vector<1x512xf32>
    %585 = vector.broadcast %584 : vector<1x512xf32> to vector<8x512xf32>
    %586 = arith.mulf %583, %585 : vector<8x512xf32>
    %c7_344 = arith.constant 7 : index
    %c0_345 = arith.constant 0 : index
    %c0_346 = arith.constant 0 : index
    %587 = vector.load %arg28[%c7_344, %c0_345, %c0_346] : memref<9x8x8xf32, #tpu.memory_space<vmem>>, vector<1x8x8xf32>
    %588 = vector.shape_cast %587 : vector<1x8x8xf32> to vector<8x8xf32>
    %cst_347 = arith.constant dense<0.000000e+00> : vector<8x512xf32>
    %589 = tpu.matmul %588, %586, %cst_347 {dimension_numbers = #tpu.dot_dimension_numbers<[1], [0], [0], [1], [0, 0, 1, 1], [], []>} : vector<8x8xf32>, vector<8x512xf32>, vector<8x512xf32> -> vector<8x512xf32>
    %590 = arith.addf %582, %589 : vector<8x512xf32>
    %c495_i32_348 = arith.constant 495 : i32
    %591 = tpu.dynamic_rotate %526 by %c495_i32_348 dim 1 : vector<8x512xf32>, i32 -> vector<8x512xf32>
    %592 = vector.extract_strided_slice %0 {offsets = [8, 0], sizes = [1, 512], strides = [1, 1]} : vector<9x512xf32> to vector<1x512xf32>
    %593 = vector.broadcast %592 : vector<1x512xf32> to vector<8x512xf32>
    %594 = arith.mulf %591, %593 : vector<8x512xf32>
    %c8_349 = arith.constant 8 : index
    %c0_350 = arith.constant 0 : index
    %c0_351 = arith.constant 0 : index
    %595 = vector.load %arg28[%c8_349, %c0_350, %c0_351] : memref<9x8x8xf32, #tpu.memory_space<vmem>>, vector<1x8x8xf32>
    %596 = vector.shape_cast %595 : vector<1x8x8xf32> to vector<8x8xf32>
    %cst_352 = arith.constant dense<0.000000e+00> : vector<8x512xf32>
    %597 = tpu.matmul %596, %594, %cst_352 {dimension_numbers = #tpu.dot_dimension_numbers<[1], [0], [0], [1], [0, 0, 1, 1], [], []>} : vector<8x8xf32>, vector<8x512xf32>, vector<8x512xf32> -> vector<8x512xf32>
    %598 = arith.addf %590, %597 : vector<8x512xf32>
    %c0_353 = arith.constant 0 : index
    %c0_354 = arith.constant 0 : index
    %599 = vector.load %arg30[%c0_353, %c0_354] : memref<8x1xf32, #tpu.memory_space<vmem>>, vector<8x1xf32>
    %c0_355 = arith.constant 0 : index
    %c0_356 = arith.constant 0 : index
    %600 = vector.load %arg31[%c0_355, %c0_356] : memref<8x1xf32, #tpu.memory_space<vmem>>, vector<8x1xf32>
    %cst_357 = arith.constant dense<0.000000e+00> : vector<8xf32>
    %601 = vector.multi_reduction <add>, %598, %cst_357 [1] : vector<8x512xf32> to vector<8xf32>
    %602 = vector.shape_cast %601 : vector<8xf32> to vector<8x1xf32>
    %cst_358 = arith.constant 5.120000e+02 : f32
    %603 = vector.broadcast %cst_358 : f32 to vector<8x1xf32>
    %604 = arith.divf %602, %603 : vector<8x1xf32>
    %605 = vector.broadcast %604 : vector<8x1xf32> to vector<8x512xf32>
    %606 = arith.subf %598, %605 : vector<8x512xf32>
    %607 = arith.mulf %606, %606 : vector<8x512xf32>
    %cst_359 = arith.constant dense<0.000000e+00> : vector<8xf32>
    %608 = vector.multi_reduction <add>, %607, %cst_359 [1] : vector<8x512xf32> to vector<8xf32>
    %609 = vector.shape_cast %608 : vector<8xf32> to vector<8x1xf32>
    %cst_360 = arith.constant 5.120000e+02 : f32
    %610 = vector.broadcast %cst_360 : f32 to vector<8x1xf32>
    %611 = arith.divf %609, %610 : vector<8x1xf32>
    %cst_361 = arith.constant 9.99999974E-6 : f32
    %612 = vector.broadcast %cst_361 : f32 to vector<8x1xf32>
    %613 = arith.addf %611, %612 : vector<8x1xf32>
    %614 = math.rsqrt %613 : vector<8x1xf32>
    %615 = arith.mulf %599, %614 : vector<8x1xf32>
    %616 = vector.broadcast %604 : vector<8x1xf32> to vector<8x512xf32>
    %617 = arith.subf %598, %616 : vector<8x512xf32>
    %618 = vector.broadcast %615 : vector<8x1xf32> to vector<8x512xf32>
    %619 = arith.mulf %617, %618 : vector<8x512xf32>
    %620 = vector.broadcast %600 : vector<8x1xf32> to vector<8x512xf32>
    %621 = arith.addf %619, %620 : vector<8x512xf32>
    %cst_362 = arith.constant 0.000000e+00 : f32
    %622 = vector.broadcast %cst_362 : f32 to vector<8x512xf32>
    %623 = arith.maximumf %621, %622 : vector<8x512xf32>
    %c0_363 = arith.constant 0 : index
    %c0_364 = arith.constant 0 : index
    %624 = vector.load %arg32[%c0_363, %c0_364] : memref<2x8xf32, #tpu.memory_space<vmem>>, vector<2x8xf32>
    %cst_365 = arith.constant dense<0.000000e+00> : vector<2x512xf32>
    %625 = tpu.matmul %624, %623, %cst_365 {dimension_numbers = #tpu.dot_dimension_numbers<[1], [0], [0], [1], [0, 0, 1, 1], [], []>} : vector<2x8xf32>, vector<8x512xf32>, vector<2x512xf32> -> vector<2x512xf32>
    %c0_366 = arith.constant 0 : index
    %c0_367 = arith.constant 0 : index
    %626 = vector.load %arg33[%c0_366, %c0_367] : memref<2x1xf32, #tpu.memory_space<vmem>>, vector<2x1xf32>
    %627 = vector.broadcast %626 : vector<2x1xf32> to vector<2x512xf32>
    %628 = arith.addf %625, %627 : vector<2x512xf32>
    %c0_368 = arith.constant 0 : index
    %c0_369 = arith.constant 0 : index
    %629 = vector.load %arg36[%c0_368, %c0_369] : memref<2x512xf32, #tpu.memory_space<vmem>>, vector<2x512xf32>
    tpu.vector_store %arg36[%c0_368, %c0_369], %628 {strides = array<i32>} : memref<2x512xf32, #tpu.memory_space<vmem>>, vector<2x512xf32>,
    %c0_370 = arith.constant 0 : index
    %c0_371 = arith.constant 0 : index
    %630 = vector.load %arg34[%c0_370, %c0_371] : memref<2x16xf32, #tpu.memory_space<vmem>>, vector<2x16xf32>
    %cst_372 = arith.constant dense<0.000000e+00> : vector<2x128xf32>
    %631 = tpu.matmul %630, %396, %cst_372 {dimension_numbers = #tpu.dot_dimension_numbers<[1], [0], [0], [1], [0, 0, 1, 1], [], []>} : vector<2x16xf32>, vector<16x128xf32>, vector<2x128xf32> -> vector<2x128xf32>
    %c0_373 = arith.constant 0 : index
    %c0_374 = arith.constant 0 : index
    %632 = vector.load %arg35[%c0_373, %c0_374] : memref<2x1xf32, #tpu.memory_space<vmem>>, vector<2x1xf32>
    %633 = vector.broadcast %632 : vector<2x1xf32> to vector<2x128xf32>
    %634 = arith.addf %631, %633 : vector<2x128xf32>
    %c0_375 = arith.constant 0 : index
    %c0_376 = arith.constant 0 : index
    %635 = vector.load %arg37[%c0_375, %c0_376] : memref<2x128xf32, #tpu.memory_space<vmem>>, vector<2x128xf32>
    tpu.vector_store %arg37[%c0_375, %c0_376], %634 {strides = array<i32>} : memref<2x128xf32, #tpu.memory_space<vmem>>, vector<2x128xf32>,
    return
  }
  func.func @transform_0(%arg0: i32) -> (i32, i32) {
    %c0_i32 = arith.constant 0 : i32
    %c0_i32_0 = arith.constant 0 : i32
    %c0_i32_1 = arith.constant 0 : i32
    return %c0_i32, %c0_i32_0 : i32, i32
  }
  func.func @transform_1(%arg0: i32) -> (i32, i32) {
    %c0_i32 = arith.constant 0 : i32
    %c0_i32_0 = arith.constant 0 : i32
    %c0_i32_1 = arith.constant 0 : i32
    return %c0_i32, %c0_i32_0 : i32, i32
  }
  func.func @transform_2(%arg0: i32) -> (i32, i32) {
    %c0_i32 = arith.constant 0 : i32
    %c0_i32_0 = arith.constant 0 : i32
    %c0_i32_1 = arith.constant 0 : i32
    return %c0_i32, %c0_i32_0 : i32, i32
  }
  func.func @transform_3(%arg0: i32) -> (i32, i32) {
    %c0_i32 = arith.constant 0 : i32
    %c0_i32_0 = arith.constant 0 : i32
    %c0_i32_1 = arith.constant 0 : i32
    return %c0_i32, %c0_i32_0 : i32, i32
  }
  func.func @transform_4(%arg0: i32) -> (i32, i32, i32) {
    %c0_i32 = arith.constant 0 : i32
    %c0_i32_0 = arith.constant 0 : i32
    %c0_i32_1 = arith.constant 0 : i32
    %c0_i32_2 = arith.constant 0 : i32
    return %c0_i32, %c0_i32_0, %c0_i32_1 : i32, i32, i32
  }
  func.func @transform_5(%arg0: i32) -> (i32, i32, i32) {
    %c0_i32 = arith.constant 0 : i32
    %c0_i32_0 = arith.constant 0 : i32
    %c0_i32_1 = arith.constant 0 : i32
    %c0_i32_2 = arith.constant 0 : i32
    return %c0_i32, %c0_i32_0, %c0_i32_1 : i32, i32, i32
  }
  func.func @transform_6(%arg0: i32) -> (i32, i32) {
    %c0_i32 = arith.constant 0 : i32
    %c0_i32_0 = arith.constant 0 : i32
    %c0_i32_1 = arith.constant 0 : i32
    return %c0_i32, %c0_i32_0 : i32, i32
  }
  func.func @transform_7(%arg0: i32) -> (i32, i32) {
    %c0_i32 = arith.constant 0 : i32
    %c0_i32_0 = arith.constant 0 : i32
    %c0_i32_1 = arith.constant 0 : i32
    return %c0_i32, %c0_i32_0 : i32, i32
  }
  func.func @transform_8(%arg0: i32) -> (i32, i32) {
    %c0_i32 = arith.constant 0 : i32
    %c0_i32_0 = arith.constant 0 : i32
    %c0_i32_1 = arith.constant 0 : i32
    return %c0_i32, %c0_i32_0 : i32, i32
  }
  func.func @transform_9(%arg0: i32) -> (i32, i32, i32) {
    %c0_i32 = arith.constant 0 : i32
    %c0_i32_0 = arith.constant 0 : i32
    %c0_i32_1 = arith.constant 0 : i32
    %c0_i32_2 = arith.constant 0 : i32
    return %c0_i32, %c0_i32_0, %c0_i32_1 : i32, i32, i32
  }
  func.func @transform_10(%arg0: i32) -> (i32, i32) {
    %c0_i32 = arith.constant 0 : i32
    %c0_i32_0 = arith.constant 0 : i32
    %c0_i32_1 = arith.constant 0 : i32
    return %c0_i32, %c0_i32_0 : i32, i32
  }
  func.func @transform_11(%arg0: i32) -> (i32, i32) {
    %c0_i32 = arith.constant 0 : i32
    %c0_i32_0 = arith.constant 0 : i32
    %c0_i32_1 = arith.constant 0 : i32
    return %c0_i32, %c0_i32_0 : i32, i32
  }
  func.func @transform_12(%arg0: i32) -> (i32, i32) {
    %c0_i32 = arith.constant 0 : i32
    %c0_i32_0 = arith.constant 0 : i32
    %c0_i32_1 = arith.constant 0 : i32
    return %c0_i32, %c0_i32_0 : i32, i32
  }
  func.func @transform_13(%arg0: i32) -> (i32, i32, i32) {
    %c0_i32 = arith.constant 0 : i32
    %c0_i32_0 = arith.constant 0 : i32
    %c0_i32_1 = arith.constant 0 : i32
    %c0_i32_2 = arith.constant 0 : i32
    return %c0_i32, %c0_i32_0, %c0_i32_1 : i32, i32, i32
  }
  func.func @transform_14(%arg0: i32) -> (i32, i32) {
    %c0_i32 = arith.constant 0 : i32
    %c0_i32_0 = arith.constant 0 : i32
    %c0_i32_1 = arith.constant 0 : i32
    return %c0_i32, %c0_i32_0 : i32, i32
  }
  func.func @transform_15(%arg0: i32) -> (i32, i32) {
    %c0_i32 = arith.constant 0 : i32
    %c0_i32_0 = arith.constant 0 : i32
    %c0_i32_1 = arith.constant 0 : i32
    return %c0_i32, %c0_i32_0 : i32, i32
  }
  func.func @transform_16(%arg0: i32) -> (i32, i32) {
    %c0_i32 = arith.constant 0 : i32
    %c0_i32_0 = arith.constant 0 : i32
    %c0_i32_1 = arith.constant 0 : i32
    return %c0_i32, %c0_i32_0 : i32, i32
  }
  func.func @transform_17(%arg0: i32) -> (i32, i32, i32) {
    %c0_i32 = arith.constant 0 : i32
    %c0_i32_0 = arith.constant 0 : i32
    %c0_i32_1 = arith.constant 0 : i32
    %c0_i32_2 = arith.constant 0 : i32
    return %c0_i32, %c0_i32_0, %c0_i32_1 : i32, i32, i32
  }
  func.func @transform_18(%arg0: i32) -> (i32, i32) {
    %c0_i32 = arith.constant 0 : i32
    %c0_i32_0 = arith.constant 0 : i32
    %c0_i32_1 = arith.constant 0 : i32
    return %c0_i32, %c0_i32_0 : i32, i32
  }
  func.func @transform_19(%arg0: i32) -> (i32, i32) {
    %c0_i32 = arith.constant 0 : i32
    %c0_i32_0 = arith.constant 0 : i32
    %c0_i32_1 = arith.constant 0 : i32
    return %c0_i32, %c0_i32_0 : i32, i32
  }
  func.func @transform_20(%arg0: i32) -> (i32, i32) {
    %c0_i32 = arith.constant 0 : i32
    %c0_i32_0 = arith.constant 0 : i32
    %c0_i32_1 = arith.constant 0 : i32
    return %c0_i32, %c0_i32_0 : i32, i32
  }
  func.func @transform_21(%arg0: i32) -> (i32, i32, i32) {
    %c0_i32 = arith.constant 0 : i32
    %c0_i32_0 = arith.constant 0 : i32
    %c0_i32_1 = arith.constant 0 : i32
    %c0_i32_2 = arith.constant 0 : i32
    return %c0_i32, %c0_i32_0, %c0_i32_1 : i32, i32, i32
  }
  func.func @transform_22(%arg0: i32) -> (i32, i32) {
    %c0_i32 = arith.constant 0 : i32
    %c0_i32_0 = arith.constant 0 : i32
    %c0_i32_1 = arith.constant 0 : i32
    return %c0_i32, %c0_i32_0 : i32, i32
  }
  func.func @transform_23(%arg0: i32) -> (i32, i32, i32) {
    %c0_i32 = arith.constant 0 : i32
    %c0_i32_0 = arith.constant 0 : i32
    %c0_i32_1 = arith.constant 0 : i32
    %c0_i32_2 = arith.constant 0 : i32
    return %c0_i32, %c0_i32_0, %c0_i32_1 : i32, i32, i32
  }
  func.func @transform_24(%arg0: i32) -> (i32, i32) {
    %c0_i32 = arith.constant 0 : i32
    %c0_i32_0 = arith.constant 0 : i32
    %c0_i32_1 = arith.constant 0 : i32
    return %c0_i32, %c0_i32_0 : i32, i32
  }
  func.func @transform_25(%arg0: i32) -> (i32, i32) {
    %c0_i32 = arith.constant 0 : i32
    %c0_i32_0 = arith.constant 0 : i32
    %c0_i32_1 = arith.constant 0 : i32
    return %c0_i32, %c0_i32_0 : i32, i32
  }
  func.func @transform_26(%arg0: i32) -> (i32, i32) {
    %c0_i32 = arith.constant 0 : i32
    %c0_i32_0 = arith.constant 0 : i32
    %c0_i32_1 = arith.constant 0 : i32
    return %c0_i32, %c0_i32_0 : i32, i32
  }
  func.func @transform_27(%arg0: i32) -> (i32, i32, i32) {
    %c0_i32 = arith.constant 0 : i32
    %c0_i32_0 = arith.constant 0 : i32
    %c0_i32_1 = arith.constant 0 : i32
    %c0_i32_2 = arith.constant 0 : i32
    return %c0_i32, %c0_i32_0, %c0_i32_1 : i32, i32, i32
  }
  func.func @transform_28(%arg0: i32) -> (i32, i32) {
    %c0_i32 = arith.constant 0 : i32
    %c0_i32_0 = arith.constant 0 : i32
    %c0_i32_1 = arith.constant 0 : i32
    return %c0_i32, %c0_i32_0 : i32, i32
  }
  func.func @transform_29(%arg0: i32) -> (i32, i32) {
    %c0_i32 = arith.constant 0 : i32
    %c0_i32_0 = arith.constant 0 : i32
    %c0_i32_1 = arith.constant 0 : i32
    return %c0_i32, %c0_i32_0 : i32, i32
  }
  func.func @transform_30(%arg0: i32) -> (i32, i32) {
    %c0_i32 = arith.constant 0 : i32
    %c0_i32_0 = arith.constant 0 : i32
    %c0_i32_1 = arith.constant 0 : i32
    return %c0_i32, %c0_i32_0 : i32, i32
  }
  func.func @transform_31(%arg0: i32) -> (i32, i32) {
    %c0_i32 = arith.constant 0 : i32
    %c0_i32_0 = arith.constant 0 : i32
    %c0_i32_1 = arith.constant 0 : i32
    return %c0_i32, %c0_i32_0 : i32, i32
  }
  func.func @transform_32(%arg0: i32) -> (i32, i32) {
    %c0_i32 = arith.constant 0 : i32
    %c0_i32_0 = arith.constant 0 : i32
    %c0_i32_1 = arith.constant 0 : i32
    return %c0_i32, %c0_i32_0 : i32, i32
  }
  func.func @transform_33(%arg0: i32) -> (i32, i32) {
    %c0_i32 = arith.constant 0 : i32
    %c0_i32_0 = arith.constant 0 : i32
    %c0_i32_1 = arith.constant 0 : i32
    return %c0_i32, %c0_i32_0 : i32, i32
  }
  func.func @transform_34(%arg0: i32) -> (i32, i32) {
    %c0_i32 = arith.constant 0 : i32
    %c0_i32_0 = arith.constant 0 : i32
    %c0_i32_1 = arith.constant 0 : i32
    return %c0_i32, %c0_i32_0 : i32, i32
  }
  func.func @transform_35(%arg0: i32) -> (i32, i32) {
    %c0_i32 = arith.constant 0 : i32
    %c0_i32_0 = arith.constant 0 : i32
    %c0_i32_1 = arith.constant 0 : i32
    return %c0_i32, %c0_i32_0 : i32, i32
  }
  func.func @transform_36(%arg0: i32) -> (i32, i32) {
    %c0_i32 = arith.constant 0 : i32
    %c0_i32_0 = arith.constant 0 : i32
    %c0_i32_1 = arith.constant 0 : i32
    return %c0_i32, %c0_i32_0 : i32, i32
  }
}

</mosaic_0001>

<bundles_post_ra>
// kernel: forward.1
= control target key start
LH: loop header
LB: loop body
LE: loop exit
PB: predicated region body
PF: predicated region fallthrough
CT: control target
= control target key end

     0   :  { %s11442_s6 = smov 1   ;;  %s11443_s10 = smov 2   ;;  %s13405_s0 = inlined_call_operand.smem [shape: u32[37], index: -1, kind: input, shape index: {}] }
   0x1   :  { %s11508_s5 = sld [smem:[%s13405_s0]]   ;;  %s11444_s14 = smov 3  }
   0x2   :  { %s11513_s9 = sld [smem:[%s13405_s0 + %s11442_s6]]   ;;  %s11445_s18 = smov 4  }
   0x3   :  { %s11518_s13 = sld [smem:[%s13405_s0 + %s11443_s10]]   ;;  %s11446_s22 = smov 5  }
   0x4   :  { %s11523_s17 = sld [smem:[%s13405_s0 + %s11444_s14]]   ;;  %s11447_s26 = smov 6  }
   0x5   :  { %s11528_s21 = sld [smem:[%s13405_s0 + %s11445_s18]]   ;;  %s11448_s30 = smov 7  }
   0x6   :  { %s11533_s25 = sld [smem:[%s13405_s0 + %s11446_s22]]   ;;  %s11449_s4 = smov 8  }
   0x7   :  { %s11538_s29 = sld [smem:[%s13405_s0 + %s11447_s26]]   ;;  %s11450_s10 = smov 9  }
   0x8   :  { %s11543_s3 = sld [smem:[%s13405_s0 + %s11448_s30]]   ;;  %s11451_s15 = smov 10  }
   0x9   :  { %13452 = sst [smem:[#allocation5_spill]] %s11518_s13  ;;  %s11452_s20 = smov 11  }
   0xa   :  { %s11548_s8 = sld [smem:[%s13405_s0 + %s11449_s4]]   ;;  %s11453_s26 = smov 12  }
   0xb   :  { %s11553_s14 = sld [smem:[%s13405_s0 + %s11450_s10]]   ;;  %s11454_s1 = smov 13  }
   0xc   :  { %s11558_s19 = sld [smem:[%s13405_s0 + %s11451_s15]]   ;;  %s11455_s7 = smov 14  }
   0xd   :  { %s11563_s24 = sld [smem:[%s13405_s0 + %s11452_s20]]   ;;  %s11456_s15 = smov 15  }
   0xe   :  { %s11568_s30 = sld [smem:[%s13405_s0 + %s11453_s26]]   ;;  %s11457_s22 = smov 16  }
   0xf   :  { %s11573_s6 = sld [smem:[%s13405_s0 + %s11454_s1]]   ;;  %s11458_s28 = smov 17  }
  0x10   :  { %s11578_s12 = sld [smem:[%s13405_s0 + %s11455_s7]]   ;;  %s11459_s7 = smov 18  }
  0x11   :  { %s11583_s20 = sld [smem:[%s13405_s0 + %s11456_s15]]   ;;  %s11460_s15 = smov 19  }
  0x12   :  { %s11588_s27 = sld [smem:[%s13405_s0 + %s11457_s22]]   ;;  %s11461_s22 = smov 20  }
  0x13   :  { %s11593_s4 = sld [smem:[%s13405_s0 + %s11458_s28]]   ;;  %s11462_s28 = smov 21  }
  0x14   :  { %s11598_s13 = sld [smem:[%s13405_s0 + %s11459_s7]]   ;;  %s11463_s7 = smov 22  }
  0x17   :  { %13453 = sst [smem:[#allocation6_spill]] %s11583_s20 }
  0x18   :  { %13454 = sst [smem:[#allocation7_spill]] %s11588_s27 }
  0x19   :  { %13455 = sst [smem:[#allocation8_spill]] %s11593_s4 }
  0x1a   :  { %13456 = sst [smem:[#allocation9_spill]] %s11598_s13 }
  0x1b   :  { %s11603_s20 = sld [smem:[%s13405_s0 + %s11460_s15]]   ;;  %s11464_s15 = smov 23  }
  0x1c   :  { %s11608_s27 = sld [smem:[%s13405_s0 + %s11461_s22]]   ;;  %s11465_s22 = smov 24  }
  0x1d   :  { %s11613_s4 = sld [smem:[%s13405_s0 + %s11462_s28]]   ;;  %s11466_s28 = smov 25  }
  0x1e   :  { %s11618_s13 = sld [smem:[%s13405_s0 + %s11463_s7]]   ;;  %s11467_s7 = smov 26  }
  0x21   :  { %13457 = sst [smem:[#allocation10_spill]] %s11603_s20 }
  0x22   :  { %13458 = sst [smem:[#allocation11_spill]] %s11608_s27 }
  0x23   :  { %13459 = sst [smem:[#allocation12_spill]] %s11613_s4 }
  0x24   :  { %13460 = sst [smem:[#allocation13_spill]] %s11618_s13 }
  0x25   :  { %s11623_s20 = sld [smem:[%s13405_s0 + %s11464_s15]]   ;;  %s11468_s15 = smov 27  }
  0x26   :  { %s11628_s27 = sld [smem:[%s13405_s0 + %s11465_s22]]   ;;  %s11469_s22 = smov 28  }
  0x27   :  { %s11633_s4 = sld [smem:[%s13405_s0 + %s11466_s28]]   ;;  %s11470_s28 = smov 29  }
  0x28   :  { %s11638_s13 = sld [smem:[%s13405_s0 + %s11467_s7]]   ;;  %s11471_s7 = smov 30  }
  0x2b   :  { %13461 = sst [smem:[#allocation14_spill]] %s11623_s20 }
  0x2c   :  { %13462 = sst [smem:[#allocation15_spill]] %s11628_s27 }
  0x2d   :  { %13463 = sst [smem:[#allocation16_spill]] %s11633_s4 }
  0x2e   :  { %13464 = sst [smem:[#allocation17_spill]] %s11638_s13 }
  0x2f   :  { %s11643_s20 = sld [smem:[%s13405_s0 + %s11468_s15]]   ;;  %s11472_s15 = smov 31  }
  0x30   :  { %s11648_s27 = sld [smem:[%s13405_s0 + %s11469_s22]]   ;;  %s11473_s22 = smov 32  }
  0x31   :  { %s11653_s4 = sld [smem:[%s13405_s0 + %s11470_s28]]   ;;  %s11474_s28 = smov 33  }
  0x32   :  { %s11658_s13 = sld [smem:[%s13405_s0 + %s11471_s7]]   ;;  %s11475_s7 = smov 34  }
  0x35   :  { %13465 = sst [smem:[#allocation18_spill]] %s11643_s20 }
  0x36   :  { %13466 = sst [smem:[#allocation19_spill]] %s11648_s27 }
  0x37   :  { %13467 = sst [smem:[#allocation20_spill]] %s11653_s4 }
  0x38   :  { %13468 = sst [smem:[#allocation21_spill]] %s11658_s13 }
  0x39   :  { %s11663_s20 = sld [smem:[%s13405_s0 + %s11472_s15]]   ;;  %s11476_s15 = smov 35  }
  0x3a   :  { %s11668_s27 = sld [smem:[%s13405_s0 + %s11473_s22]]   ;;  %s11477_s22 = smov 36  }
  0x3b   :  { %s11673_s4 = sld [smem:[%s13405_s0 + %s11474_s28]]  }
  0x3c   :  { %s11678_s13 = sld [smem:[%s13405_s0 + %s11475_s7]]  }
  0x3f   :  { %13469 = sst [smem:[#allocation22_spill]] %s11663_s20 }
  0x40   :  { %13470 = sst [smem:[#allocation23_spill]] %s11668_s27 }
  0x41   :  { %s11683_s20 = sld [smem:[%s13405_s0 + %s11476_s15]]  }
  0x42   :  { %s11688_s27 = sld [smem:[%s13405_s0 + %s11477_s22]]  }
  0x43   :  { %79 = vsyncpa [#allocation3], 0  ;;  %s11478_s28 = smov [#allocation2]   ;;  %s11418_s2 = scalar_lea.hbm %s11528_s21, 32768 }
  0x44   :  { %s93_s1 = sshll.u32 %s11478_s28, 4  ;;  %p11419_p0 = scmp.ne.s32.totalorder %s11528_s21, %s11418_s2  ;;  %s94_s1 = int_to_ptr.vmem [resolvable:$true] %s93_s1 }
  0x45   :  { %p11422_p1 = scmp.lt.u32.totalorder %s11418_s2, %s11528_s21 }
  0x47   :  { %p11424_p2 = pnand %p11422_p1, %p11419_p0 }
  0x49   :  { %11427 = shalt.err (!%p11424_p2)
}
  0x4a   :  { %s11428_s7 = scalar_lea.vmem %s94_s1, 32768  ;;  %p11433_p4 = scmp.lt.s32.totalorder %s94_s1, %s94_s1 }
  0x4b   :  { %p11429_p3 = scmp.ne.s32.totalorder %s94_s1, %s11428_s7  ;;  %p11434_p5 = scmp.lt.s32.totalorder %s11428_s7, %s11428_s7 }
  0x4d   :  { %p11435_p6 = por %p11434_p5, %p11433_p4 }
  0x4f   :  { %p11436_p7 = pnand %p11435_p6, %p11429_p3 }
  0x51   :  { %11439 = shalt.err (!%p11436_p7)
}
  0x52   :  { %s11479_s0 = smov 512   ;;  %s11480_s10 = smov 32  }
  0x53   :  { %99 = dma.hbm_to_vmem [thread:$0]  %s11528_s21, 32768, %s94_s1, [#allocation3], %s11479_s0, %s11479_s0, %s11480_s10  }
  0x54   :  { %11440 = dma.done.wait [#allocation3], 32768  }
  0x55   :  { %11441 = vsyncadd [#allocation3], 4294934528  ;;  %v13416_v0 = vmov 0.0   ;;  %v11697_v1 = vld [vmem:[%s11508_s5] sm:$0x77]  ;;  %s11482_s11 = smov 17   ;;  %v196_v7 = vlaneseq }
  0x56   :  { %305 = vmatprep.mubr.f32.mxu0 %v13416_v0  ;;  %376 = vmatprep.mubr.f32.mxu1 %v13416_v0  ;;  %v11700_v2 = vld [vmem:[%s11508_s5 + $0x8] sm:$0x77]  ;;  %v11710_v4 = vcombine.high %v11697_v1, %v11697_v1  ;;  %s11483_s5 = smov 16   ;;  %s11484_s21 = smov 15   ;;  %v175_v5 = vld [vmem:[%s11538_s29] sm:$0xff]  ;;  %v11490_v6 = vmov 0  }
  0x57   :  { %188 = vrot.lane.b32.xlu0 %v11697_v1, %s11482_s11  ;;  %v11706_v3 = vcombine.high %v11700_v2, %v11700_v2  ;;  %s11485_s15 = smov 1   ;;  %s11486_s16 = smov 127   ;;  %11385 = vset.pattern.permute.xlu1 %v11490_v6  ;;  %v11775_v8 = vshrl.u32 %v196_v7, 7  ;;  %v11777_v9 = vand.u32 127, %v196_v7  ;;  %v11780_v10 = vld [vmem:[%s11513_s9 + $0x8] sm:$0xff]  ;;  %v11786_v13 = vld [vmem:[%s11513_s9] sm:$0xff] }
  0x58   :  { %s11487_s18 = smov 113   ;;  %s11488_s22 = smov 112   ;;  %11384 = vset.pattern.permute.xlu0 %v11490_v6  ;;  %v11790_v14 = vld [vmem:[%s11513_s9 + $0x18] sm:$0xff]  ;;  %v11793_v15 = vld [vmem:[%s11513_s9 + $0x10] sm:$0xff]  ;;  %vm228_vm1 = vcmask 1042432   ;;  %v223_v29 = vld [vmem:[%s11533_s25] sm:$0xff] }
  0x59   :  { %194 = vrot.lane.b32.xlu1 %v11706_v3, %s11482_s11  ;;  %s11489_s23 = smov 111   ;;  %13471 = vst [vmem:[#allocation24_spill] sm:$0xff] %v11775_v8  ;;  %v11783_v11 = vsub.s32 0, %v11775_v8  ;;  %vm198_vm0 = vcmp.lt.s32.totalorder %v11777_v9, 17  ;;  %v11806_v21 = vsub.s32 1, %v11775_v8  ;;  %vm224_vm2 = vcmask 23552  }
  0x5a   :  { %vm395_vm3 = vcmp.lt.s32.totalorder %v11777_v9, 16  ;;  %v11855_v42 = vsub.s32 2, %v11775_v8  ;;  %v10179_v48 = vld [vmem:[%s11533_s25 + $0x8] sm:$0xff]  ;;  %vm591_vm4 = vcmp.lt.s32.totalorder %v11777_v9, 15  ;;  %v11896_v60 = vsub.s32 3, %v11775_v8  ;;  %v10186_v7 = vld [vmem:[%s11533_s25 + $0x10] sm:$0xff] }
  0x5b   :  { %190 = vrot.lane.b32.xlu0 %v11710_v4, %s11482_s11  ;;  %v11797_v17 = vrot.slane %v11780_v10, %v11783_v11  ;;  %v11801_v18 = vrot.slane %v11786_v13, %v11783_v11  ;;  %v11810_v22 = vrot.slane %v11790_v14, %v11783_v11  ;;  %v11814_v23 = vrot.slane %v11793_v15, %v11783_v11  ;;  %s13488_s29 = sld [smem:[#allocation5_spill]]  ;;  %s13493_s26 = sld [smem:[#allocation10_spill]] }
  0x5c   :  { %v11829_v32 = vrot.slane %v11780_v10, %v11806_v21  ;;  %v11838_v36 = vrot.slane %v11786_v13, %v11806_v21  ;;  %v11848_v40 = vrot.slane %v11793_v15, %v11806_v21  ;;  %v11852_v41 = vrot.slane %v11790_v14, %v11806_v21  ;;  %s13494_s28 = sld [smem:[#allocation11_spill]]  ;;  %s13495_s1 = sld [smem:[#allocation13_spill]] }
  0x5d   :  { %192 = vrot.lane.b32.xlu1 %v11700_v2, %s11482_s11  ;;  %v11873_v52 = vrot.slane %v11780_v10, %v11855_v42  ;;  %v11879_v54 = vrot.slane %v11786_v13, %v11855_v42  ;;  %v11889_v58 = vrot.slane %v11793_v15, %v11855_v42  ;;  %v11893_v59 = vrot.slane %v11790_v14, %v11855_v42  ;;  %s13496_s2 = sld [smem:[#allocation12_spill]]  ;;  %s13499_s7 = sld [smem:[#allocation15_spill]] }
  0x5e   :  { %vm787_vm5 = vcmp.lt.s32.totalorder %v11777_v9, 1  ;;  %vm1142_vm6 = vcmp.lt.s32.totalorder %v11777_v9, 127  ;;  %vm1338_vm7 = vcmp.lt.s32.totalorder %v11777_v9, 113  ;;  %vm1534_vm8 = vcmp.lt.s32.totalorder %v11777_v9, 112  ;;  %s13504_s0 = sld [smem:[#allocation14_spill]]  ;;  %s13526_s10 = sld [smem:[#allocation16_spill]] }
  0x5f   :  { %387 = vrot.lane.b32.xlu0 %v11697_v1, %s11483_s5  ;;  %vm1730_vm9 = vcmp.lt.s32.totalorder %v11777_v9, 111  ;;  %vm1990_vm10 = vcmask 64512   ;;  %vm4661_vm11 = vcmask 130048   ;;  %vm11498_vm12 = vmmov 0  }
  0x61   :  { %389 = vrot.lane.b32.xlu1 %v11710_v4, %s11483_s5 }
  0x63   :  { %393 = vrot.lane.b32.xlu0 %v11706_v3, %s11483_s5 }
  0x65   :  { %391 = vrot.lane.b32.xlu1 %v11700_v2, %s11483_s5 }
  0x67   :  { %583 = vrot.lane.b32.xlu0 %v11697_v1, %s11484_s21 }
  0x69   :  { %585 = vrot.lane.b32.xlu1 %v11710_v4, %s11484_s21 }
  0x6b   :  { %589 = vrot.lane.b32.xlu0 %v11706_v3, %s11484_s21 }
  0x6d   :  { %587 = vrot.lane.b32.xlu1 %v11700_v2, %s11484_s21 }
  0x6f   :  { %779 = vrot.lane.b32.xlu0 %v11697_v1, %s11485_s15 }
  0x71   :  { %781 = vrot.lane.b32.xlu1 %v11710_v4, %s11485_s15 }
  0x73   :  { %785 = vrot.lane.b32.xlu0 %v11706_v3, %s11485_s15 }
  0x75   :  { %783 = vrot.lane.b32.xlu1 %v11700_v2, %s11485_s15 }
  0x77   :  { %1136 = vrot.lane.b32.xlu0 %v11710_v4, %s11486_s16 }
  0x79   :  { %1138 = vrot.lane.b32.xlu1 %v11700_v2, %s11486_s16 }
  0x7b   :  { %1134 = vrot.lane.b32.xlu0 %v11697_v1, %s11486_s16 }
  0x7d   :  { %1140 = vrot.lane.b32.xlu1 %v11706_v3, %s11486_s16 }
  0x7f   :  { %1332 = vrot.lane.b32.xlu0 %v11710_v4, %s11487_s18 }
  0x81   :  { %1334 = vrot.lane.b32.xlu1 %v11700_v2, %s11487_s18 }
  0x83   :  { %1330 = vrot.lane.b32.xlu0 %v11697_v1, %s11487_s18 }
  0x85   :  { %1336 = vrot.lane.b32.xlu1 %v11706_v3, %s11487_s18 }
  0x87   :  { %1528 = vrot.lane.b32.xlu0 %v11710_v4, %s11488_s22 }
  0x89   :  { %1530 = vrot.lane.b32.xlu1 %v11700_v2, %s11488_s22 }
  0x8b   :  { %1526 = vrot.lane.b32.xlu0 %v11697_v1, %s11488_s22 }
  0x8d   :  { %1532 = vrot.lane.b32.xlu1 %v11706_v3, %s11488_s22 }
  0x8f   :  { %1724 = vrot.lane.b32.xlu0 %v11710_v4, %s11489_s23 }
  0x91   :  { %1726 = vrot.lane.b32.xlu1 %v11700_v2, %s11489_s23 }
  0x93   :  { %1722 = vrot.lane.b32.xlu0 %v11697_v1, %s11489_s23 }
  0x95   :  { %1728 = vrot.lane.b32.xlu1 %v11706_v3, %s11489_s23 }
  0x97   :  { %178 = vperm.xlu0 %11384, %v175_v5  }
  0xc9   :  { %v189_v12 = vpop.permute.xlu0 %188 }
  0xcb   :  { %v195_v16 = vpop.permute.xlu1 %194 }
  0xcc   :  { %v202_v19 = vsel %vm198_vm0, %v195_v16, %v189_v12 }
  0xcd   :  { %v191_v20 = vpop.permute.xlu0 %190  ;;  %v219_v28 = vmul.f32 %v11801_v18, %v202_v19 }
  0xce   :  { %v201_v24 = vsel %vm198_vm0, %v189_v12, %v191_v20 }
  0xcf   :  { %v193_v25 = vpop.permute.xlu1 %192  ;;  %v220_v26 = vmul.f32 %v11797_v17, %v201_v24 }
  0xd0   :  { %v200_v27 = vsel %vm198_vm0, %v191_v20, %v193_v25  ;;  %v199_v30 = vsel %vm198_vm0, %v193_v25, %v195_v16  ;;  %v11914_v20 = vrot.slane %v11780_v10, %v11896_v60  ;;  %v11920_v25 = vrot.slane %v11786_v13, %v11896_v60 }
  0xd1   :  { %v388_v31 = vpop.permute.xlu0 %387  ;;  %10173 = vmatprep.subr.msk.mxu0 %vm228_vm1, %v220_v26  ;;  %v222_v33 = vmul.f32 %v11810_v22, %v199_v30  ;;  %v221_v34 = vmul.f32 %v11814_v23, %v200_v27  ;;  %v11934_v30 = vrot.slane %v11790_v14, %v11896_v60 }
  0xd2   :  { %10174 = vmatpush1.msk.msra.mxu0 %vm228_vm1, %v219_v28 }
  0xd3   :  { %v390_v35 = vpop.permute.xlu1 %389  ;;  %10175 = vmatmul.mubr.msk.f32.vlgmr.msra.gmra.mrb[0].mxu0 %vm224_vm2, %v223_v29  ;;  %10176 = vmatprep.subr.msk.mxu1 %vm228_vm1, %v222_v33 }
  0xd4   :  { %v398_v37 = vsel %vm395_vm3, %v388_v31, %v390_v35  ;;  %10177 = vmatpush1.msk.msra.mxu1 %vm228_vm1, %v221_v34  ;;  %501 = vmatprep.mubr.f32.mxu0 %v13416_v0 }
  0xd5   :  { %v417_v38 = vmul.f32 %v11829_v32, %v398_v37  ;;  %v394_v39 = vpop.permute.xlu0 %393  ;;  %10178 = vmatmul.mubr.msk.f32.vlgmr.msra.gmra.mrb[0].mxu1 %vm224_vm2, %v223_v29  ;;  %v11930_v29 = vrot.slane %v11793_v15, %v11896_v60 }
  0xd6   :  { %v399_v43 = vsel %vm395_vm3, %v394_v39, %v388_v31  ;;  %572 = vmatprep.mubr.f32.mxu1 %v13416_v0  ;;  %v11937_v31 = vsub.s32 5, %v11775_v8 }
  0xd7   :  { %v416_v44 = vmul.f32 %v11838_v36, %v399_v43  ;;  %v392_v45 = vpop.permute.xlu1 %391  ;;  %10180 = vmatprep.subr.msk.mxu0 %vm228_vm1, %v417_v38 }
  0xd8   :  { %v396_v46 = vsel %vm395_vm3, %v392_v45, %v394_v39  ;;  %v397_v47 = vsel %vm395_vm3, %v390_v35, %v392_v45  ;;  %v10193_v39 = vld [vmem:[%s11533_s25 + $0x18] sm:$0xff] }
  0xd9   :  { %v418_v49 = vmul.f32 %v11848_v40, %v397_v47  ;;  %v419_v50 = vmul.f32 %v11852_v41, %v396_v46  ;;  %v584_v51 = vpop.permute.xlu0 %583  ;;  %10181 = vmatpush1.msk.msra.mxu0 %vm228_vm1, %v416_v44  ;;  %v11955_v46 = vrot.slane %v11780_v10, %v11937_v31 }
  0xdb   :  { %v586_v53 = vpop.permute.xlu1 %585  ;;  %10182 = vmatmul.mubr.msk.f32.vlgmr.msra.gmra.mrb[0].mxu0 %vm224_vm2, %v10179_v48  ;;  %10183 = vmatprep.subr.msk.mxu1 %vm228_vm1, %v419_v50 }
  0xdc   :  { %v594_v55 = vsel %vm591_vm4, %v584_v51, %v586_v53  ;;  %10184 = vmatpush1.msk.msra.mxu1 %vm228_vm1, %v418_v49  ;;  %697 = vmatprep.mubr.f32.mxu0 %v13416_v0  ;;  %v11966_v49 = vrot.slane %v11786_v13, %v11937_v31 }
  0xdd   :  { %v613_v56 = vmul.f32 %v11873_v52, %v594_v55  ;;  %v590_v57 = vpop.permute.xlu0 %589  ;;  %10185 = vmatmul.mubr.msk.f32.vlgmr.msra.gmra.mrb[0].mxu1 %vm224_vm2, %v10179_v48 }
  0xde   :  { %v595_v61 = vsel %vm591_vm4, %v590_v57, %v584_v51  ;;  %768 = vmatprep.mubr.f32.mxu1 %v13416_v0  ;;  %13472 = vst [vmem:[#allocation25_spill] sm:$0xff] %v11966_v49  ;;  %v11975_v51 = vrot.slane %v11790_v14, %v11937_v31 }
  0xdf   :  { %v612_v62 = vmul.f32 %v11879_v54, %v595_v61  ;;  %v588_v63 = vpop.permute.xlu1 %587  ;;  %10187 = vmatprep.subr.msk.mxu0 %vm228_vm1, %v613_v56 }
  0xe0   :  { %v592_v5 = vsel %vm591_vm4, %v588_v63, %v590_v57  ;;  %v593_v6 = vsel %vm591_vm4, %v586_v53, %v588_v63  ;;  %13473 = vst [vmem:[#allocation26_spill] sm:$0xff] %v11975_v51  ;;  %v11978_v53 = vsub.s32 6, %v11775_v8  ;;  %v10200_v63 = vld [vmem:[%s11533_s25 + $0x20] sm:$0xff] }
  0xe1   :  { %v614_v12 = vmul.f32 %v11889_v58, %v593_v6  ;;  %v615_v16 = vmul.f32 %v11893_v59, %v592_v5  ;;  %v780_v19 = vpop.permute.xlu0 %779  ;;  %10188 = vmatpush1.msk.msra.mxu0 %vm228_vm1, %v612_v62 }
  0xe2   :  { %v12002_v6 = vrot.slane %v11780_v10, %v11978_v53 }
  0xe3   :  { %v782_v24 = vpop.permute.xlu1 %781  ;;  %10189 = vmatmul.mubr.msk.f32.vlgmr.msra.gmra.mrb[0].mxu0 %vm224_vm2, %v10186_v7  ;;  %10190 = vmatprep.subr.msk.mxu1 %vm228_vm1, %v615_v16  ;;  %v12012_v16 = vrot.slane %v11786_v13, %v11978_v53 }
  0xe4   :  { %v790_v26 = vsel %vm787_vm5, %v780_v19, %v782_v24  ;;  %10191 = vmatpush1.msk.msra.mxu1 %vm228_vm1, %v614_v12  ;;  %893 = vmatprep.mubr.f32.mxu0 %v13416_v0  ;;  %13475 = vst [vmem:[#allocation28_spill] sm:$0xff] %v12002_v6 }
  0xe5   :  { %v809_v27 = vmul.f32 %v11914_v20, %v790_v26  ;;  %v786_v28 = vpop.permute.xlu0 %785  ;;  %10192 = vmatmul.mubr.msk.f32.vlgmr.msra.gmra.mrb[0].mxu1 %vm224_vm2, %v10186_v7  ;;  %13476 = vst [vmem:[#allocation29_spill] sm:$0xff] %v12012_v16  ;;  %v12019_v26 = vrot.slane %v11790_v14, %v11978_v53 }
  0xe6   :  { %v791_v33 = vsel %vm787_vm5, %v786_v28, %v780_v19  ;;  %964 = vmatprep.mubr.f32.mxu1 %v13416_v0 }
  0xe7   :  { %v808_v34 = vmul.f32 %v11920_v25, %v791_v33  ;;  %v784_v35 = vpop.permute.xlu1 %783  ;;  %10194 = vmatprep.subr.msk.mxu0 %vm228_vm1, %v809_v27  ;;  %13477 = vst [vmem:[#allocation30_spill] sm:$0xff] %v12019_v26  ;;  %v12022_v27 = vsub.s32 7, %v11775_v8  ;;  %v12029_v33 = vrot.slane %v11793_v15, %v11978_v53  ;;  %v3599_v8 = vld [vmem:[%s11523_s17 + $0x1e0] sm:$0xff] }
  0xe8   :  { %v788_v37 = vsel %vm787_vm5, %v784_v35, %v786_v28  ;;  %v789_v38 = vsel %vm787_vm5, %v782_v24, %v784_v35 }
  0xe9   :  { %v810_v43 = vmul.f32 %v11930_v29, %v789_v38  ;;  %v811_v44 = vmul.f32 %v11934_v30, %v788_v37  ;;  %10195 = vmatpush1.msk.msra.mxu0 %vm228_vm1, %v808_v34  ;;  %v1137_v45 = vpop.permute.xlu0 %1136  ;;  %13478 = vst [vmem:[#allocation31_spill] sm:$0xff] %v12029_v33 }
  0xea   :  { %10201 = vmatprep.subr.msk.mxu0 %vm228_vm1, %v11710_v4 }
  0xeb   :  { %10196 = vmatmul.mubr.msk.f32.vlgmr.msra.gmra.mrb[0].mxu0 %vm224_vm2, %v10193_v39  ;;  %10197 = vmatprep.subr.msk.mxu1 %vm228_vm1, %v811_v44  ;;  %v1139_v47 = vpop.permute.xlu1 %1138 }
  0xec   :  { %10198 = vmatpush1.msk.msra.mxu1 %vm228_vm1, %v810_v43  ;;  %v1144_v48 = vsel %vm1142_vm6, %v1137_v45, %v1139_v47  ;;  %10202 = vmatpush1.msk.msra.mxu0 %vm228_vm1, %v11697_v1  ;;  %v11984_v1 = vrot.slane %v11793_v15, %v11937_v31 }
  0xed   :  { %10199 = vmatmul.mubr.msk.f32.vlgmr.msra.gmra.mrb[0].mxu1 %vm224_vm2, %v10193_v39  ;;  %v1164_v4 = vmul.f32 %v11955_v46, %v1144_v48  ;;  %v1135_v50 = vpop.permute.xlu0 %1134  ;;  %1052 = vmatprep.mubr.f32.mxu0 %v13416_v0  ;;  %v10207_v39 = vld [vmem:[%s11533_s25 + $0x28] sm:$0xff] }
  0xee   :  { %v1145_v55 = vsel %vm1142_vm6, %v1135_v50, %v1137_v45  ;;  %13474 = vst [vmem:[#allocation27_spill] sm:$0xff] %v11984_v1  ;;  %10204 = vmatprep.subr.msk.mxu1 %vm228_vm1, %v11706_v3  ;;  %1123 = vmatprep.mubr.f32.mxu1 %v13416_v0  ;;  %v12043_v45 = vrot.slane %v11780_v10, %v12022_v27 }
  0xef   :  { %v1141_v56 = vpop.permute.xlu1 %1140  ;;  %10205 = vmatpush1.msk.msra.mxu1 %vm228_vm1, %v11700_v2  ;;  %10208 = vmatprep.subr.msk.mxu0 %vm228_vm1, %v1164_v4  ;;  %v1163_v57 = vmul.f32 %v11966_v49, %v1145_v55 }
  0xf0   :  { %v1143_v61 = vsel %vm1142_vm6, %v1139_v47, %v1141_v56  ;;  %v1146_v62 = vsel %vm1142_vm6, %v1141_v56, %v1135_v50  ;;  %13479 = vst [vmem:[#allocation32_spill] sm:$0xff] %v12043_v45  ;;  %v12053_v50 = vrot.slane %v11786_v13, %v12022_v27  ;;  %v12060_v56 = vrot.slane %v11790_v14, %v12022_v27 }
  0xf1   :  { %v1166_v3 = vmul.f32 %v11975_v51, %v1146_v62  ;;  %v1333_v5 = vpop.permute.xlu0 %1332  ;;  %v1165_v2 = vmul.f32 %v11984_v1, %v1143_v61  ;;  %v12067_v13 = vrot.slane %v11793_v15, %v12022_v27 }
  0xf2   :  { %13480 = vst [vmem:[#allocation33_spill] sm:$0xff] %v12053_v50  ;;  %13481 = vst [vmem:[#allocation34_spill] sm:$0xff] %v12060_v56 }
  0xf3   :  { %10203 = vmatmul.mubr.msk.f32.vlgmr.msra.gmra.mrb[0].mxu0 %vm224_vm2, %v10200_v63  ;;  %v1335_v7 = vpop.permute.xlu1 %1334  ;;  %10211 = vmatprep.subr.msk.mxu1 %vm228_vm1, %v1166_v3  ;;  %13482 = vst [vmem:[#allocation35_spill] sm:$0xff] %v12067_v13  ;;  %v10214_v3 = vld [vmem:[%s11533_s25 + $0x30] sm:$0xff] }
  0xf4   :  { %10209 = vmatpush1.msk.msra.mxu0 %vm228_vm1, %v1163_v57  ;;  %v1340_v12 = vsel %vm1338_vm7, %v1333_v5, %v1335_v7  ;;  %1248 = vmatprep.mubr.f32.mxu0 %v13416_v0 }
  0xf5   :  { %10206 = vmatmul.mubr.msk.f32.vlgmr.msra.gmra.mrb[0].mxu1 %vm224_vm2, %v10200_v63  ;;  %v1360_v19 = vmul.f32 %v12002_v6, %v1340_v12  ;;  %v1331_v24 = vpop.permute.xlu0 %1330 }
  0xf6   :  { %10212 = vmatpush1.msk.msra.mxu1 %vm228_vm1, %v1165_v2  ;;  %v1341_v28 = vsel %vm1338_vm7, %v1331_v24, %v1333_v5  ;;  %1319 = vmatprep.mubr.f32.mxu1 %v13416_v0 }
  0xf7   :  { %v1337_v34 = vpop.permute.xlu1 %1336  ;;  %10215 = vmatprep.subr.msk.mxu0 %vm228_vm1, %v1360_v19  ;;  %v1359_v35 = vmul.f32 %v12012_v16, %v1341_v28 }
  0xf8   :  { %v1339_v37 = vsel %vm1338_vm7, %v1335_v7, %v1337_v34  ;;  %v1342_v38 = vsel %vm1338_vm7, %v1337_v34, %v1331_v24  ;;  %v12081_v7 = vld [vmem:[%s11513_s9 + $0x28] ss:$0 sm:$0xff]  ;;  %v12092_v34 = vld [vmem:[%s11513_s9 + $0x20] ss:$0 sm:$0xff] }
  0xf9   :  { %v1362_v43 = vmul.f32 %v12019_v26, %v1342_v38  ;;  %v1529_v44 = vpop.permute.xlu0 %1528  ;;  %v1361_v47 = vmul.f32 %v12029_v33, %v1339_v37  ;;  %v12098_v37 = vld [vmem:[%s11513_s9 + $0x38] ss:$0 sm:$0xff] }
  0xfb   :  { %10210 = vmatmul.mubr.msk.f32.vlgmr.msra.gmra.mrb[0].mxu0 %vm224_vm2, %v10207_v39  ;;  %v1531_v48 = vpop.permute.xlu1 %1530  ;;  %10218 = vmatprep.subr.msk.mxu1 %vm228_vm1, %v1362_v43 }
  0xfc   :  { %10216 = vmatpush1.msk.msra.mxu0 %vm228_vm1, %v1359_v35  ;;  %v1536_v4 = vsel %vm1534_vm8, %v1529_v44, %v1531_v48  ;;  %1444 = vmatprep.mubr.f32.mxu0 %v13416_v0 }
  0xfd   :  { %10213 = vmatmul.mubr.msk.f32.vlgmr.msra.gmra.mrb[0].mxu1 %vm224_vm2, %v10207_v39  ;;  %v1556_v10 = vmul.f32 %v12043_v45, %v1536_v4  ;;  %v1527_v55 = vpop.permute.xlu0 %1526  ;;  %v12102_v39 = vld [vmem:[%s11513_s9 + $0x30] ss:$0 sm:$0xff] }
  0xfe   :  { %10219 = vmatpush1.msk.msra.mxu1 %vm228_vm1, %v1361_v47  ;;  %v1537_v57 = vsel %vm1534_vm8, %v1527_v55, %v1529_v44  ;;  %1515 = vmatprep.mubr.f32.mxu1 %v13416_v0 }
  0xff   :  { %v1533_v61 = vpop.permute.xlu1 %1532  ;;  %10222 = vmatprep.subr.msk.mxu0 %vm228_vm1, %v1556_v10  ;;  %v1555_v62 = vmul.f32 %v12053_v50, %v1537_v57 }
 0x100   :  { %v1535_v14 = vsel %vm1534_vm8, %v1531_v48, %v1533_v61  ;;  %v1538_v63 = vsel %vm1534_vm8, %v1533_v61, %v1527_v55  ;;  %v10221_v48 = vld [vmem:[%s11533_s25 + $0x38] sm:$0xff]  ;;  %v10232_v55 = vld [vmem:[%s11533_s25 + $0x40] sm:$0xff]  ;;  %s11492_s25 = smov 9  }
 0x101   :  { %v1558_v15 = vmul.f32 %v12060_v56, %v1538_v63  ;;  %v1725_v5 = vpop.permute.xlu0 %1724  ;;  %v1557_v2 = vmul.f32 %v12067_v13, %v1535_v14 }
 0x103   :  { %10217 = vmatmul.mubr.msk.f32.vlgmr.msra.gmra.mrb[0].mxu0 %vm224_vm2, %v10214_v3  ;;  %v1727_v12 = vpop.permute.xlu1 %1726  ;;  %10225 = vmatprep.subr.msk.mxu1 %vm228_vm1, %v1558_v15 }
 0x104   :  { %10223 = vmatpush1.msk.msra.mxu0 %vm228_vm1, %v1555_v62  ;;  %v1732_v19 = vsel %vm1730_vm9, %v1725_v5, %v1727_v12  ;;  %1640 = vmatprep.mubr.f32.mxu0 %v13416_v0 }
 0x105   :  { %10220 = vmatmul.mubr.msk.f32.vlgmr.msra.gmra.mrb[0].mxu1 %vm224_vm2, %v10214_v3  ;;  %v1752_v24 = vmul.f32 %v12081_v7, %v1732_v19  ;;  %v1723_v28 = vpop.permute.xlu0 %1722 }
 0x106   :  { %10226 = vmatpush1.msk.msra.mxu1 %vm228_vm1, %v1557_v2  ;;  %v1733_v35 = vsel %vm1730_vm9, %v1723_v28, %v1725_v5  ;;  %1711 = vmatprep.mubr.f32.mxu1 %v13416_v0 }
 0x107   :  { %v1729_v38 = vpop.permute.xlu1 %1728  ;;  %10233 = vmatprep.subr.msk.mxu0 %vm228_vm1, %v1752_v24  ;;  %v1751_v43 = vmul.f32 %v12092_v34, %v1733_v35 }
 0x108   :  { %v1731_v44 = vsel %vm1730_vm9, %v1727_v12, %v1729_v38  ;;  %v1734_v47 = vsel %vm1730_vm9, %v1729_v38, %v1723_v28 }
 0x109   :  { %v1754_v4 = vmul.f32 %v12098_v37, %v1734_v47  ;;  %v1753_v10 = vmul.f32 %v12102_v39, %v1731_v44 }
 0x10b   :  { %10224 = vmatmul.mubr.msk.f32.vlgmr.msra.gmra.mrb[0].mxu0 %vm224_vm2, %v10221_v48  ;;  %10236 = vmatprep.subr.msk.mxu1 %vm228_vm1, %v1754_v4 }
 0x10c   :  { %10234 = vmatpush1.msk.msra.mxu0 %vm228_vm1, %v1751_v43  ;;  %1836 = vmatprep.mubr.f32.mxu0 %v13416_v0 }
 0x10d   :  { %10227 = vmatmul.mubr.msk.f32.vlgmr.msra.gmra.mrb[0].mxu1 %vm224_vm2, %v10221_v48 }
 0x10e   :  { %10237 = vmatpush1.msk.msra.mxu1 %vm228_vm1, %v1753_v10  ;;  %1907 = vmatprep.mubr.f32.mxu1 %v13416_v0 }
 0x113   :  { %10235 = vmatmul.mubr.msk.f32.vlgmr.msra.gmra.mrb[0].mxu0 %vm224_vm2, %v10232_v55 }
 0x114   :  { %2058 = vmatprep.mubr.f32.mxu0 %v13416_v0 }
 0x115   :  { %10238 = vmatmul.mubr.msk.f32.vlgmr.msra.gmra.mrb[0].mxu1 %vm224_vm2, %v10232_v55 }
 0x116   :  { %2129 = vmatprep.mubr.f32.mxu1 %v13416_v0  ;;  %v179_v57 = vpop.permute.xlu0 %178 }
 0x1e6   :  { %v1838_v61 = vpop.f32.mrb[0].mxu0 }
 0x1e7   :  { %v11130_v62 = vadd.f32 %v1838_v61, %v179_v57  ;;  %v1840_v14 = vpop.f32.mrb[1].mxu0 }
 0x1e8   :  { %v11131_v63 = vadd.f32 %v1840_v14, %v179_v57  ;;  %v1909_v3 = vpop.f32.mrb[0].mxu1 }
 0x1e9   :  { %v11132_v15 = vadd.f32 %v1909_v3, %v179_v57  ;;  %v1911_v5 = vpop.f32.mrb[1].mxu1 }
 0x1ea   :  { %v1920_v2 = vadd.f32 %v11131_v63, %v11130_v62  ;;  %v11133_v19 = vadd.f32 %v1911_v5, %v179_v57 }
 0x1ec   :  { %v1921_v12 = vadd.f32 %v11132_v15, %v1920_v2  ;;  %v1919_v2 = vld [vmem:[%s11548_s8] sm:$0xff]  ;;  %s11494_s8 = smov 121  }
 0x1ee   :  { %v1922_v24 = vadd.f32 %v11133_v19, %v1921_v12 }
 0x1f0   :  { %1923 = vadd.xlane.f32.xlu1 %v1922_v24  ;;  %v1918_v24 = vld [vmem:[%s11543_s3] sm:$0xff]  ;;  %s11493_s3 = smov 7  }
 0x27d   :  { %v1924_v28 = vpop.xlane.xlu1 %1923 }
 0x27e   :  { %v1926_v35 = vmul.f32 0.001953125, %v1924_v28 }
 0x280   :  { %v1927_v38 = vsub.f32 %v11130_v62, %v1926_v35  ;;  %v1928_v43 = vsub.f32 %v11131_v63, %v1926_v35  ;;  %v1929_v44 = vsub.f32 %v11132_v15, %v1926_v35  ;;  %v1930_v47 = vsub.f32 %v11133_v19, %v1926_v35 }
 0x282   :  { %v1931_v48 = vmul.f32 %v1927_v38, %v1927_v38  ;;  %v1932_v4 = vmul.f32 %v1928_v43, %v1928_v43  ;;  %v1933_v10 = vmul.f32 %v1929_v44, %v1929_v44  ;;  %v1934_v61 = vmul.f32 %v1930_v47, %v1930_v47 }
 0x284   :  { %v1935_v55 = vadd.f32 %v1932_v4, %v1931_v48 }
 0x286   :  { %v1936_v14 = vadd.f32 %v1935_v55, %v1933_v10 }
 0x288   :  { %v1937_v3 = vadd.f32 %v1936_v14, %v1934_v61 }
 0x28a   :  { %1938 = vadd.xlane.f32.xlu0 %v1937_v3 }
 0x2a0   :  { %1955 = vperm.xlu0 %11384, %v1919_v2  }
 0x317   :  { %v1939_v57 = vpop.xlane.xlu0 %1938 }
 0x318   :  { %v1940_v5 = vmul.f32 0.001953125, %v1939_v57 }
 0x31a   :  { %v1941_v12 = vadd.f32 1e-05, %v1940_v5 }
 0x31c   :  { %11398 = vrsqrt.f32 %v1941_v12 }
 0x31f   :  { %v1956_v0 = vpop.permute.xlu0 %1955 }
 0x326   :  { %v11399_v62 = vpop.eup %11398 }
 0x327   :  { %v1943_v63 = vmul.f32 %v11399_v62, %v1918_v24 }
 0x329   :  { %1946 = vperm.xlu1 %11385, %v1943_v63   ;;  %v1989_v63 = vld [vmem:[%s11553_s14] sm:$0xff] }
 0x3a8   :  { %v1947_v15 = vpop.permute.xlu1 %1946 }
 0x3a9   :  { %v1949_v19 = vmul.f32 %v1947_v15, %v1927_v38  ;;  %v1950_v28 = vmul.f32 %v1947_v15, %v1928_v43  ;;  %v1952_v35 = vmul.f32 %v1947_v15, %v1930_v47  ;;  %v1951_v10 = vmul.f32 %v1947_v15, %v1929_v44 }
 0x3ab   :  { %v1958_v48 = vadd.f32 %v1956_v0, %v1949_v19  ;;  %v1961_v4 = vadd.f32 %v1956_v0, %v1952_v35  ;;  %v1959_v55 = vadd.f32 %v1956_v0, %v1950_v28  ;;  %v1960_v3 = vadd.f32 %v1956_v0, %v1951_v10  ;;  %v1966_v0 = vld [vmem:[%s11558_s19] sm:$0xff]  ;;  %s11496_s19 = smov 120  }
 0x3ac   :  { %v13483_v10 = vmov 0.0  }
 0x3ad   :  { %v12127_v61 = vmax.f32 %v1958_v48, 0.0  ;;  %v12129_v14 = vmax.f32 %v1961_v4, 0.0  ;;  %v12135_v2 = vmax.f32 %v1959_v55, 0.0  ;;  %v12141_v38 = vmax.f32 %v1960_v3, 0.0 }
 0x3af   :  { %1979 = vrot.lane.b32.xlu0 %v12129_v14, %s11482_s11  ;;  %1973 = vrot.lane.b32.xlu1 %v12127_v61, %s11482_s11 }
 0x3b3   :  { %2140 = vrot.lane.b32.xlu0 %v12127_v61, %s11483_s5  ;;  %1975 = vrot.lane.b32.xlu1 %v12135_v2, %s11482_s11 }
 0x3b7   :  { %2146 = vrot.lane.b32.xlu0 %v12129_v14, %s11483_s5  ;;  %1977 = vrot.lane.b32.xlu1 %v12141_v38, %s11482_s11 }
 0x3bb   :  { %2307 = vrot.lane.b32.xlu0 %v12127_v61, %s11484_s21  ;;  %2142 = vrot.lane.b32.xlu1 %v12135_v2, %s11483_s5 }
 0x3bf   :  { %2313 = vrot.lane.b32.xlu0 %v12129_v14, %s11484_s21  ;;  %2144 = vrot.lane.b32.xlu1 %v12141_v38, %s11483_s5 }
 0x3c3   :  { %2474 = vrot.lane.b32.xlu0 %v12127_v61, %s11485_s15  ;;  %2309 = vrot.lane.b32.xlu1 %v12135_v2, %s11484_s21 }
 0x3c7   :  { %2480 = vrot.lane.b32.xlu0 %v12129_v14, %s11485_s15  ;;  %2311 = vrot.lane.b32.xlu1 %v12141_v38, %s11484_s21 }
 0x3cb   :  { %2794 = vrot.lane.b32.xlu0 %v12135_v2, %s11486_s16  ;;  %2476 = vrot.lane.b32.xlu1 %v12135_v2, %s11485_s15 }
 0x3cf   :  { %2792 = vrot.lane.b32.xlu0 %v12127_v61, %s11486_s16  ;;  %2478 = vrot.lane.b32.xlu1 %v12141_v38, %s11485_s15 }
 0x3d3   :  { %2961 = vrot.lane.b32.xlu0 %v12135_v2, %s11487_s18  ;;  %2796 = vrot.lane.b32.xlu1 %v12141_v38, %s11486_s16 }
 0x3d7   :  { %2959 = vrot.lane.b32.xlu0 %v12127_v61, %s11487_s18  ;;  %2798 = vrot.lane.b32.xlu1 %v12129_v14, %s11486_s16 }
 0x3db   :  { %3128 = vrot.lane.b32.xlu0 %v12135_v2, %s11488_s22  ;;  %2963 = vrot.lane.b32.xlu1 %v12141_v38, %s11487_s18 }
 0x3df   :  { %3126 = vrot.lane.b32.xlu0 %v12127_v61, %s11488_s22  ;;  %2965 = vrot.lane.b32.xlu1 %v12129_v14, %s11487_s18 }
 0x3e3   :  { %3295 = vrot.lane.b32.xlu0 %v12135_v2, %s11489_s23  ;;  %3130 = vrot.lane.b32.xlu1 %v12141_v38, %s11488_s22 }
 0x3e7   :  { %3293 = vrot.lane.b32.xlu0 %v12127_v61, %s11489_s23  ;;  %3132 = vrot.lane.b32.xlu1 %v12129_v14, %s11488_s22 }
 0x3eb   :  { %1969 = vperm.xlu0 %11384, %v1966_v0   ;;  %3297 = vrot.lane.b32.xlu1 %v12141_v38, %s11489_s23 }
 0x3ef   :  { %3299 = vrot.lane.b32.xlu1 %v12129_v14, %s11489_s23 }
 0x421   :  { %v1980_v43 = vpop.permute.xlu0 %1979  ;;  %v1974_v44 = vpop.permute.xlu1 %1973 }
 0x422   :  { %v1984_v47 = vsel %vm198_vm0, %v1980_v43, %v1974_v44 }
 0x423   :  { %v1985_v62 = vmul.f32 %v1984_v47, %v11801_v18 }
 0x425   :  { %v2141_v57 = vpop.permute.xlu0 %2140  ;;  %v1976_v5 = vpop.permute.xlu1 %1975 }
 0x426   :  { %v1983_v12 = vsel %vm198_vm0, %v1974_v44, %v1976_v5 }
 0x427   :  { %v1986_v24 = vmul.f32 %v1983_v12, %v11797_v17 }
 0x429   :  { %v2147_v15 = vpop.permute.xlu0 %2146  ;;  %1994 = vmatprep.subr.mxu0 %v1986_v24  ;;  %v1978_v19 = vpop.permute.xlu1 %1977 }
 0x42a   :  { %v1981_v28 = vsel %vm198_vm0, %v1978_v19, %v1980_v43  ;;  %v1982_v35 = vsel %vm198_vm0, %v1976_v5, %v1978_v19  ;;  %1995 = vmatpush1.msra.mxu0 %v1985_v62  ;;  %v2151_v55 = vsel %vm395_vm3, %v2147_v15, %v2141_v57  ;;  %v10241_v5 = vld [vmem:[%s11553_s14 + $0x8] sm:$0xff] }
 0x42b   :  { %v1987_v48 = vmul.f32 %v1982_v35, %v11814_v23  ;;  %10239 = vmatmul.mubr.msk.f32.vlgmr.msra.gmra.mrb[2].mxu0 %vm1990_vm10, %v1989_v63  ;;  %v1988_v4 = vmul.f32 %v1981_v28, %v11810_v22  ;;  %v2152_v47 = vmul.f32 %v2151_v55, %v11838_v36 }
 0x42c   :  { %2225 = vmatprep.mubr.f32.mxu0 %v13483_v10 }
 0x42d   :  { %v2308_v3 = vpop.permute.xlu0 %2307  ;;  %2065 = vmatprep.subr.mxu1 %v1988_v4  ;;  %v2143_v0 = vpop.permute.xlu1 %2142 }
 0x42e   :  { %v2150_v43 = vsel %vm395_vm3, %v2141_v57, %v2143_v0  ;;  %2066 = vmatpush1.msra.mxu1 %v1987_v48 }
 0x42f   :  { %10240 = vmatmul.mubr.msk.f32.vlgmr.msra.gmra.mrb[2].mxu1 %vm1990_vm10, %v1989_v63  ;;  %v2153_v44 = vmul.f32 %v2150_v43, %v11829_v32 }
 0x430   :  { %2296 = vmatprep.mubr.f32.mxu1 %v13483_v10 }
 0x431   :  { %v2314_v12 = vpop.permute.xlu0 %2313  ;;  %2161 = vmatprep.subr.mxu0 %v2153_v44  ;;  %v2145_v24 = vpop.permute.xlu1 %2144 }
 0x432   :  { %v2148_v62 = vsel %vm395_vm3, %v2145_v24, %v2147_v15  ;;  %v2149_v57 = vsel %vm395_vm3, %v2143_v0, %v2145_v24  ;;  %2162 = vmatpush1.msra.mxu0 %v2152_v47  ;;  %v2318_v28 = vsel %vm591_vm4, %v2314_v12, %v2308_v3  ;;  %v10244_v0 = vld [vmem:[%s11553_s14 + $0x10] sm:$0xff] }
 0x433   :  { %v2154_v63 = vmul.f32 %v2149_v57, %v11848_v40  ;;  %10242 = vmatmul.mubr.msk.f32.vlgmr.msra.gmra.mrb[2].mxu0 %vm1990_vm10, %v10241_v5  ;;  %v2155_v19 = vmul.f32 %v2148_v62, %v11852_v41  ;;  %v2319_v55 = vmul.f32 %v2318_v28, %v11879_v54 }
 0x434   :  { %2392 = vmatprep.mubr.f32.mxu0 %v13483_v10 }
 0x435   :  { %v2475_v35 = vpop.permute.xlu0 %2474  ;;  %2232 = vmatprep.subr.mxu1 %v2155_v19  ;;  %v2310_v48 = vpop.permute.xlu1 %2309 }
 0x436   :  { %v2317_v15 = vsel %vm591_vm4, %v2308_v3, %v2310_v48  ;;  %2233 = vmatpush1.msra.mxu1 %v2154_v63 }
 0x437   :  { %10243 = vmatmul.mubr.msk.f32.vlgmr.msra.gmra.mrb[2].mxu1 %vm1990_vm10, %v10241_v5  ;;  %v2320_v4 = vmul.f32 %v2317_v15, %v11873_v52 }
 0x438   :  { %2463 = vmatprep.mubr.f32.mxu1 %v13483_v10 }
 0x439   :  { %v2481_v43 = vpop.permute.xlu0 %2480  ;;  %2328 = vmatprep.subr.mxu0 %v2320_v4  ;;  %v2312_v44 = vpop.permute.xlu1 %2311 }
 0x43a   :  { %v2315_v47 = vsel %vm591_vm4, %v2312_v44, %v2314_v12  ;;  %v2316_v3 = vsel %vm591_vm4, %v2310_v48, %v2312_v44  ;;  %2329 = vmatpush1.msra.mxu0 %v2319_v55  ;;  %v2485_v62 = vsel %vm787_vm5, %v2481_v43, %v2475_v35  ;;  %v10247_v48 = vld [vmem:[%s11553_s14 + $0x18] sm:$0xff] }
 0x43b   :  { %v2321_v5 = vmul.f32 %v2316_v3, %v11889_v58  ;;  %10245 = vmatmul.mubr.msk.f32.vlgmr.msra.gmra.mrb[2].mxu0 %vm1990_vm10, %v10244_v0  ;;  %v2322_v24 = vmul.f32 %v2315_v47, %v11893_v59  ;;  %v2486_v28 = vmul.f32 %v2485_v62, %v11920_v25 }
 0x43c   :  { %2559 = vmatprep.mubr.f32.mxu0 %v13483_v10 }
 0x43d   :  { %v2795_v57 = vpop.permute.xlu0 %2794  ;;  %2399 = vmatprep.subr.mxu1 %v2322_v24  ;;  %v2477_v63 = vpop.permute.xlu1 %2476 }
 0x43e   :  { %v2484_v12 = vsel %vm787_vm5, %v2475_v35, %v2477_v63  ;;  %2400 = vmatpush1.msra.mxu1 %v2321_v5 }
 0x43f   :  { %10246 = vmatmul.mubr.msk.f32.vlgmr.msra.gmra.mrb[2].mxu1 %vm1990_vm10, %v10244_v0  ;;  %v2487_v19 = vmul.f32 %v2484_v12, %v11914_v20 }
 0x440   :  { %2630 = vmatprep.mubr.f32.mxu1 %v13483_v10 }
 0x441   :  { %v2793_v15 = vpop.permute.xlu0 %2792  ;;  %2495 = vmatprep.subr.mxu0 %v2487_v19  ;;  %v2479_v4 = vpop.permute.xlu1 %2478 }
 0x442   :  { %v2482_v55 = vsel %vm787_vm5, %v2479_v4, %v2481_v43  ;;  %v2483_v44 = vsel %vm787_vm5, %v2477_v63, %v2479_v4  ;;  %2496 = vmatpush1.msra.mxu0 %v2486_v28  ;;  %v2802_v5 = vsel %vm1142_vm6, %v2793_v15, %v2795_v57 }
 0x443   :  { %v2488_v35 = vmul.f32 %v2483_v44, %v11930_v29  ;;  %10248 = vmatmul.mubr.msk.f32.vlgmr.msra.gmra.mrb[2].mxu0 %vm1990_vm10, %v10247_v48  ;;  %2646 = vmatprep.subr.mxu0 %v12135_v2  ;;  %v2489_v0 = vmul.f32 %v2482_v55, %v11934_v30  ;;  %v2804_v63 = vmul.f32 %v2802_v5, %v11966_v49  ;;  %v10253_v55 = vld [vmem:[%s11553_s14 + $0x28] sm:$0xff] }
 0x444   :  { %2647 = vmatpush1.msra.mxu0 %v12127_v61  ;;  %2710 = vmatprep.mubr.f32.mxu0 %v13483_v10  ;;  %v10250_v61 = vld [vmem:[%s11553_s14 + $0x20] sm:$0xff] }
 0x445   :  { %v2962_v47 = vpop.permute.xlu0 %2961  ;;  %2566 = vmatprep.subr.mxu1 %v2489_v0  ;;  %v2797_v43 = vpop.permute.xlu1 %2796 }
 0x446   :  { %v2801_v3 = vsel %vm1142_vm6, %v2795_v57, %v2797_v43  ;;  %2567 = vmatpush1.msra.mxu1 %v2488_v35 }
 0x447   :  { %10249 = vmatmul.mubr.msk.f32.vlgmr.msra.gmra.mrb[2].mxu1 %vm1990_vm10, %v10247_v48  ;;  %2717 = vmatprep.subr.mxu1 %v12129_v14  ;;  %v2805_v2 = vmul.f32 %v2801_v3, %v11955_v46 }
 0x448   :  { %2718 = vmatpush1.msra.mxu1 %v12141_v38  ;;  %2781 = vmatprep.mubr.f32.mxu1 %v13483_v10 }
 0x449   :  { %v2960_v24 = vpop.permute.xlu0 %2959  ;;  %2813 = vmatprep.subr.mxu0 %v2805_v2  ;;  %v2799_v62 = vpop.permute.xlu1 %2798 }
 0x44a   :  { %v2803_v57 = vsel %vm1142_vm6, %v2799_v62, %v2793_v15  ;;  %v2800_v12 = vsel %vm1142_vm6, %v2797_v43, %v2799_v62  ;;  %v2969_v15 = vsel %vm1338_vm7, %v2960_v24, %v2962_v47 }
 0x44b   :  { %10251 = vmatmul.mubr.msk.f32.vlgmr.msra.gmra.mrb[2].mxu0 %vm1990_vm10, %v10250_v61  ;;  %v2807_v14 = vmul.f32 %v2803_v57, %v11975_v51  ;;  %v2806_v28 = vmul.f32 %v2800_v12, %v11984_v1  ;;  %v2971_v0 = vmul.f32 %v2969_v15, %v12012_v16  ;;  %v10256_v57 = vld [vmem:[%s11553_s14 + $0x30] sm:$0xff] }
 0x44c   :  { %2814 = vmatpush1.msra.mxu0 %v2804_v63  ;;  %2877 = vmatprep.mubr.f32.mxu0 %v13483_v10 }
 0x44d   :  { %v3129_v38 = vpop.permute.xlu0 %3128  ;;  %2884 = vmatprep.subr.mxu1 %v2807_v14  ;;  %v2964_v19 = vpop.permute.xlu1 %2963 }
 0x44e   :  { %v2968_v48 = vsel %vm1338_vm7, %v2962_v47, %v2964_v19 }
 0x44f   :  { %10252 = vmatmul.mubr.msk.f32.vlgmr.msra.gmra.mrb[2].mxu1 %vm1990_vm10, %v10250_v61  ;;  %v2972_v4 = vmul.f32 %v2968_v48, %v12002_v6 }
 0x450   :  { %2885 = vmatpush1.msra.mxu1 %v2806_v28  ;;  %2948 = vmatprep.mubr.f32.mxu1 %v13483_v10 }
 0x451   :  { %v3127_v44 = vpop.permute.xlu0 %3126  ;;  %2980 = vmatprep.subr.mxu0 %v2972_v4  ;;  %v2966_v35 = vpop.permute.xlu1 %2965 }
 0x452   :  { %v2970_v43 = vsel %vm1338_vm7, %v2966_v35, %v2960_v24  ;;  %v2967_v47 = vsel %vm1338_vm7, %v2964_v19, %v2966_v35  ;;  %v3136_v24 = vsel %vm1534_vm8, %v3127_v44, %v3129_v38 }
 0x453   :  { %10254 = vmatmul.mubr.msk.f32.vlgmr.msra.gmra.mrb[2].mxu0 %vm1990_vm10, %v10253_v55  ;;  %v2974_v3 = vmul.f32 %v2970_v43, %v12019_v26  ;;  %v2973_v2 = vmul.f32 %v2967_v47, %v12029_v33  ;;  %v3138_v14 = vmul.f32 %v3136_v24, %v12053_v50 }
 0x454   :  { %2981 = vmatpush1.msra.mxu0 %v2971_v0  ;;  %3044 = vmatprep.mubr.f32.mxu0 %v13483_v10  ;;  %v10259_v0 = vld [vmem:[%s11553_s14 + $0x38] sm:$0xff] }
 0x455   :  { %3051 = vmatprep.subr.mxu1 %v2974_v3  ;;  %v3131_v5 = vpop.permute.xlu1 %3130  ;;  %v3296_v61 = vpop.permute.xlu0 %3295 }
 0x456   :  { %v3135_v62 = vsel %vm1534_vm8, %v3129_v38, %v3131_v5 }
 0x457   :  { %10255 = vmatmul.mubr.msk.f32.vlgmr.msra.gmra.mrb[2].mxu1 %vm1990_vm10, %v10253_v55  ;;  %v3139_v63 = vmul.f32 %v3135_v62, %v12043_v45 }
 0x458   :  { %3052 = vmatpush1.msra.mxu1 %v2973_v2  ;;  %3115 = vmatprep.mubr.f32.mxu1 %v13483_v10 }
 0x459   :  { %3147 = vmatprep.subr.mxu0 %v3139_v63  ;;  %v3133_v12 = vpop.permute.xlu1 %3132  ;;  %v3294_v48 = vpop.permute.xlu0 %3293 }
 0x45a   :  { %v3137_v19 = vsel %vm1534_vm8, %v3133_v12, %v3127_v44  ;;  %v3134_v28 = vsel %vm1534_vm8, %v3131_v5, %v3133_v12  ;;  %v3303_v44 = vsel %vm1730_vm9, %v3294_v48, %v3296_v61 }
 0x45b   :  { %10257 = vmatmul.mubr.msk.f32.vlgmr.msra.gmra.mrb[2].mxu0 %vm1990_vm10, %v10256_v57  ;;  %v3141_v38 = vmul.f32 %v3137_v19, %v12060_v56  ;;  %v3140_v4 = vmul.f32 %v3134_v28, %v12067_v13  ;;  %v3305_v47 = vmul.f32 %v12092_v34, %v3303_v44  ;;  %v10262_v34 = vld [vmem:[%s11553_s14 + $0x40] sm:$0xff]  ;;  %v3600_v56 = vld [vmem:[%s11523_s17 + $0x1e8] sm:$0xff]  ;;  %s11495_s14 = smov 119  }
 0x45c   :  { %3148 = vmatpush1.msra.mxu0 %v3138_v14  ;;  %3211 = vmatprep.mubr.f32.mxu0 %v13483_v10 }
 0x45d   :  { %3218 = vmatprep.subr.mxu1 %v3141_v38  ;;  %v3298_v15 = vpop.permute.xlu1 %3297 }
 0x45e   :  { %v3302_v55 = vsel %vm1730_vm9, %v3296_v61, %v3298_v15 }
 0x45f   :  { %10258 = vmatmul.mubr.msk.f32.vlgmr.msra.gmra.mrb[2].mxu1 %vm1990_vm10, %v10256_v57  ;;  %v3306_v35 = vmul.f32 %v12081_v7, %v3302_v55 }
 0x460   :  { %3219 = vmatpush1.msra.mxu1 %v3140_v4  ;;  %3282 = vmatprep.mubr.f32.mxu1 %v13483_v10 }
 0x461   :  { %3314 = vmatprep.subr.mxu0 %v3306_v35  ;;  %v3300_v43 = vpop.permute.xlu1 %3299 }
 0x462   :  { %v3304_v3 = vsel %vm1730_vm9, %v3300_v43, %v3294_v48  ;;  %v3301_v5 = vsel %vm1730_vm9, %v3298_v15, %v3300_v43  ;;  %v3461_v48 = vld [vmem:[%s11568_s30] sm:$0xff]  ;;  %s13490_s30 = sld [smem:[#allocation7_spill]] }
 0x463   :  { %10260 = vmatmul.mubr.msk.f32.vlgmr.msra.gmra.mrb[2].mxu0 %vm1990_vm10, %v10259_v0  ;;  %v3308_v2 = vmul.f32 %v12098_v37, %v3304_v3  ;;  %v3307_v7 = vmul.f32 %v12102_v39, %v3301_v5 }
 0x464   :  { %3315 = vmatpush1.msra.mxu0 %v3305_v47  ;;  %3378 = vmatprep.mubr.f32.mxu0 %v13483_v10 }
 0x465   :  { %3385 = vmatprep.subr.mxu1 %v3308_v2 }
 0x467   :  { %10261 = vmatmul.mubr.msk.f32.vlgmr.msra.gmra.mrb[2].mxu1 %vm1990_vm10, %v10259_v0 }
 0x468   :  { %3386 = vmatpush1.msra.mxu1 %v3307_v7  ;;  %3449 = vmatprep.mubr.f32.mxu1 %v13483_v10 }
 0x46a   :  { %v1970_v61 = vpop.permute.xlu0 %1969 }
 0x46b   :  { %10263 = vmatmul.mubr.msk.f32.vlgmr.msra.gmra.mrb[2].mxu0 %vm1990_vm10, %v10262_v34 }
 0x46f   :  { %10264 = vmatmul.mubr.msk.f32.vlgmr.msra.gmra.mrb[2].mxu1 %vm1990_vm10, %v10262_v34 }
 0x53e   :  { %v3380_v62 = vpop.f32.mrb[2].mxu0 }
 0x53f   :  { %v11134_v37 = vadd.f32 %v3380_v62, %v1970_v61  ;;  %v3382_v24 = vpop.f32.mrb[3].mxu0 }
 0x540   :  { %v11135_v63 = vadd.f32 %v3382_v24, %v1970_v61 }
 0x542   :  { %v3462_v57 = vadd.f32 %v11135_v63, %v11134_v37  ;;  %v3451_v12 = vpop.f32.mrb[2].mxu1 }
 0x543   :  { %v11136_v14 = vadd.f32 %v3451_v12, %v1970_v61  ;;  %v3453_v39 = vpop.f32.mrb[3].mxu1 }
 0x544   :  { %v11137_v19 = vadd.f32 %v3453_v39, %v1970_v61 }
 0x545   :  { %v3463_v28 = vadd.f32 %v11136_v14, %v3462_v57 }
 0x547   :  { %v3464_v38 = vadd.f32 %v11137_v19, %v3463_v28 }
 0x549   :  { %3465 = vadd.xlane.f32.xlu1 %v3464_v38 }
 0x55a   :  { %3496 = vperm.xlu1 %11385, %v3461_v48  }
 0x5d6   :  { %v3466_v15 = vpop.xlane.xlu1 %3465 }
 0x5d7   :  { %v3467_v4 = vmul.f32 0.001953125, %v3466_v15 }
 0x5d9   :  { %v3468_v55 = vsub.f32 %v11134_v37, %v3467_v4  ;;  %v3469_v44 = vsub.f32 %v11135_v63, %v3467_v4  ;;  %v3470_v35 = vsub.f32 %v11136_v14, %v3467_v4  ;;  %v3471_v0 = vsub.f32 %v11137_v19, %v3467_v4  ;;  %v3460_v37 = vld [vmem:[%s11563_s24] sm:$0xff]  ;;  %s13489_s24 = sld [smem:[#allocation6_spill]] }
 0x5da   :  { %v3497_v38 = vpop.permute.xlu1 %3496  ;;  %v3555_v4 = vld [vmem:[%s11523_s17 + $0x80] sm:$0xff] }
 0x5db   :  { %v3472_v43 = vmul.f32 %v3468_v55, %v3468_v55  ;;  %v3473_v47 = vmul.f32 %v3469_v44, %v3469_v44  ;;  %v3474_v3 = vmul.f32 %v3470_v35, %v3470_v35  ;;  %v3475_v2 = vmul.f32 %v3471_v0, %v3471_v0 }
 0x5dd   :  { %v3476_v5 = vadd.f32 %v3473_v47, %v3472_v43  ;;  %v3556_v43 = vld [vmem:[%s11523_s17 + $0x88] sm:$0xff]  ;;  %v3587_v47 = vld [vmem:[%s11523_s17 + $0x180] sm:$0xff] }
 0x5df   :  { %v3477_v7 = vadd.f32 %v3476_v5, %v3474_v3  ;;  %v10687_v3 = vpack.c.bf16 %v3556_v43, %v3555_v4  ;;  %v3588_v5 = vld [vmem:[%s11523_s17 + $0x188] sm:$0xff] }
 0x5e1   :  { %v3478_v34 = vadd.f32 %v3477_v7, %v3475_v2  ;;  %v3539_v2 = vld [vmem:[%s11523_s17] sm:$0xff]  ;;  %v3540_v7 = vld [vmem:[%s11523_s17 + $0x8] sm:$0xff]  ;;  %10688 = vmatprep.subr.bf16.mxu0 %v10687_v3 }
 0x5e3   :  { %3479 = vadd.xlane.f32.xlu0 %v3478_v34 }
 0x670   :  { %v3480_v61 = vpop.xlane.xlu0 %3479 }
 0x671   :  { %v3481_v62 = vmul.f32 0.001953125, %v3480_v61  ;;  %v3572_v61 = vld [vmem:[%s11523_s17 + $0x108] sm:$0xff] }
 0x673   :  { %v3482_v24 = vadd.f32 1e-05, %v3481_v62  ;;  %v10719_v62 = vpack.c.bf16 %v3588_v5, %v3587_v47  ;;  %v3559_v5 = vld [vmem:[%s11523_s17 + $0xa0] sm:$0xff] }
 0x675   :  { %11400 = vrsqrt.f32 %v3482_v24  ;;  %v10689_v24 = vpack.c.bf16 %v3540_v7, %v3539_v2  ;;  %10720 = vmatprep.subr.bf16.mxu1 %v10719_v62  ;;  %v3560_v2 = vld [vmem:[%s11523_s17 + $0xa8] sm:$0xff]  ;;  %v3591_v7 = vld [vmem:[%s11523_s17 + $0x1a0] sm:$0xff] }
 0x676   :  { %v3543_v62 = vld [vmem:[%s11523_s17 + $0x20] sm:$0xff] }
 0x677   :  { %10690 = vmatpush3.bf16.msra.mxu0 %v10689_v24  ;;  %v3575_v24 = vld [vmem:[%s11523_s17 + $0x120] sm:$0xff] }
 0x67f   :  { %v11401_v63 = vpop.eup %11400 }
 0x680   :  { %v3484_v57 = vmul.f32 %v11401_v63, %v3460_v37  ;;  %v3557_v63 = vld [vmem:[%s11523_s17 + $0x90] sm:$0xff] }
 0x682   :  { %3487 = vperm.xlu0 %11384, %v3484_v57   ;;  %v3558_v57 = vld [vmem:[%s11523_s17 + $0x98] sm:$0xff] }
 0x701   :  { %v3488_v12 = vpop.permute.xlu0 %3487 }
 0x702   :  { %v3490_v14 = vmul.f32 %v3488_v12, %v3468_v55  ;;  %v3491_v39 = vmul.f32 %v3488_v12, %v3469_v44  ;;  %v3492_v19 = vmul.f32 %v3488_v12, %v3470_v35  ;;  %v3493_v28 = vmul.f32 %v3488_v12, %v3471_v0  ;;  %v3571_v0 = vld [vmem:[%s11523_s17 + $0x100] sm:$0xff]  ;;  %v3589_v12 = vld [vmem:[%s11523_s17 + $0x190] sm:$0xff] }
 0x703   :  { %v10721_v37 = vpack.c.bf16 %v3572_v61, %v3571_v0  ;;  %v10695_v0 = vpack.c.bf16 %v3560_v2, %v3559_v5  ;;  %v3592_v61 = vld [vmem:[%s11523_s17 + $0x1a8] sm:$0xff]  ;;  %v3578_v5 = vld [vmem:[%s11523_s17 + $0x138] sm:$0xff]  ;;  %v3563_v2 = vld [vmem:[%s11523_s17 + $0xc0] sm:$0xff] }
 0x704   :  { %v3499_v48 = vadd.f32 %v3497_v38, %v3490_v14  ;;  %v3500_v15 = vadd.f32 %v3497_v38, %v3491_v39  ;;  %v3501_v34 = vadd.f32 %v3497_v38, %v3492_v19  ;;  %v3502_v55 = vadd.f32 %v3497_v38, %v3493_v28  ;;  %v3590_v39 = vld [vmem:[%s11523_s17 + $0x198] sm:$0xff]  ;;  %v3541_v19 = vld [vmem:[%s11523_s17 + $0x10] sm:$0xff] }
 0x705   :  { %v10691_v14 = vpack.c.bf16 %v3558_v57, %v3557_v63  ;;  %v10723_v28 = vpack.c.bf16 %v3590_v39, %v3589_v12  ;;  %v3542_v38 = vld [vmem:[%s11523_s17 + $0x18] sm:$0xff]  ;;  %10722 = vmatpush3.bf16.msra.mxu1 %v10721_v37  ;;  %v3576_v37 = vld [vmem:[%s11523_s17 + $0x128] sm:$0xff]  ;;  %v3561_v57 = vld [vmem:[%s11523_s17 + $0xb0] sm:$0xff] }
 0x706   :  { %v12351_v44 = vmax.f32 %v3499_v48, 0.0  ;;  %v12353_v35 = vmax.f32 %v3500_v15, 0.0  ;;  %v3573_v48 = vld [vmem:[%s11523_s17 + $0x110] sm:$0xff]  ;;  %v3574_v15 = vld [vmem:[%s11523_s17 + $0x118] sm:$0xff]  ;;  %v12369_v4 = vmax.f32 %v3501_v34, 0.0  ;;  %v12371_v43 = vmax.f32 %v3502_v55, 0.0 }
 0x707   :  { %10692 = vmatprep.subr.bf16.mxu0 %v10691_v14  ;;  %v10693_v47 = vpack.c.bf16 %v3542_v38, %v3541_v19  ;;  %v10725_v3 = vpack.c.bf16 %v3574_v15, %v3573_v48  ;;  %10724 = vmatprep.subr.bf16.mxu1 %v10723_v28  ;;  %v3544_v34 = vld [vmem:[%s11523_s17 + $0x28] sm:$0xff]  ;;  %v10727_v55 = vpack.c.bf16 %v3592_v61, %v3591_v7  ;;  %v3562_v12 = vld [vmem:[%s11523_s17 + $0xb8] sm:$0xff]  ;;  %v3593_v14 = vld [vmem:[%s11523_s17 + $0x1b0] sm:$0xff] }
 0x708   :  { %3509 = vrot.lane.b32.xlu0 %v12353_v35, %s11486_s16  ;;  %3507 = vrot.lane.b32.xlu1 %v12351_v44, %s11486_s16  ;;  %13484 = vst [vmem:[#allocation36_spill] sm:$0xff] %v12369_v4  ;;  %v10697_v63 = vpack.c.bf16 %v3544_v34, %v3543_v62  ;;  %v10729_v39 = vpack.c.bf16 %v3576_v37, %v3575_v24  ;;  %v3594_v28 = vld [vmem:[%s11523_s17 + $0x1b8] sm:$0xff]  ;;  %v3545_v38 = vld [vmem:[%s11523_s17 + $0x30] sm:$0xff] }
 0x709   :  { %10694 = vmatpush3.bf16.msra.mxu0 %v10693_v47  ;;  %10726 = vmatpush3.bf16.msra.mxu1 %v10725_v3  ;;  %v10699_v19 = vpack.c.bf16 %v3562_v12, %v3561_v57  ;;  %v3546_v48 = vld [vmem:[%s11523_s17 + $0x38] sm:$0xff]  ;;  %v10731_v15 = vpack.c.bf16 %v3594_v28, %v3593_v14  ;;  %v3577_v47 = vld [vmem:[%s11523_s17 + $0x130] sm:$0xff]  ;;  %v3564_v7 = vld [vmem:[%s11523_s17 + $0xc8] sm:$0xff] }
 0x70a   :  { %10696 = vmatprep.subr.bf16.mxu0 %v10695_v0  ;;  %10728 = vmatprep.subr.bf16.mxu1 %v10727_v55  ;;  %v3595_v61 = vld [vmem:[%s11523_s17 + $0x1c0] sm:$0xff]  ;;  %v3596_v3 = vld [vmem:[%s11523_s17 + $0x1c8] sm:$0xff]  ;;  %v10701_v0 = vpack.c.bf16 %v3546_v48, %v3545_v38  ;;  %v10733_v62 = vpack.c.bf16 %v3578_v5, %v3577_v47  ;;  %v10703_v34 = vpack.c.bf16 %v3564_v7, %v3563_v2  ;;  %v3565_v14 = vld [vmem:[%s11523_s17 + $0xd0] sm:$0xff] }
 0x70b   :  { %v3547_v55 = vld [vmem:[%s11523_s17 + $0x40] sm:$0xff]  ;;  %v3548_v24 = vld [vmem:[%s11523_s17 + $0x48] sm:$0xff]  ;;  %v10735_v57 = vpack.c.bf16 %v3596_v3, %v3595_v61  ;;  %v3566_v28 = vld [vmem:[%s11523_s17 + $0xd8] sm:$0xff] }
 0x70c   :  { %3513 = vrot.lane.b32.xlu0 %v12371_v43, %s11486_s16  ;;  %3511 = vrot.lane.b32.xlu1 %v12369_v4, %s11486_s16  ;;  %v3579_v37 = vld [vmem:[%s11523_s17 + $0x140] sm:$0xff]  ;;  %v3580_v12 = vld [vmem:[%s11523_s17 + $0x148] sm:$0xff]  ;;  %v10707_v48 = vpack.c.bf16 %v3566_v28, %v3565_v14 }
 0x70d   :  { %10698 = vmatpush3.bf16.msra.mxu0 %v10697_v63  ;;  %10730 = vmatpush3.bf16.msra.mxu1 %v10729_v39  ;;  %v3597_v63 = vld [vmem:[%s11523_s17 + $0x1d0] sm:$0xff]  ;;  %v3598_v39 = vld [vmem:[%s11523_s17 + $0x1d8] sm:$0xff]  ;;  %v10737_v38 = vpack.c.bf16 %v3580_v12, %v3579_v37  ;;  %v3567_v61 = vld [vmem:[%s11523_s17 + $0xe0] sm:$0xff]  ;;  %v10743_v37 = vpack.c.bf16 %v3600_v56, %v3599_v8 }
 0x70e   :  { %10700 = vmatprep.subr.bf16.mxu0 %v10699_v19  ;;  %10732 = vmatprep.subr.bf16.mxu1 %v10731_v15  ;;  %v10705_v19 = vpack.c.bf16 %v3548_v24, %v3547_v55  ;;  %v3549_v47 = vld [vmem:[%s11523_s17 + $0x50] sm:$0xff]  ;;  %v3550_v15 = vld [vmem:[%s11523_s17 + $0x58] sm:$0xff]  ;;  %v10739_v2 = vpack.c.bf16 %v3598_v39, %v3597_v63  ;;  %v3568_v3 = vld [vmem:[%s11523_s17 + $0xe8] sm:$0xff] }
 0x70f   :  { %v3581_v5 = vld [vmem:[%s11523_s17 + $0x150] sm:$0xff]  ;;  %v3582_v7 = vld [vmem:[%s11523_s17 + $0x158] sm:$0xff]  ;;  %v3551_v55 = vld [vmem:[%s11523_s17 + $0x60] sm:$0xff] }
 0x710   :  { %v3552_v24 = vld [vmem:[%s11523_s17 + $0x68] sm:$0xff]  ;;  %v3569_v63 = vld [vmem:[%s11523_s17 + $0xf0] sm:$0xff]  ;;  %v3570_v39 = vld [vmem:[%s11523_s17 + $0xf8] sm:$0xff] }
 0x711   :  { %10702 = vmatpush3.bf16.msra.mxu0 %v10701_v0  ;;  %10734 = vmatpush3.bf16.msra.mxu1 %v10733_v62  ;;  %v10709_v0 = vpack.c.bf16 %v3550_v15, %v3549_v47  ;;  %v10741_v62 = vpack.c.bf16 %v3582_v7, %v3581_v5  ;;  %v3584_v12 = vld [vmem:[%s11523_s17 + $0x168] sm:$0xff]  ;;  %v10713_v14 = vpack.c.bf16 %v3552_v24, %v3551_v55  ;;  %v3553_v8 = vld [vmem:[%s11523_s17 + $0x70] sm:$0xff]  ;;  %v3554_v56 = vld [vmem:[%s11523_s17 + $0x78] sm:$0xff] }
 0x712   :  { %10704 = vmatprep.subr.bf16.mxu0 %v10703_v34  ;;  %10736 = vmatprep.subr.bf16.mxu1 %v10735_v57  ;;  %v10711_v34 = vpack.c.bf16 %v3568_v3, %v3567_v61  ;;  %v3583_v57 = vld [vmem:[%s11523_s17 + $0x160] sm:$0xff]  ;;  %v10717_v15 = vpack.c.bf16 %v3554_v56, %v3553_v8  ;;  %v3585_v5 = vld [vmem:[%s11523_s17 + $0x170] sm:$0xff] }
 0x713   :  { %v10745_v28 = vpack.c.bf16 %v3584_v12, %v3583_v57 }
 0x715   :  { %10706 = vmatpush3.bf16.msra.mxu0 %v10705_v19  ;;  %10738 = vmatpush3.bf16.msra.mxu1 %v10737_v38  ;;  %v3601_v19 = vld [vmem:[%s11523_s17 + $0x1f0] sm:$0xff]  ;;  %v10715_v38 = vpack.c.bf16 %v3570_v39, %v3569_v63 }
 0x716   :  { %10708 = vmatprep.subr.bf16.mxu0 %v10707_v48  ;;  %10740 = vmatprep.subr.bf16.mxu1 %v10739_v2  ;;  %v3602_v48 = vld [vmem:[%s11523_s17 + $0x1f8] sm:$0xff] }
 0x717   :  { %v10747_v47 = vpack.c.bf16 %v3602_v48, %v3601_v19  ;;  %v3586_v2 = vld [vmem:[%s11523_s17 + $0x178] sm:$0xff]  ;;  %s11491_s17 = smov 8  }
 0x718   :  { %v10749_v3 = vpack.c.bf16 %v3586_v2, %v3585_v5 }
 0x719   :  { %10710 = vmatpush3.bf16.msra.mxu0 %v10709_v0  ;;  %10742 = vmatpush3.bf16.msra.mxu1 %v10741_v62 }
 0x71a   :  { %10712 = vmatprep.subr.bf16.mxu0 %v10711_v34  ;;  %10744 = vmatprep.subr.bf16.mxu1 %v10743_v37 }
 0x71d   :  { %10714 = vmatpush3.bf16.msra.mxu0 %v10713_v14  ;;  %10746 = vmatpush3.bf16.msra.mxu1 %v10745_v28 }
 0x71e   :  { %10716 = vmatprep.subr.bf16.mxu0 %v10715_v38  ;;  %10748 = vmatprep.subr.bf16.mxu1 %v10747_v47 }
 0x721   :  { %10718 = vmatpush3.bf16.msra.mxu0 %v10717_v15  ;;  %10750 = vmatpush3.bf16.msra.mxu1 %v10749_v3 }
 0x77a   :  { %v3510_v7 = vpop.permute.xlu0 %3509  ;;  %v3508_v61 = vpop.permute.xlu1 %3507 }
 0x77b   :  { %v12427_v0 = vsel %vm1142_vm6, %v3508_v61, %v3510_v7 }
 0x77c   :  { %13485 = vst [vmem:[#allocation37_spill] sm:$0xff] %v12427_v0  ;;  %v3519_v57 = vmax.f32 %v12351_v44, %v12427_v0 }
 0x77e   :  { %v3514_v62 = vpop.permute.xlu0 %3513  ;;  %v3512_v34 = vpop.permute.xlu1 %3511 }
 0x77f   :  { %v12431_v55 = vsel %vm1142_vm6, %v3514_v62, %v3508_v61  ;;  %v12435_v24 = vsel %vm1142_vm6, %v3512_v34, %v3514_v62  ;;  %v12439_v37 = vsel %vm1142_vm6, %v3510_v7, %v3512_v34 }
 0x780   :  { %13486 = vst [vmem:[#allocation38_spill] sm:$0xff] %v12431_v55  ;;  %13487 = vst [vmem:[#allocation39_spill] sm:$0xff] %v12435_v24  ;;  %v3522_v12 = vmax.f32 %v12371_v43, %v12431_v55  ;;  %v3520_v14 = vmax.f32 %v12353_v35, %v12439_v37  ;;  %v3521_v28 = vmax.f32 %v12369_v4, %v12435_v24 }
 0x782   :  { %v11386_v63 = vpack.i.bf16 %v3520_v14, %v3519_v57  ;;  %v11391_v39 = vpack.i.bf16 %v3522_v12, %v3521_v28 }
 0x784   :  { %11387 = vrot.lane.b32.xlu1 %v11386_v63, %s11488_s22  ;;  %11392 = vrot.lane.b32.xlu0 %v11391_v39, %s11488_s22  ;;  %v3764_v63 = vld [vmem:[%s11573_s6] sm:$0xff] }
 0x7f6   :  { %v11388_v19 = vpop.permute.xlu1 %11387  ;;  %v11393_v38 = vpop.permute.xlu0 %11392 }
 0x7f7   :  { %v11390_v48 = vunpack.i.h.bf16 %v11388_v19  ;;  %v11389_v8 = vunpack.i.l.bf16 %v11388_v19  ;;  %v11395_v56 = vunpack.i.h.bf16 %v11393_v38  ;;  %v11394_v47 = vunpack.i.l.bf16 %v11393_v38 }
 0x7f9   :  { %v3533_v15 = vsel %vm1534_vm8, %v11389_v8, %v11390_v48  ;;  %v3531_v5 = vsel %vm1534_vm8, %v11394_v47, %v11395_v56  ;;  %v3532_v2 = vsel %vm1534_vm8, %v11390_v48, %v11394_v47  ;;  %v3534_v7 = vsel %vm1534_vm8, %v11395_v56, %v11389_v8 }
 0x7fa   :  { %v3536_v61 = vmax.f32 %v3520_v14, %v3532_v2  ;;  %v3538_v3 = vmax.f32 %v3522_v12, %v3534_v7  ;;  %v3535_v62 = vmax.f32 %v3519_v57, %v3533_v15  ;;  %v3537_v34 = vmax.f32 %v3521_v28, %v3531_v5  ;;  %v171_v57 = vld [vmem:[%s13488_s29] sm:$0xff]  ;;  %v3765_v5 = vld [vmem:[%s11573_s6 + $0x8] sm:$0xff]  ;;  %v10267_v7 = vld [vmem:[%s11573_s6 + $0x10] sm:$0xff] }
 0x7fb   :  { %v12473_v12 = vrot.slane %v171_v57, %v11783_v11  ;;  %v12476_v14 = vrot.slane %v171_v57, %v11806_v21  ;;  %v12480_v15 = vrot.slane %v171_v57, %v11855_v42  ;;  %v12489_v42 = vrot.slane %v171_v57, %v11896_v60 }
 0x7fc   :  { %3667 = vmatprep.mubr.f32.mxu0 %v3536_v61  ;;  %3737 = vmatprep.mubr.f32.mxu1 %v3538_v3  ;;  %v10268_v3 = vld [vmem:[%s11573_s6 + $0x18] sm:$0xff]  ;;  %v12501_v60 = vrot.slane %v171_v57, %v11937_v31  ;;  %v10283_v31 = vld [vmem:[%s11573_s6 + $0x50] sm:$0xff] }
 0x7fd   :  { %3668 = vmatmul.mubr.f32.vlgmr.msra.gmra.mrb[4].mxu0 %v3535_v62  ;;  %3738 = vmatmul.mubr.f32.vlgmr.msra.gmra.mrb[4].mxu1 %v3537_v34  ;;  %v10271_v62 = vld [vmem:[%s11573_s6 + $0x20] sm:$0xff] }
 0x7fe   :  { %10546 = vmatprep.mubr.msk.f32.mxu0 %vm1990_vm10, %v3764_v63  ;;  %v10272_v63 = vld [vmem:[%s11573_s6 + $0x28] sm:$0xff] }
 0x8d0   :  { %v10428_v39 = vpop.f32.mrb[4].mxu0  ;;  %v10463_v19 = vpop.f32.mrb[4].mxu1 }
 0x8d1   :  { %v10429_v38 = vpop.f32.mrb[5].mxu0  ;;  %v10464_v13 = vpop.f32.mrb[5].mxu1 }
 0x8d2   :  { %v10430_v50 = vadd.f32 %v10429_v38, %v10428_v39  ;;  %v10465_v48 = vadd.f32 %v10464_v13, %v10463_v19  ;;  %v3743_v13 = vld [vmem:[%s11578_s12] sm:$0xff]  ;;  %v10275_v39 = vld [vmem:[%s11573_s6 + $0x30] sm:$0xff]  ;;  %v10276_v38 = vld [vmem:[%s11573_s6 + $0x38] sm:$0xff] }
 0x8d4   :  { %v3740_v47 = vadd.f32 %v10465_v48, %v10430_v50  ;;  %v3744_v50 = vld [vmem:[%s11578_s12 + $0x8] sm:$0xff]  ;;  %v10279_v48 = vld [vmem:[%s11573_s6 + $0x40] sm:$0xff]  ;;  %s13492_s12 = sld [smem:[#allocation9_spill]] }
 0x8d6   :  { %3849 = vrot.lane.b32.xlu0 %v3740_v47, %s11491_s17  ;;  %3757 = vrot.lane.b32.xlu1 %v3740_v47, %s11492_s25 }
 0x8da   :  { %4035 = vrot.lane.b32.xlu0 %v3740_v47, %s11485_s15  ;;  %3942 = vrot.lane.b32.xlu1 %v3740_v47, %s11493_s3 }
 0x8de   :  { %4307 = vrot.lane.b32.xlu0 %v3740_v47, %s11494_s8  ;;  %4214 = vrot.lane.b32.xlu1 %v3740_v47, %s11486_s16 }
 0x8e2   :  { %4493 = vrot.lane.b32.xlu0 %v3740_v47, %s11495_s14  ;;  %4400 = vrot.lane.b32.xlu1 %v3740_v47, %s11496_s19 }
 0x8e6   :  { %3752 = vperm.xlu0 %11384, %v3744_v50   ;;  %3747 = vperm.xlu1 %11385, %v3743_v13   ;;  %v12509_v13 = vrot.slane %v171_v57, %v11978_v53  ;;  %v10284_v53 = vld [vmem:[%s11573_s6 + $0x58] sm:$0xff] }
 0x948   :  { %v3850_v28 = vpop.permute.xlu0 %3849  ;;  %v3758_v8 = vpop.permute.xlu1 %3757 }
 0x949   :  { %v3763_v56 = vmul.f32 %v12473_v12, %v3758_v8  ;;  %v3855_v2 = vmul.f32 %v12476_v14, %v3850_v28  ;;  %v10280_v8 = vld [vmem:[%s11573_s6 + $0x48] sm:$0xff] }
 0x94b   :  { %10544 = vmatprep.subr.mxu0 %v3763_v56 }
 0x94c   :  { %10545 = vmatpush3.msra.mxu0 %v3763_v56  ;;  %v3943_v11 = vpop.permute.xlu1 %3942  ;;  %v4036_v61 = vpop.permute.xlu0 %4035 }
 0x94d   :  { %v3948_v21 = vmul.f32 %v12480_v15, %v3943_v11  ;;  %10547 = vmatmul.mubr.msk.f32.vlgmr.msra.gmra.mrb[6].mxu0 %vm1990_vm10, %v3765_v5  ;;  %10549 = vmatprep.subr.mxu0 %v3855_v2  ;;  %v4041_v34 = vmul.f32 %v12489_v42, %v4036_v61  ;;  %v12525_v11 = vld [vmem:[%s13488_s29 + $0x8] ss:$0 sm:$0xff] }
 0x94e   :  { %10550 = vmatpush3.msra.mxu0 %v3855_v2  ;;  %10551 = vmatprep.mubr.msk.f32.mxu0 %vm1990_vm10, %v10267_v7  ;;  %v10287_v2 = vld [vmem:[%s11573_s6 + $0x60] sm:$0xff]  ;;  %v10288_v61 = vld [vmem:[%s11573_s6 + $0x68] sm:$0xff] }
 0x94f   :  { %10554 = vmatprep.subr.mxu0 %v3948_v21 }
 0x950   :  { %v4215_v19 = vpop.permute.xlu1 %4214  ;;  %v4308_v28 = vpop.permute.xlu0 %4307 }
 0x951   :  { %v4220_v50 = vmul.f32 %v12501_v60, %v4215_v19  ;;  %v4313_v56 = vmul.f32 %v12509_v13, %v4308_v28 }
 0x954   :  { %v4401_v5 = vpop.permute.xlu1 %4400 }
 0x955   :  { %10552 = vmatmul.mubr.msk.f32.vlgmr.msra.gmra.mrb[6].mxu0 %vm1990_vm10, %v10268_v3  ;;  %v10292_v3 = vld [vmem:[%s11573_s6 + $0x78] sm:$0xff] }
 0x956   :  { %10555 = vmatpush3.msra.mxu0 %v3948_v21  ;;  %10556 = vmatprep.mubr.msk.f32.mxu0 %vm1990_vm10, %v10271_v62  ;;  %v4494_v21 = vpop.permute.xlu0 %4493  ;;  %v10296_v62 = vld [vmem:[%s11573_s6 + $0x80] sm:$0xff] }
 0x957   :  { %10559 = vmatprep.subr.mxu0 %v4041_v34 }
 0x95d   :  { %10557 = vmatmul.mubr.msk.f32.vlgmr.msra.gmra.mrb[6].mxu0 %vm1990_vm10, %v10272_v63 }
 0x95e   :  { %10560 = vmatpush3.msra.mxu0 %v4041_v34  ;;  %10561 = vmatprep.mubr.msk.f32.mxu0 %vm1990_vm10, %v10275_v39  ;;  %v10297_v34 = vld [vmem:[%s11573_s6 + $0x88] sm:$0xff] }
 0x95f   :  { %10564 = vmatprep.subr.mxu0 %v3740_v47 }
 0x965   :  { %10562 = vmatmul.mubr.msk.f32.vlgmr.msra.gmra.mrb[6].mxu0 %vm1990_vm10, %v10276_v38  ;;  %v3753_v63 = vpop.permute.xlu0 %3752  ;;  %v3748_v19 = vpop.permute.xlu1 %3747 }
 0x966   :  { %10565 = vmatpush3.msra.mxu0 %v3740_v47  ;;  %10566 = vmatprep.mubr.msk.f32.mxu0 %vm1990_vm10, %v10279_v48  ;;  %v12517_v47 = vrot.slane %v171_v57, %v12022_v27  ;;  %v10291_v27 = vld [vmem:[%s11573_s6 + $0x70] sm:$0xff]  ;;  %v4499_v57 = vmul.f32 %v12525_v11, %v4494_v21  ;;  %s13491_s6 = sld [smem:[#allocation8_spill]] }
 0x967   :  { %10569 = vmatprep.subr.mxu0 %v4220_v50 }
 0x968   :  { %v4406_v7 = vmul.f32 %v12517_v47, %v4401_v5 }
 0x96d   :  { %10567 = vmatmul.mubr.msk.f32.vlgmr.msra.gmra.mrb[6].mxu0 %vm1990_vm10, %v10280_v8 }
 0x96e   :  { %10570 = vmatpush3.msra.mxu0 %v4220_v50  ;;  %10571 = vmatprep.mubr.msk.f32.mxu0 %vm1990_vm10, %v10283_v31 }
 0x96f   :  { %10574 = vmatprep.subr.mxu0 %v4313_v56 }
 0x975   :  { %10572 = vmatmul.mubr.msk.f32.vlgmr.msra.gmra.mrb[6].mxu0 %vm1990_vm10, %v10284_v53 }
 0x976   :  { %10575 = vmatpush3.msra.mxu0 %v4313_v56  ;;  %10576 = vmatprep.mubr.msk.f32.mxu0 %vm1990_vm10, %v10287_v2 }
 0x977   :  { %10579 = vmatprep.subr.mxu0 %v4406_v7 }
 0x97d   :  { %10577 = vmatmul.mubr.msk.f32.vlgmr.msra.gmra.mrb[6].mxu0 %vm1990_vm10, %v10288_v61 }
 0x97e   :  { %10580 = vmatpush3.msra.mxu0 %v4406_v7  ;;  %10581 = vmatprep.mubr.msk.f32.mxu0 %vm1990_vm10, %v10291_v27 }
 0x97f   :  { %10584 = vmatprep.subr.mxu0 %v4499_v57 }
 0x985   :  { %10582 = vmatmul.mubr.msk.f32.vlgmr.msra.gmra.mrb[6].mxu0 %vm1990_vm10, %v10292_v3 }
 0x986   :  { %10585 = vmatpush3.msra.mxu0 %v4499_v57  ;;  %10586 = vmatprep.mubr.msk.f32.mxu0 %vm1990_vm10, %v10296_v62 }
 0x98d   :  { %10587 = vmatmul.mubr.msk.f32.vlgmr.msra.gmra.mrb[6].mxu0 %vm1990_vm10, %v10297_v34  ;;  %v4587_v34 = vld [vmem:[%s13489_s24 + $0x8] sm:$0xff] }
 0x98e   :  { %10656 = vmatprep.mubr.msk.f32.mxu0 %vm11498_vm12, %v13483_v10 }
 0xa60   :  { %v10588_v39 = vpop.f32.mrb[6].mxu0 }
 0xa61   :  { %v11138_v38 = vadd.f32 %v10588_v39, %v3753_v63  ;;  %v4575_v48 = vpop.f32.mrb[7].mxu0  ;;  %v4586_v63 = vld [vmem:[%s13489_s24] sm:$0xff] }
 0xa62   :  { %v11139_v50 = vadd.f32 %v4575_v48, %v3748_v19 }
 0xa63   :  { %4592 = vadd.xlane.f32.xlu0 %v11138_v38 }
 0xa64   :  { %4590 = vadd.xlane.f32.xlu1 %v11139_v50 }
 0xaf0   :  { %v4593_v28 = vpop.xlane.xlu0 %4592 }
 0xaf1   :  { %v4596_v8 = vmul.f32 0.0078125, %v4593_v28  ;;  %v4591_v31 = vpop.xlane.xlu1 %4590  ;;  %v4589_v28 = vld [vmem:[%s13490_s30 + $0x8] sm:$0xff] }
 0xaf2   :  { %v4595_v56 = vmul.f32 0.0078125, %v4591_v31 }
 0xaf3   :  { %v4598_v5 = vsub.f32 %v11138_v38, %v4596_v8 }
 0xaf4   :  { %v4597_v53 = vsub.f32 %v11139_v50, %v4595_v56  ;;  %v4588_v50 = vld [vmem:[%s13490_s30] sm:$0xff] }
 0xaf5   :  { %v4600_v2 = vmul.f32 %v4598_v5, %v4598_v5 }
 0xaf6   :  { %v4599_v7 = vmul.f32 %v4597_v53, %v4597_v53 }
 0xaf7   :  { %4603 = vadd.xlane.f32.xlu1 %v4600_v2 }
 0xaf8   :  { %4601 = vadd.xlane.f32.xlu0 %v4599_v7 }
 0xb84   :  { %v4604_v21 = vpop.xlane.xlu1 %4603 }
 0xb85   :  { %v4606_v61 = vmul.f32 0.0078125, %v4604_v21  ;;  %v4602_v27 = vpop.xlane.xlu0 %4601  ;;  %v4659_v21 = vld [vmem:[%s13491_s6] sm:$0xff] }
 0xb86   :  { %v4605_v57 = vmul.f32 0.0078125, %v4602_v27  ;;  %10593 = vmatprep.mubr.msk.f32.mxu1 %vm4661_vm11, %v4659_v21  ;;  %v10302_v21 = vld [vmem:[%s13491_s6 + $0x10] sm:$0xff] }
 0xb87   :  { %v4608_v3 = vadd.f32 1e-05, %v4606_v61 }
 0xb88   :  { %v4607_v62 = vadd.f32 1e-05, %v4605_v57 }
 0xb89   :  { %11402 = vrsqrt.f32 %v4608_v3 }
 0xb8a   :  { %11404 = vrsqrt.f32 %v4607_v62 }
 0xb93   :  { %v11403_v39 = vpop.eup %11402 }
 0xb94   :  { %v11405_v19 = vpop.eup %11404  ;;  %v4612_v38 = vmul.f32 %v11403_v39, %v4587_v34 }
 0xb95   :  { %v4611_v48 = vmul.f32 %v11405_v19, %v4586_v63 }
 0xb96   :  { %4620 = vperm.xlu1 %11385, %v4612_v38  }
 0xb97   :  { %4615 = vperm.xlu0 %11384, %v4611_v48  }
 0xb9a   :  { %4627 = vperm.xlu1 %11385, %v4588_v50  }
 0xb9b   :  { %4632 = vperm.xlu0 %11384, %v4589_v28  }
 0xc15   :  { %v4621_v8 = vpop.permute.xlu1 %4620 }
 0xc16   :  { %v4616_v31 = vpop.permute.xlu0 %4615  ;;  %v4624_v2 = vmul.f32 %v4621_v8, %v4598_v5  ;;  %v4639_v5 = vld [vmem:[%s13492_s12] sm:$0xff] }
 0xc17   :  { %v4623_v56 = vmul.f32 %v4616_v31, %v4597_v53  ;;  %v4640_v53 = vld [vmem:[%s13492_s12 + $0x8] sm:$0xff] }
 0xc19   :  { %v4628_v7 = vpop.permute.xlu1 %4627 }
 0xc1a   :  { %v4635_v61 = vadd.f32 %v4628_v7, %v4623_v56  ;;  %v4633_v27 = vpop.permute.xlu0 %4632  ;;  %v4660_v56 = vld [vmem:[%s13491_s6 + $0x8] sm:$0xff] }
 0xc1b   :  { %v4636_v57 = vadd.f32 %v4633_v27, %v4624_v2 }
 0xc1c   :  { %v4637_v3 = vmax.f32 %v4635_v61, 0.0 }
 0xc1d   :  { %v4638_v62 = vmax.f32 %v4636_v57, 0.0 }
 0xc1e   :  { %4653 = vrot.lane.b32.xlu1 %v4637_v3, %s11492_s25 }
 0xc1f   :  { %4655 = vrot.lane.b32.xlu0 %v4638_v62, %s11492_s25  ;;  %v12546_v34 = vpack.c.bf16 %v4638_v62, %v4637_v3 }
 0xc22   :  { %4745 = vrot.lane.b32.xlu1 %v4637_v3, %s11491_s17 }
 0xc23   :  { %4747 = vrot.lane.b32.xlu0 %v4638_v62, %s11491_s17 }
 0xc26   :  { %4837 = vrot.lane.b32.xlu1 %v4637_v3, %s11493_s3 }
 0xc27   :  { %4839 = vrot.lane.b32.xlu0 %v4638_v62, %s11493_s3 }
 0xc2a   :  { %4929 = vrot.lane.b32.xlu1 %v4637_v3, %s11485_s15 }
 0xc2b   :  { %4931 = vrot.lane.b32.xlu0 %v4638_v62, %s11485_s15 }
 0xc2e   :  { %5107 = vrot.lane.b32.xlu1 %v4637_v3, %s11486_s16 }
 0xc2f   :  { %5109 = vrot.lane.b32.xlu0 %v4638_v62, %s11486_s16 }
 0xc32   :  { %5199 = vrot.lane.b32.xlu1 %v4637_v3, %s11494_s8 }
 0xc33   :  { %5201 = vrot.lane.b32.xlu0 %v4638_v62, %s11494_s8 }
 0xc36   :  { %5291 = vrot.lane.b32.xlu1 %v4637_v3, %s11496_s19 }
 0xc37   :  { %5293 = vrot.lane.b32.xlu0 %v4638_v62, %s11496_s19 }
 0xc3a   :  { %5383 = vrot.lane.b32.xlu1 %v4637_v3, %s11495_s14 }
 0xc3b   :  { %5385 = vrot.lane.b32.xlu0 %v4638_v62, %s11495_s14 }
 0xc3e   :  { %4643 = vperm.xlu1 %11385, %v4639_v5  }
 0xc3f   :  { %4648 = vperm.xlu0 %11384, %v4640_v53   ;;  %v10303_v53 = vld [vmem:[%s13491_s6 + $0x18] sm:$0xff] }
 0xc90   :  { %v4654_v63 = vpop.permute.xlu1 %4653 }
 0xc91   :  { %v4657_v39 = vmul.f32 %v4654_v63, %v12473_v12  ;;  %v4656_v19 = vpop.permute.xlu0 %4655 }
 0xc92   :  { %v4658_v38 = vmul.f32 %v4656_v19, %v12473_v12  ;;  %v10310_v19 = vld [vmem:[%s13491_s6 + $0x30] sm:$0xff] }
 0xc94   :  { %v10751_v48 = vpack.c.bf16 %v4658_v38, %v4657_v39  ;;  %v4746_v50 = vpop.permute.xlu1 %4745  ;;  %v10307_v39 = vld [vmem:[%s13491_s6 + $0x28] sm:$0xff] }
 0xc95   :  { %v4749_v28 = vmul.f32 %v4746_v50, %v12476_v14  ;;  %v4748_v8 = vpop.permute.xlu0 %4747 }
 0xc96   :  { %v4750_v31 = vmul.f32 %v4748_v8, %v12476_v14  ;;  %10752 = vmatprep.subr.bf16.mxu1 %v10751_v48  ;;  %v10314_v8 = vld [vmem:[%s13491_s6 + $0x40] sm:$0xff] }
 0xc97   :  { %10754 = vmatpush3.bf16.msra.mxu1 %v10751_v48 }
 0xc98   :  { %v10755_v2 = vpack.c.bf16 %v4750_v31, %v4749_v28  ;;  %v4838_v7 = vpop.permute.xlu1 %4837  ;;  %v10311_v28 = vld [vmem:[%s13491_s6 + $0x38] sm:$0xff] }
 0xc99   :  { %v4841_v61 = vmul.f32 %v4838_v7, %v12480_v15  ;;  %v4840_v27 = vpop.permute.xlu0 %4839 }
 0xc9a   :  { %v4842_v12 = vmul.f32 %v4840_v27, %v12480_v15  ;;  %10594 = vmatmul.mubr.msk.f32.vlgmr.msra.gmra.mrb[6].mxu1 %vm4661_vm11, %v4660_v56  ;;  %10756 = vmatprep.subr.bf16.mxu1 %v10755_v2  ;;  %v10306_v15 = vld [vmem:[%s13491_s6 + $0x20] sm:$0xff] }
 0xc9b   :  { %10758 = vmatpush3.bf16.msra.mxu1 %v10755_v2  ;;  %10600 = vmatprep.mubr.msk.f32.mxu1 %vm4661_vm11, %v10302_v21 }
 0xc9c   :  { %v10759_v14 = vpack.c.bf16 %v4842_v12, %v4841_v61  ;;  %v4930_v57 = vpop.permute.xlu1 %4929  ;;  %v10315_v61 = vld [vmem:[%s13491_s6 + $0x48] sm:$0xff] }
 0xc9d   :  { %v4933_v3 = vmul.f32 %v4930_v57, %v12489_v42  ;;  %v4932_v62 = vpop.permute.xlu0 %4931 }
 0xc9e   :  { %v4934_v5 = vmul.f32 %v4932_v62, %v12489_v42  ;;  %10760 = vmatprep.subr.bf16.mxu1 %v10759_v14  ;;  %v10322_v62 = vld [vmem:[%s13491_s6 + $0x60] sm:$0xff] }
 0xca0   :  { %v10763_v63 = vpack.c.bf16 %v4934_v5, %v4933_v3  ;;  %v5108_v38 = vpop.permute.xlu1 %5107  ;;  %v10319_v3 = vld [vmem:[%s13491_s6 + $0x58] sm:$0xff] }
 0xca1   :  { %v5110_v48 = vpop.permute.xlu0 %5109  ;;  %v5111_v42 = vmul.f32 %v5108_v38, %v12501_v60  ;;  %v10327_v38 = vld [vmem:[%s13491_s6 + $0x78] sm:$0xff] }
 0xca2   :  { %10601 = vmatmul.mubr.msk.f32.vlgmr.msra.gmra.mrb[6].mxu1 %vm4661_vm11, %v10303_v53  ;;  %v5112_v50 = vmul.f32 %v5110_v48, %v12501_v60  ;;  %v10318_v60 = vld [vmem:[%s13491_s6 + $0x50] sm:$0xff]  ;;  %v10330_v48 = vld [vmem:[%s13491_s6 + $0x80] sm:$0xff] }
 0xca3   :  { %10762 = vmatpush3.bf16.msra.mxu1 %v10759_v14  ;;  %10607 = vmatprep.mubr.msk.f32.mxu1 %vm4661_vm11, %v10306_v15 }
 0xca4   :  { %10764 = vmatprep.subr.bf16.mxu1 %v10763_v63  ;;  %v10771_v31 = vpack.c.bf16 %v5112_v50, %v5111_v42  ;;  %v5200_v56 = vpop.permute.xlu1 %5199  ;;  %v10331_v42 = vld [vmem:[%s13491_s6 + $0x88] sm:$0xff] }
 0xca5   :  { %v5202_v2 = vpop.permute.xlu0 %5201  ;;  %v5203_v7 = vmul.f32 %v5200_v56, %v12509_v13 }
 0xca6   :  { %v5204_v21 = vmul.f32 %v5202_v2, %v12509_v13 }
 0xca8   :  { %v10775_v27 = vpack.c.bf16 %v5204_v21, %v5203_v7  ;;  %v5292_v12 = vpop.permute.xlu1 %5291 }
 0xca9   :  { %v5294_v14 = vpop.permute.xlu0 %5293 }
 0xcaa   :  { %10608 = vmatmul.mubr.msk.f32.vlgmr.msra.gmra.mrb[6].mxu1 %vm4661_vm11, %v10307_v39  ;;  %v5296_v57 = vmul.f32 %v5294_v14, %v12517_v47  ;;  %v10323_v39 = vld [vmem:[%s13491_s6 + $0x68] sm:$0xff] }
 0xcab   :  { %10766 = vmatpush3.bf16.msra.mxu1 %v10763_v63  ;;  %10614 = vmatprep.mubr.msk.f32.mxu1 %vm4661_vm11, %v10310_v19 }
 0xcac   :  { %10768 = vmatprep.subr.bf16.mxu1 %v12546_v34  ;;  %v5384_v5 = vpop.permute.xlu1 %5383 }
 0xcad   :  { %v5386_v53 = vpop.permute.xlu0 %5385  ;;  %v5387_v63 = vmul.f32 %v12525_v11, %v5384_v5 }
 0xcae   :  { %v5388_v15 = vmul.f32 %v12525_v11, %v5386_v53  ;;  %v5476_v53 = vld [vmem:[%s13493_s26 + $0x8] sm:$0xff] }
 0xcb0   :  { %v10783_v19 = vpack.c.bf16 %v5388_v15, %v5387_v63  ;;  %v5475_v63 = vld [vmem:[%s13493_s26] sm:$0xff] }
 0xcb2   :  { %10615 = vmatmul.mubr.msk.f32.vlgmr.msra.gmra.mrb[6].mxu1 %vm4661_vm11, %v10311_v28 }
 0xcb3   :  { %10770 = vmatpush3.bf16.msra.mxu1 %v12546_v34  ;;  %10621 = vmatprep.mubr.msk.f32.mxu1 %vm4661_vm11, %v10314_v8  ;;  %v5295_v34 = vmul.f32 %v5292_v12, %v12517_v47  ;;  %v10326_v47 = vld [vmem:[%s13491_s6 + $0x70] sm:$0xff] }
 0xcb4   :  { %10772 = vmatprep.subr.bf16.mxu1 %v10771_v31 }
 0xcb5   :  { %v10779_v13 = vpack.c.bf16 %v5296_v57, %v5295_v34 }
 0xcba   :  { %10622 = vmatmul.mubr.msk.f32.vlgmr.msra.gmra.mrb[6].mxu1 %vm4661_vm11, %v10315_v61 }
 0xcbb   :  { %10774 = vmatpush3.bf16.msra.mxu1 %v10771_v31  ;;  %10628 = vmatprep.mubr.msk.f32.mxu1 %vm4661_vm11, %v10318_v60 }
 0xcbc   :  { %10776 = vmatprep.subr.bf16.mxu1 %v10775_v27 }
 0xcbd   :  { %v4644_v28 = vpop.permute.xlu1 %4643 }
 0xcbe   :  { %v4649_v11 = vpop.permute.xlu0 %4648 }
 0xcc2   :  { %10629 = vmatmul.mubr.msk.f32.vlgmr.msra.gmra.mrb[6].mxu1 %vm4661_vm11, %v10319_v3 }
 0xcc3   :  { %10778 = vmatpush3.bf16.msra.mxu1 %v10775_v27  ;;  %10635 = vmatprep.mubr.msk.f32.mxu1 %vm4661_vm11, %v10322_v62 }
 0xcc4   :  { %10780 = vmatprep.subr.bf16.mxu1 %v10779_v13 }
 0xcca   :  { %10636 = vmatmul.mubr.msk.f32.vlgmr.msra.gmra.mrb[6].mxu1 %vm4661_vm11, %v10323_v39 }
 0xccb   :  { %10782 = vmatpush3.bf16.msra.mxu1 %v10779_v13  ;;  %10642 = vmatprep.mubr.msk.f32.mxu1 %vm4661_vm11, %v10326_v47 }
 0xccc   :  { %10784 = vmatprep.subr.bf16.mxu1 %v10783_v19 }
 0xcd2   :  { %10643 = vmatmul.mubr.msk.f32.vlgmr.msra.gmra.mrb[6].mxu1 %vm4661_vm11, %v10327_v38  ;;  %v5477_v38 = vld [vmem:[%s13494_s28] sm:$0xff] }
 0xcd3   :  { %10786 = vmatpush3.bf16.msra.mxu1 %v10783_v19  ;;  %10649 = vmatprep.mubr.msk.f32.mxu1 %vm4661_vm11, %v10330_v48  ;;  %v5478_v48 = vld [vmem:[%s13494_s28 + $0x8] sm:$0xff] }
 0xcda   :  { %10650 = vmatmul.mubr.msk.f32.vlgmr.msra.gmra.mrb[6].mxu1 %vm4661_vm11, %v10331_v42  ;;  %v5527_v42 = vld [vmem:[%s13495_s1] sm:$0xff] }
 0xcdb   :  { %5736 = vmatprep.mubr.f32.mxu1 %v13483_v10 }
 0xdad   :  { %v10651_v50 = vpop.f32.mrb[6].mxu1 }
 0xdae   :  { %v11140_v8 = vadd.f32 %v10651_v50, %v4649_v11  ;;  %v5464_v31 = vpop.f32.mrb[7].mxu1  ;;  %v13425_v11 = vmov 0.0|0.0   ;;  %v5609_v50 = vld [vmem:[#allocation2 + $0x8] sm:$0xff] }
 0xdaf   :  { %v11141_v56 = vadd.f32 %v5464_v31, %v4644_v28  ;;  %10787 = vmatprep.subr.bf16.mxu0 %v13425_v11  ;;  %v5613_v28 = vld [vmem:[#allocation2 + $0x28] sm:$0xff] }
 0xdb0   :  { %5481 = vadd.xlane.f32.xlu0 %v11140_v8  ;;  %v10790_v31 = vpack.c.bf16 %v5613_v28, %v5609_v50  ;;  %v5640_v28 = vld [vmem:[#allocation2 + $0x100] sm:$0xff] }
 0xdb1   :  { %5479 = vadd.xlane.f32.xlu1 %v11141_v56 }
 0xdb2   :  { %10791 = vmatprep.subr.bf16.mxu1 %v10790_v31  ;;  %v5649_v31 = vld [vmem:[#allocation2 + $0x148] sm:$0xff] }
 0xe3d   :  { %v5482_v2 = vpop.xlane.xlu0 %5481 }
 0xe3e   :  { %v5484_v7 = vmul.f32 0.0078125, %v5482_v2  ;;  %v5480_v21 = vpop.xlane.xlu1 %5479 }
 0xe3f   :  { %v5483_v61 = vmul.f32 0.0078125, %v5480_v21  ;;  %v5621_v21 = vld [vmem:[#allocation2 + $0x68] sm:$0xff] }
 0xe40   :  { %v12617_v60 = vsub.f32 %v11140_v8, %v5484_v7  ;;  %v5608_v8 = vld [vmem:[#allocation2] sm:$0xff]  ;;  %v5617_v7 = vld [vmem:[#allocation2 + $0x48] sm:$0xff] }
 0xe41   :  { %v12619_v27 = vsub.f32 %v11141_v56, %v5483_v61  ;;  %v5612_v56 = vld [vmem:[#allocation2 + $0x20] sm:$0xff] }
 0xe42   :  { %v5488_v12 = vmul.f32 %v12617_v60, %v12617_v60  ;;  %v10792_v2 = vpack.c.bf16 %v5612_v56, %v5608_v8  ;;  %v5616_v61 = vld [vmem:[#allocation2 + $0x40] sm:$0xff]  ;;  %v5653_v56 = vld [vmem:[#allocation2 + $0x168] sm:$0xff] }
 0xe43   :  { %v5487_v14 = vmul.f32 %v12619_v27, %v12619_v27  ;;  %v5644_v8 = vld [vmem:[#allocation2 + $0x120] sm:$0xff] }
 0xe44   :  { %5491 = vadd.xlane.f32.xlu1 %v5488_v12  ;;  %v5620_v12 = vld [vmem:[#allocation2 + $0x60] sm:$0xff]  ;;  %10793 = vmatpush1.bf16.msra.mxu1 %v10792_v2  ;;  %v10808_v2 = vpack.c.bf16 %v5644_v8, %v5640_v28 }
 0xe45   :  { %5489 = vadd.xlane.f32.xlu0 %v5487_v14  ;;  %v10794_v14 = vpack.c.bf16 %v5621_v21, %v5617_v7  ;;  %v10810_v7 = vpack.c.bf16 %v5653_v56, %v5649_v31  ;;  %v5648_v21 = vld [vmem:[#allocation2 + $0x140] sm:$0xff]  ;;  %v5611_v56 = vld [vmem:[#allocation2 + $0x18] sm:$0xff] }
 0xe47   :  { %10795 = vmatprep.subr.bf16.mxu1 %v10794_v14  ;;  %v5661_v14 = vld [vmem:[#allocation2 + $0x1a8] sm:$0xff] }
 0xed1   :  { %v5492_v34 = vpop.xlane.xlu1 %5491 }
 0xed2   :  { %v5494_v57 = vmul.f32 0.0078125, %v5492_v34  ;;  %v5490_v3 = vpop.xlane.xlu0 %5489  ;;  %v10796_v34 = vpack.c.bf16 %v5620_v12, %v5616_v61  ;;  %v5652_v61 = vld [vmem:[#allocation2 + $0x160] sm:$0xff]  ;;  %v5657_v12 = vld [vmem:[#allocation2 + $0x188] sm:$0xff] }
 0xed3   :  { %v5493_v62 = vmul.f32 0.0078125, %v5490_v3  ;;  %v5629_v3 = vld [vmem:[#allocation2 + $0xa8] sm:$0xff] }
 0xed4   :  { %v5496_v13 = vadd.f32 1e-05, %v5494_v57  ;;  %v5625_v57 = vld [vmem:[#allocation2 + $0x88] sm:$0xff]  ;;  %10797 = vmatpush1.bf16.msra.mxu1 %v10796_v34  ;;  %v10812_v34 = vpack.c.bf16 %v5652_v61, %v5648_v21 }
 0xed5   :  { %v5495_v5 = vadd.f32 1e-05, %v5493_v62  ;;  %v10798_v62 = vpack.c.bf16 %v5629_v3, %v5625_v57  ;;  %v10814_v57 = vpack.c.bf16 %v5661_v14, %v5657_v12  ;;  %v5656_v3 = vld [vmem:[#allocation2 + $0x180] sm:$0xff]  ;;  %v5610_v12 = vld [vmem:[#allocation2 + $0x10] sm:$0xff] }
 0xed6   :  { %11406 = vrsqrt.f32 %v5496_v13  ;;  %v5624_v13 = vld [vmem:[#allocation2 + $0x80] sm:$0xff]  ;;  %v5614_v14 = vld [vmem:[#allocation2 + $0x30] sm:$0xff] }
 0xed7   :  { %11408 = vrsqrt.f32 %v5495_v5  ;;  %v5628_v5 = vld [vmem:[#allocation2 + $0xa0] sm:$0xff]  ;;  %10799 = vmatprep.subr.bf16.mxu1 %v10798_v62 }
 0xed8   :  { %v5660_v62 = vld [vmem:[#allocation2 + $0x1a0] sm:$0xff] }
 0xee0   :  { %v11407_v15 = vpop.eup %11406 }
 0xee1   :  { %v11409_v39 = vpop.eup %11408  ;;  %v5500_v47 = vmul.f32 %v11407_v15, %v5476_v53  ;;  %v10800_v53 = vpack.c.bf16 %v5628_v5, %v5624_v13  ;;  %v5637_v15 = vld [vmem:[#allocation2 + $0xe8] sm:$0xff] }
 0xee2   :  { %v5499_v19 = vmul.f32 %v11409_v39, %v5475_v63  ;;  %v5633_v63 = vld [vmem:[#allocation2 + $0xc8] sm:$0xff] }
 0xee3   :  { %5508 = vperm.xlu1 %11385, %v5500_v47   ;;  %v10802_v39 = vpack.c.bf16 %v5637_v15, %v5633_v63  ;;  %v5632_v47 = vld [vmem:[#allocation2 + $0xc0] sm:$0xff]  ;;  %10801 = vmatpush1.bf16.msra.mxu1 %v10800_v53  ;;  %v5665_v13 = vld [vmem:[#allocation2 + $0x1c8] sm:$0xff]  ;;  %v10816_v53 = vpack.c.bf16 %v5660_v62, %v5656_v3  ;;  %v5623_v3 = vld [vmem:[#allocation2 + $0x78] sm:$0xff] }
 0xee4   :  { %5503 = vperm.xlu0 %11384, %v5499_v19   ;;  %v5636_v19 = vld [vmem:[#allocation2 + $0xe0] sm:$0xff]  ;;  %v5669_v5 = vld [vmem:[#allocation2 + $0x1e8] sm:$0xff] }
 0xee5   :  { %10803 = vmatprep.subr.bf16.mxu1 %v10802_v39  ;;  %v10818_v63 = vpack.c.bf16 %v5669_v5, %v5665_v13  ;;  %v5664_v15 = vld [vmem:[#allocation2 + $0x1c0] sm:$0xff]  ;;  %v5618_v13 = vld [vmem:[#allocation2 + $0x50] sm:$0xff] }
 0xee6   :  { %v5668_v39 = vld [vmem:[#allocation2 + $0x1e0] sm:$0xff]  ;;  %v5622_v5 = vld [vmem:[#allocation2 + $0x70] sm:$0xff] }
 0xee7   :  { %5515 = vperm.xlu1 %11385, %v5477_v38   ;;  %v5641_v38 = vld [vmem:[#allocation2 + $0x108] sm:$0xff] }
 0xee8   :  { %5520 = vperm.xlu0 %11384, %v5478_v48   ;;  %v5645_v48 = vld [vmem:[#allocation2 + $0x128] sm:$0xff] }
 0xee9   :  { %v10806_v50 = vpack.c.bf16 %v5645_v48, %v5641_v38 }
 0xeeb   :  { %5530 = vperm.xlu1 %11385, %v5527_v42   ;;  %v10804_v42 = vpack.c.bf16 %v5636_v19, %v5632_v47  ;;  %v10820_v47 = vpack.c.bf16 %v5668_v39, %v5664_v15  ;;  %v10828_v15 = vpack.c.bf16 %v5622_v5, %v5618_v13  ;;  %v5663_v13 = vld [vmem:[#allocation2 + $0x1b8] sm:$0xff] }
 0xeec   :  { %6683 = vrot.lane.b32.xlu0 %v12351_v44, %s11482_s11 }
 0xeed   :  { %10805 = vmatpush1.bf16.msra.mxu1 %v10804_v42 }
 0xeee   :  { %10807 = vmatprep.subr.bf16.mxu1 %v10806_v50 }
 0xef0   :  { %6687 = vrot.lane.b32.xlu0 %v12353_v35, %s11482_s11 }
 0xef1   :  { %10809 = vmatpush1.bf16.msra.mxu1 %v10808_v2  ;;  %v5615_v2 = vld [vmem:[#allocation2 + $0x38] sm:$0xff] }
 0xef2   :  { %10811 = vmatprep.subr.bf16.mxu1 %v10810_v7  ;;  %v10822_v61 = vpack.c.bf16 %v5615_v2, %v5611_v56  ;;  %v5647_v56 = vld [vmem:[#allocation2 + $0x138] sm:$0xff] }
 0xef4   :  { %6695 = vrot.lane.b32.xlu0 %v12371_v43, %s11482_s11 }
 0xef5   :  { %10813 = vmatpush1.bf16.msra.mxu1 %v10812_v34 }
 0xef6   :  { %10815 = vmatprep.subr.bf16.mxu1 %v10814_v57  ;;  %v5619_v57 = vld [vmem:[#allocation2 + $0x58] sm:$0xff] }
 0xef7   :  { %v10826_v62 = vpack.c.bf16 %v5623_v3, %v5619_v57 }
 0xef8   :  { %6691 = vrot.lane.b32.xlu0 %v12369_v4, %s11482_s11 }
 0xef9   :  { %10817 = vmatpush1.bf16.msra.mxu1 %v10816_v53  ;;  %v5627_v53 = vld [vmem:[#allocation2 + $0x98] sm:$0xff] }
 0xefa   :  { %10819 = vmatprep.subr.bf16.mxu1 %v10818_v63  ;;  %v5631_v63 = vld [vmem:[#allocation2 + $0xb8] sm:$0xff] }
 0xefb   :  { %v10830_v39 = vpack.c.bf16 %v5631_v63, %v5627_v53  ;;  %v5658_v63 = vld [vmem:[#allocation2 + $0x190] sm:$0xff] }
 0xefc   :  { %6865 = vrot.lane.b32.xlu0 %v12351_v44, %s11483_s5 }
 0xefd   :  { %10821 = vmatpush1.bf16.msra.mxu1 %v10820_v47  ;;  %v5626_v47 = vld [vmem:[#allocation2 + $0x90] sm:$0xff] }
 0xefe   :  { %10854 = vmatprep.subr.bf16.mxu1 %v13425_v11 }
 0xf00   :  { %6869 = vrot.lane.b32.xlu0 %v12353_v35, %s11483_s5 }
 0xf04   :  { %6877 = vrot.lane.b32.xlu0 %v12371_v43, %s11483_s5 }
 0xf08   :  { %6873 = vrot.lane.b32.xlu0 %v12369_v4, %s11483_s5 }
 0xf0c   :  { %7048 = vrot.lane.b32.xlu0 %v12351_v44, %s11484_s21 }
 0xf10   :  { %7052 = vrot.lane.b32.xlu0 %v12353_v35, %s11484_s21 }
 0xf14   :  { %7060 = vrot.lane.b32.xlu0 %v12371_v43, %s11484_s21 }
 0xf18   :  { %7056 = vrot.lane.b32.xlu0 %v12369_v4, %s11484_s21 }
 0xf1c   :  { %7231 = vrot.lane.b32.xlu0 %v12351_v44, %s11485_s15 }
 0xf20   :  { %7235 = vrot.lane.b32.xlu0 %v12353_v35, %s11485_s15 }
 0xf24   :  { %7243 = vrot.lane.b32.xlu0 %v12371_v43, %s11485_s15 }
 0xf28   :  { %7239 = vrot.lane.b32.xlu0 %v12369_v4, %s11485_s15 }
 0xf2c   :  { %7740 = vrot.lane.b32.xlu0 %v12353_v35, %s11487_s18 }
 0xf30   :  { %7744 = vrot.lane.b32.xlu0 %v12369_v4, %s11487_s18 }
 0xf34   :  { %7736 = vrot.lane.b32.xlu0 %v12351_v44, %s11487_s18 }
 0xf38   :  { %7748 = vrot.lane.b32.xlu0 %v12371_v43, %s11487_s18 }
 0xf3c   :  { %7923 = vrot.lane.b32.xlu0 %v12353_v35, %s11488_s22 }
 0xf62   :  { %v5509_v19 = vpop.permute.xlu1 %5508 }
 0xf63   :  { %v5504_v38 = vpop.permute.xlu0 %5503  ;;  %v5512_v42 = vmul.f32 %v5509_v19, %v12617_v60  ;;  %v10824_v60 = vpack.c.bf16 %v5614_v14, %v5610_v12  ;;  %v5630_v19 = vld [vmem:[#allocation2 + $0xb0] sm:$0xff]  ;;  %v5651_v12 = vld [vmem:[#allocation2 + $0x158] sm:$0xff] }
 0xf64   :  { %v5511_v48 = vmul.f32 %v5504_v38, %v12619_v27  ;;  %v5534_v27 = vld [vmem:[%s13496_s2] sm:$0xff]  ;;  %v5635_v38 = vld [vmem:[#allocation2 + $0xd8] sm:$0xff] }
 0xf65   :  { %v5655_v14 = vld [vmem:[#allocation2 + $0x178] sm:$0xff] }
 0xf66   :  { %v5516_v50 = vpop.permute.xlu1 %5515  ;;  %v10842_v3 = vpack.c.bf16 %v5655_v14, %v5651_v12  ;;  %v5909_v12 = vld [vmem:[#allocation2 + $0x278] sm:$0xff] }
 0xf67   :  { %v5523_v28 = vadd.f32 %v5516_v50, %v5511_v48  ;;  %v5521_v8 = vpop.permute.xlu0 %5520  ;;  %v5639_v48 = vld [vmem:[#allocation2 + $0xf8] sm:$0xff] }
 0xf68   :  { %v5524_v31 = vadd.f32 %v5521_v8, %v5512_v42  ;;  %v10832_v42 = vpack.c.bf16 %v5630_v19, %v5626_v47  ;;  %v10834_v50 = vpack.c.bf16 %v5639_v48, %v5635_v38  ;;  %v5638_v8 = vld [vmem:[#allocation2 + $0xf0] sm:$0xff]  ;;  %v5671_v47 = vld [vmem:[#allocation2 + $0x1f8] sm:$0xff] }
 0xf69   :  { %v5525_v7 = vmax.f32 %v5523_v28, 0.0  ;;  %v5634_v28 = vld [vmem:[#allocation2 + $0xd0] sm:$0xff] }
 0xf6a   :  { %v5526_v21 = vmax.f32 %v5524_v31, 0.0  ;;  %v5643_v31 = vld [vmem:[#allocation2 + $0x118] sm:$0xff]  ;;  %v10836_v2 = vpack.c.bf16 %v5638_v8, %v5634_v28  ;;  %v5666_v48 = vld [vmem:[#allocation2 + $0x1d0] sm:$0xff] }
 0xf6b   :  { %v5897_v28 = vld [vmem:[#allocation2 + $0x218] sm:$0xff] }
 0xf6c   :  { %v12678_v34 = vpack.c.bf16 %v5526_v21, %v5525_v7  ;;  %v10838_v7 = vpack.c.bf16 %v5647_v56, %v5643_v31  ;;  %v5642_v21 = vld [vmem:[#allocation2 + $0x110] sm:$0xff]  ;;  %v5901_v8 = vld [vmem:[#allocation2 + $0x238] sm:$0xff]  ;;  %v5895_v56 = vld [vmem:[#allocation2 + $0x208] sm:$0xff] }
 0xf6d   :  { %v10889_v31 = vpack.c.bf16 %v5901_v8, %v5897_v28  ;;  %v5906_v28 = vld [vmem:[#allocation2 + $0x260] sm:$0xff]  ;;  %v5911_v8 = vld [vmem:[#allocation2 + $0x288] sm:$0xff] }
 0xf6e   :  { %13497 = vst [vmem:[#allocation40_spill] sm:$0xff] %v12678_v34  ;;  %10789 = vmatpush3.bf16.msra.mxu0 %v12678_v34 }
 0xf6f   :  { %10823 = vmatprep.subr.bf16.mxu0 %v10822_v61  ;;  %v5646_v61 = vld [vmem:[#allocation2 + $0x130] sm:$0xff] }
 0xf70   :  { %v10840_v57 = vpack.c.bf16 %v5646_v61, %v5642_v21  ;;  %v5900_v21 = vld [vmem:[#allocation2 + $0x230] sm:$0xff]  ;;  %v5905_v61 = vld [vmem:[#allocation2 + $0x258] sm:$0xff] }
 0xf71   :  { %10657 = vmatmul.mubr.msk.f32.vlgmr.msra.gmra.mrb[8].mxu0 %vm4661_vm11, %v5534_v27  ;;  %v5650_v27 = vld [vmem:[#allocation2 + $0x150] sm:$0xff] }
 0xf72   :  { %10825 = vmatpush1.bf16.msra.mxu0 %v10824_v60  ;;  %5807 = vmatprep.mubr.f32.mxu0 %v13483_v10  ;;  %v5654_v60 = vld [vmem:[#allocation2 + $0x170] sm:$0xff] }
 0xf73   :  { %10827 = vmatprep.subr.bf16.mxu0 %v10826_v62  ;;  %v5659_v62 = vld [vmem:[#allocation2 + $0x198] sm:$0xff]  ;;  %v10844_v5 = vpack.c.bf16 %v5654_v60, %v5650_v27  ;;  %v5898_v27 = vld [vmem:[#allocation2 + $0x220] sm:$0xff]  ;;  %v5903_v60 = vld [vmem:[#allocation2 + $0x248] sm:$0xff] }
 0xf74   :  { %v10846_v53 = vpack.c.bf16 %v5663_v13, %v5659_v62  ;;  %v10893_v13 = vpack.c.bf16 %v5909_v12, %v5905_v61  ;;  %v5925_v61 = vld [vmem:[#allocation2 + $0x2f8] sm:$0xff] }
 0xf76   :  { %10829 = vmatpush1.bf16.msra.mxu0 %v10828_v15  ;;  %v5662_v15 = vld [vmem:[#allocation2 + $0x1b0] sm:$0xff] }
 0xf77   :  { %10831 = vmatprep.subr.bf16.mxu0 %v10830_v39  ;;  %v5667_v39 = vld [vmem:[#allocation2 + $0x1d8] sm:$0xff]  ;;  %v10848_v19 = vpack.c.bf16 %v5662_v15, %v5658_v63  ;;  %v5908_v63 = vld [vmem:[#allocation2 + $0x270] sm:$0xff] }
 0xf78   :  { %v10850_v38 = vpack.c.bf16 %v5671_v47, %v5667_v39  ;;  %v5913_v39 = vld [vmem:[#allocation2 + $0x298] sm:$0xff] }
 0xf79   :  { %v5917_v47 = vld [vmem:[#allocation2 + $0x2b8] sm:$0xff] }
 0xf7a   :  { %10833 = vmatpush1.bf16.msra.mxu0 %v10832_v42  ;;  %v5670_v42 = vld [vmem:[#allocation2 + $0x1f0] sm:$0xff] }
 0xf7b   :  { %10835 = vmatprep.subr.bf16.mxu0 %v10834_v50  ;;  %v10852_v50 = vpack.c.bf16 %v5670_v42, %v5666_v48 }
 0xf7e   :  { %10837 = vmatpush1.bf16.msra.mxu0 %v10836_v2  ;;  %v5899_v2 = vld [vmem:[#allocation2 + $0x228] sm:$0xff] }
 0xf7f   :  { %10839 = vmatprep.subr.bf16.mxu0 %v10838_v7  ;;  %v5896_v7 = vld [vmem:[#allocation2 + $0x210] sm:$0xff]  ;;  %v10857_v14 = vpack.c.bf16 %v5899_v2, %v5895_v56  ;;  %v5915_v56 = vld [vmem:[#allocation2 + $0x2a8] sm:$0xff] }
 0xf80   :  { %v5912_v2 = vld [vmem:[#allocation2 + $0x290] sm:$0xff] }
 0xf82   :  { %10841 = vmatpush1.bf16.msra.mxu0 %v10840_v57  ;;  %v10891_v57 = vpack.c.bf16 %v5900_v21, %v5896_v7  ;;  %v5916_v7 = vld [vmem:[#allocation2 + $0x2b0] sm:$0xff]  ;;  %v5921_v21 = vld [vmem:[#allocation2 + $0x2d8] sm:$0xff] }
 0xf83   :  { %10843 = vmatprep.subr.bf16.mxu0 %v10842_v3  ;;  %v5894_v3 = vld [vmem:[#allocation2 + $0x200] sm:$0xff] }
 0xf86   :  { %10845 = vmatpush1.bf16.msra.mxu0 %v10844_v5  ;;  %v5907_v5 = vld [vmem:[#allocation2 + $0x268] sm:$0xff] }
 0xf87   :  { %10847 = vmatprep.subr.bf16.mxu0 %v10846_v53  ;;  %v5904_v53 = vld [vmem:[#allocation2 + $0x250] sm:$0xff]  ;;  %v10861_v48 = vpack.c.bf16 %v5907_v5, %v5903_v60  ;;  %v5919_v60 = vld [vmem:[#allocation2 + $0x2c8] sm:$0xff] }
 0xf88   :  { %v10895_v42 = vpack.c.bf16 %v5908_v63, %v5904_v53  ;;  %v5920_v5 = vld [vmem:[#allocation2 + $0x2d0] sm:$0xff]  ;;  %v5929_v63 = vld [vmem:[#allocation2 + $0x318] sm:$0xff] }
 0xf89   :  { %v5924_v53 = vld [vmem:[#allocation2 + $0x2f0] sm:$0xff] }
 0xf8a   :  { %10849 = vmatpush1.bf16.msra.mxu0 %v10848_v19  ;;  %v10335_v19 = vld [vmem:[%s13496_s2 + $0x8] sm:$0xff] }
 0xf8b   :  { %10851 = vmatprep.subr.bf16.mxu0 %v10850_v38  ;;  %v10859_v38 = vpack.c.bf16 %v5898_v27, %v5894_v3  ;;  %v5910_v3 = vld [vmem:[#allocation2 + $0x280] sm:$0xff] }
 0xf8c   :  { %v5914_v27 = vld [vmem:[#allocation2 + $0x2a0] sm:$0xff] }
 0xf8e   :  { %10853 = vmatpush1.bf16.msra.mxu0 %v10852_v50  ;;  %v5902_v50 = vld [vmem:[#allocation2 + $0x240] sm:$0xff] }
 0xf8f   :  { %10890 = vmatprep.subr.bf16.mxu0 %v10889_v31  ;;  %v10897_v31 = vpack.c.bf16 %v5917_v47, %v5913_v39  ;;  %v10863_v12 = vpack.c.bf16 %v5906_v28, %v5902_v50  ;;  %v10867_v39 = vpack.c.bf16 %v5914_v27, %v5910_v3  ;;  %v5931_v28 = vld [vmem:[#allocation2 + $0x328] sm:$0xff] }
 0xf90   :  { %v5939_v27 = vld [vmem:[#allocation2 + $0x368] sm:$0xff] }
0x1044   :  { %v5604_v62 = vpop.f32.mrb[8].mxu0 }
0x1045   :  { %v10658_v15 = vpop.f32.mrb[9].mxu0  ;;  %5737 = vmatmul.mubr.f32.vlgmr.msra.gmra.mrb[8].mxu1 %v5604_v62  ;;  %5808 = vmatmul.mubr.f32.vlgmr.msra.gmra.mrb[10].mxu0 %v5604_v62  ;;  %v10901_v62 = vpack.c.bf16 %v5925_v61, %v5921_v21 }
0x1046   :  { %10856 = vmatpush3.bf16.msra.mxu1 %v12678_v34  ;;  %10663 = vmatprep.mubr.msk.f32.mxu1 %vm11498_vm12, %v13483_v10  ;;  %v5933_v15 = vld [vmem:[#allocation2 + $0x338] sm:$0xff] }
0x1047   :  { %10858 = vmatprep.subr.bf16.mxu1 %v10857_v14  ;;  %10892 = vmatpush1.bf16.msra.mxu0 %v10891_v57  ;;  %v10865_v14 = vpack.c.bf16 %v5915_v56, %v5911_v8  ;;  %v10899_v57 = vpack.c.bf16 %v5916_v7, %v5912_v2  ;;  %v10905_v50 = vpack.c.bf16 %v5933_v15, %v5929_v63  ;;  %v5928_v8 = vld [vmem:[#allocation2 + $0x310] sm:$0xff]  ;;  %v5937_v56 = vld [vmem:[#allocation2 + $0x358] sm:$0xff] }
0x1048   :  { %10894 = vmatprep.subr.bf16.mxu0 %v10893_v13  ;;  %6093 = vmatprep.mubr.f32.mxu0 %v13483_v10  ;;  %v5923_v13 = vld [vmem:[#allocation2 + $0x2e8] sm:$0xff]  ;;  %v5941_v2 = vld [vmem:[#allocation2 + $0x378] sm:$0xff] }
0x1049   :  { %10664 = vmatmul.mubr.msk.f32.vlgmr.msra.gmra.mrb[10].mxu1 %vm4661_vm11, %v10335_v19  ;;  %v10869_v47 = vpack.c.bf16 %v5923_v13, %v5919_v60  ;;  %v10903_v19 = vpack.c.bf16 %v5924_v53, %v5920_v5  ;;  %v10909_v3 = vpack.c.bf16 %v5941_v2, %v5937_v56  ;;  %v5936_v60 = vld [vmem:[#allocation2 + $0x350] sm:$0xff]  ;;  %v5945_v13 = vld [vmem:[#allocation2 + $0x398] sm:$0xff] }
0x104a   :  { %10860 = vmatpush1.bf16.msra.mxu1 %v10859_v38  ;;  %6022 = vmatprep.mubr.f32.mxu1 %v13483_v10  ;;  %v5918_v38 = vld [vmem:[#allocation2 + $0x2c0] sm:$0xff]  ;;  %v5949_v5 = vld [vmem:[#allocation2 + $0x3b8] sm:$0xff] }
0x104b   :  { %10862 = vmatprep.subr.bf16.mxu1 %v10861_v48  ;;  %10896 = vmatpush1.bf16.msra.mxu0 %v10895_v42  ;;  %v5922_v48 = vld [vmem:[#allocation2 + $0x2e0] sm:$0xff]  ;;  %v5927_v42 = vld [vmem:[#allocation2 + $0x308] sm:$0xff] }
0x104c   :  { %10898 = vmatprep.subr.bf16.mxu0 %v10897_v31  ;;  %v5932_v31 = vld [vmem:[#allocation2 + $0x330] sm:$0xff]  ;;  %v10871_v7 = vpack.c.bf16 %v5922_v48, %v5918_v38  ;;  %v10873_v21 = vpack.c.bf16 %v5931_v28, %v5927_v42  ;;  %v10913_v38 = vpack.c.bf16 %v5949_v5, %v5945_v13  ;;  %v5947_v48 = vld [vmem:[#allocation2 + $0x3a8] sm:$0xff]  ;;  %v5953_v28 = vld [vmem:[#allocation2 + $0x3d8] sm:$0xff] }
0x104d   :  { %v10907_v61 = vpack.c.bf16 %v5932_v31, %v5928_v8  ;;  %v5944_v42 = vld [vmem:[#allocation2 + $0x390] sm:$0xff]  ;;  %v5957_v8 = vld [vmem:[#allocation2 + $0x3f8] sm:$0xff]  ;;  %v5950_v13 = vld [vmem:[#allocation2 + $0x3c0] sm:$0xff] }
0x104e   :  { %10864 = vmatpush1.bf16.msra.mxu1 %v10863_v12  ;;  %v5926_v12 = vld [vmem:[#allocation2 + $0x300] sm:$0xff] }
0x104f   :  { %10866 = vmatprep.subr.bf16.mxu1 %v10865_v14  ;;  %10900 = vmatpush1.bf16.msra.mxu0 %v10899_v57  ;;  %v5930_v14 = vld [vmem:[#allocation2 + $0x320] sm:$0xff]  ;;  %v5935_v57 = vld [vmem:[#allocation2 + $0x348] sm:$0xff] }
0x1050   :  { %10902 = vmatprep.subr.bf16.mxu0 %v10901_v62  ;;  %v5940_v62 = vld [vmem:[#allocation2 + $0x370] sm:$0xff]  ;;  %v10875_v53 = vpack.c.bf16 %v5930_v14, %v5926_v12  ;;  %v10877_v63 = vpack.c.bf16 %v5939_v27, %v5935_v57  ;;  %v10917_v12 = vpack.c.bf16 %v5957_v8, %v5953_v28  ;;  %v5955_v14 = vld [vmem:[#allocation2 + $0x3e8] sm:$0xff]  ;;  %v5954_v5 = vld [vmem:[#allocation2 + $0x3e0] sm:$0xff] }
0x1051   :  { %v10911_v15 = vpack.c.bf16 %v5940_v62, %v5936_v60  ;;  %v5952_v57 = vld [vmem:[#allocation2 + $0x3d0] sm:$0xff] }
0x1052   :  { %10868 = vmatpush1.bf16.msra.mxu1 %v10867_v39  ;;  %v5934_v39 = vld [vmem:[#allocation2 + $0x340] sm:$0xff] }
0x1053   :  { %10870 = vmatprep.subr.bf16.mxu1 %v10869_v47  ;;  %10904 = vmatpush1.bf16.msra.mxu0 %v10903_v19  ;;  %v5938_v47 = vld [vmem:[#allocation2 + $0x360] sm:$0xff]  ;;  %v5943_v19 = vld [vmem:[#allocation2 + $0x388] sm:$0xff] }
0x1054   :  { %10906 = vmatprep.subr.bf16.mxu0 %v10905_v50  ;;  %v5948_v50 = vld [vmem:[#allocation2 + $0x3b0] sm:$0xff]  ;;  %v10879_v31 = vpack.c.bf16 %v5938_v47, %v5934_v39  ;;  %v10881_v56 = vpack.c.bf16 %v5947_v48, %v5943_v19  ;;  %v6180_v47 = vld [vmem:[#allocation2 + $0x400] sm:$0xff]  ;;  %v6187_v48 = vld [vmem:[#allocation2 + $0x438] sm:$0xff] }
0x1055   :  { %v10915_v2 = vpack.c.bf16 %v5948_v50, %v5944_v42  ;;  %v6184_v19 = vld [vmem:[#allocation2 + $0x420] sm:$0xff]  ;;  %v6189_v42 = vld [vmem:[#allocation2 + $0x448] sm:$0xff] }
0x1056   :  { %10872 = vmatpush1.bf16.msra.mxu1 %v10871_v7  ;;  %v5942_v7 = vld [vmem:[#allocation2 + $0x380] sm:$0xff]  ;;  %v6193_v50 = vld [vmem:[#allocation2 + $0x468] sm:$0xff]  ;;  %v10926_v28 = vpack.c.bf16 %v6184_v19, %v6180_v47  ;;  %v6199_v19 = vld [vmem:[#allocation2 + $0x498] sm:$0xff] }
0x1057   :  { %10874 = vmatprep.subr.bf16.mxu1 %v10873_v21  ;;  %10908 = vmatpush1.bf16.msra.mxu0 %v10907_v61  ;;  %v5946_v21 = vld [vmem:[#allocation2 + $0x3a0] sm:$0xff]  ;;  %v5951_v61 = vld [vmem:[#allocation2 + $0x3c8] sm:$0xff] }
0x1058   :  { %10910 = vmatprep.subr.bf16.mxu0 %v10909_v3  ;;  %v5956_v3 = vld [vmem:[#allocation2 + $0x3f0] sm:$0xff]  ;;  %v10883_v27 = vpack.c.bf16 %v5946_v21, %v5942_v7  ;;  %v10885_v60 = vpack.c.bf16 %v5955_v14, %v5951_v61  ;;  %v10928_v21 = vpack.c.bf16 %v6193_v50, %v6189_v42  ;;  %v6192_v61 = vld [vmem:[#allocation2 + $0x460] sm:$0xff]  ;;  %v6195_v14 = vld [vmem:[#allocation2 + $0x478] sm:$0xff] }
0x1059   :  { %v10919_v62 = vpack.c.bf16 %v5956_v3, %v5952_v57  ;;  %v6197_v3 = vld [vmem:[#allocation2 + $0x488] sm:$0xff]  ;;  %v6200_v47 = vld [vmem:[#allocation2 + $0x4a0] sm:$0xff] }
0x105a   :  { %10876 = vmatpush1.bf16.msra.mxu1 %v10875_v53  ;;  %v10887_v53 = vpack.c.bf16 %v5954_v5, %v5950_v13  ;;  %v6209_v42 = vld [vmem:[#allocation2 + $0x4e8] sm:$0xff] }
0x105b   :  { %10878 = vmatprep.subr.bf16.mxu1 %v10877_v63  ;;  %10912 = vmatpush1.bf16.msra.mxu0 %v10911_v15  ;;  %v6181_v63 = vld [vmem:[#allocation2 + $0x408] sm:$0xff] }
0x105c   :  { %10914 = vmatprep.subr.bf16.mxu0 %v10913_v38  ;;  %v6185_v15 = vld [vmem:[#allocation2 + $0x428] sm:$0xff]  ;;  %v6183_v38 = vld [vmem:[#allocation2 + $0x418] sm:$0xff] }
0x105d   :  { %v10924_v39 = vpack.c.bf16 %v6185_v15, %v6181_v63  ;;  %v10956_v8 = vpack.c.bf16 %v6187_v48, %v6183_v38  ;;  %v6194_v63 = vld [vmem:[#allocation2 + $0x470] sm:$0xff]  ;;  %v6196_v15 = vld [vmem:[#allocation2 + $0x480] sm:$0xff]  ;;  %v6203_v38 = vld [vmem:[#allocation2 + $0x4b8] sm:$0xff] }
0x105e   :  { %10880 = vmatpush1.bf16.msra.mxu1 %v10879_v31  ;;  %v6182_v31 = vld [vmem:[#allocation2 + $0x410] sm:$0xff]  ;;  %v6205_v48 = vld [vmem:[#allocation2 + $0x4c8] sm:$0xff] }
0x105f   :  { %10882 = vmatprep.subr.bf16.mxu1 %v10881_v56  ;;  %10916 = vmatpush1.bf16.msra.mxu0 %v10915_v2  ;;  %v6186_v56 = vld [vmem:[#allocation2 + $0x430] sm:$0xff]  ;;  %v6188_v2 = vld [vmem:[#allocation2 + $0x440] sm:$0xff] }
0x1060   :  { %10918 = vmatprep.subr.bf16.mxu0 %v10917_v12  ;;  %v6191_v12 = vld [vmem:[#allocation2 + $0x458] sm:$0xff]  ;;  %v10930_v13 = vpack.c.bf16 %v6192_v61, %v6188_v2  ;;  %v6204_v2 = vld [vmem:[#allocation2 + $0x4c0] sm:$0xff] }
0x1061   :  { %v10960_v5 = vpack.c.bf16 %v6195_v14, %v6191_v12  ;;  %v6207_v61 = vld [vmem:[#allocation2 + $0x4d8] sm:$0xff]  ;;  %v6213_v14 = vld [vmem:[#allocation2 + $0x508] sm:$0xff] }
0x1062   :  { %10884 = vmatpush1.bf16.msra.mxu1 %v10883_v27  ;;  %v6201_v27 = vld [vmem:[#allocation2 + $0x4a8] sm:$0xff]  ;;  %v6211_v12 = vld [vmem:[#allocation2 + $0x4f8] sm:$0xff] }
0x1063   :  { %10886 = vmatprep.subr.bf16.mxu1 %v10885_v60  ;;  %10920 = vmatpush1.bf16.msra.mxu0 %v10919_v62  ;;  %v10337_v60 = vld [vmem:[%s13496_s2 + $0x10] sm:$0xff]  ;;  %v10958_v62 = vpack.c.bf16 %v6186_v56, %v6182_v31 }
0x1064   :  { %10921 = vmatprep.subr.bf16.mxu0 %v13425_v11  ;;  %v6198_v31 = vld [vmem:[#allocation2 + $0x490] sm:$0xff] }
0x1065   :  { %v6202_v56 = vld [vmem:[#allocation2 + $0x4b0] sm:$0xff] }
0x1066   :  { %10888 = vmatpush1.bf16.msra.mxu1 %v10887_v53  ;;  %v6190_v53 = vld [vmem:[#allocation2 + $0x450] sm:$0xff] }
0x1067   :  { %10925 = vmatprep.subr.bf16.mxu1 %v10924_v39  ;;  %v10932_v39 = vpack.c.bf16 %v6201_v27, %v6197_v3  ;;  %v10962_v50 = vpack.c.bf16 %v6194_v63, %v6190_v53  ;;  %v10966_v3 = vpack.c.bf16 %v6202_v56, %v6198_v31  ;;  %v6216_v63 = vld [vmem:[#allocation2 + $0x520] sm:$0xff] }
0x1068   :  { %v6224_v56 = vld [vmem:[#allocation2 + $0x560] sm:$0xff] }
0x111c   :  { %v5889_v7 = vpop.f32.mrb[10].mxu1 }
0x111d   :  { %v10665_v57 = vpop.f32.mrb[11].mxu1  ;;  %6023 = vmatmul.mubr.f32.vlgmr.msra.gmra.mrb[8].mxu1 %v5889_v7  ;;  %6094 = vmatmul.mubr.f32.vlgmr.msra.gmra.mrb[10].mxu0 %v5889_v7  ;;  %v10936_v7 = vpack.c.bf16 %v6209_v42, %v6205_v48 }
0x111e   :  { %10923 = vmatpush3.bf16.msra.mxu0 %v12678_v34  ;;  %10670 = vmatprep.mubr.msk.f32.mxu0 %vm11498_vm12, %v13483_v10  ;;  %v6217_v57 = vld [vmem:[#allocation2 + $0x528] sm:$0xff] }
0x111f   :  { %10927 = vmatpush1.bf16.msra.mxu1 %v10926_v28  ;;  %10957 = vmatprep.subr.bf16.mxu0 %v10956_v8  ;;  %v10934_v28 = vpack.c.bf16 %v6200_v47, %v6196_v15  ;;  %v10964_v8 = vpack.c.bf16 %v6203_v38, %v6199_v19  ;;  %v10940_v53 = vpack.c.bf16 %v6217_v57, %v6213_v14  ;;  %v6215_v15 = vld [vmem:[#allocation2 + $0x518] sm:$0xff]  ;;  %v6221_v47 = vld [vmem:[#allocation2 + $0x548] sm:$0xff] }
0x1120   :  { %10929 = vmatprep.subr.bf16.mxu1 %v10928_v21  ;;  %6308 = vmatprep.mubr.f32.mxu1 %v13483_v10  ;;  %v6208_v21 = vld [vmem:[#allocation2 + $0x4e0] sm:$0xff]  ;;  %v6225_v19 = vld [vmem:[#allocation2 + $0x568] sm:$0xff] }
0x1121   :  { %10671 = vmatmul.mubr.msk.f32.vlgmr.msra.gmra.mrb[12].mxu0 %vm4661_vm11, %v10337_v60  ;;  %v10938_v27 = vpack.c.bf16 %v6208_v21, %v6204_v2  ;;  %v10968_v60 = vpack.c.bf16 %v6211_v12, %v6207_v61  ;;  %v10944_v31 = vpack.c.bf16 %v6225_v19, %v6221_v47  ;;  %v6223_v2 = vld [vmem:[#allocation2 + $0x558] sm:$0xff]  ;;  %v6229_v21 = vld [vmem:[#allocation2 + $0x588] sm:$0xff] }
0x1122   :  { %10959 = vmatpush1.bf16.msra.mxu0 %v10958_v62  ;;  %6379 = vmatprep.mubr.f32.mxu0 %v13483_v10  ;;  %v6206_v62 = vld [vmem:[#allocation2 + $0x4d0] sm:$0xff]  ;;  %v6233_v61 = vld [vmem:[#allocation2 + $0x5a8] sm:$0xff] }
0x1123   :  { %10931 = vmatpush1.bf16.msra.mxu1 %v10930_v13  ;;  %10961 = vmatprep.subr.bf16.mxu0 %v10960_v5  ;;  %v6210_v13 = vld [vmem:[#allocation2 + $0x4f0] sm:$0xff]  ;;  %v6212_v5 = vld [vmem:[#allocation2 + $0x500] sm:$0xff] }
0x1124   :  { %10933 = vmatprep.subr.bf16.mxu1 %v10932_v39  ;;  %v6219_v39 = vld [vmem:[#allocation2 + $0x538] sm:$0xff]  ;;  %v10970_v38 = vpack.c.bf16 %v6210_v13, %v6206_v62  ;;  %v10942_v48 = vpack.c.bf16 %v6216_v63, %v6212_v5  ;;  %v10948_v62 = vpack.c.bf16 %v6233_v61, %v6229_v21  ;;  %v6232_v13 = vld [vmem:[#allocation2 + $0x5a0] sm:$0xff]  ;;  %v6237_v63 = vld [vmem:[#allocation2 + $0x5c8] sm:$0xff] }
0x1125   :  { %v10972_v42 = vpack.c.bf16 %v6219_v39, %v6215_v15  ;;  %v6231_v5 = vld [vmem:[#allocation2 + $0x598] sm:$0xff]  ;;  %v6241_v15 = vld [vmem:[#allocation2 + $0x5e8] sm:$0xff]  ;;  %v6238_v21 = vld [vmem:[#allocation2 + $0x5d0] sm:$0xff] }
0x1126   :  { %10963 = vmatpush1.bf16.msra.mxu0 %v10962_v50  ;;  %v6214_v50 = vld [vmem:[#allocation2 + $0x510] sm:$0xff] }
0x1127   :  { %10935 = vmatpush1.bf16.msra.mxu1 %v10934_v28  ;;  %10965 = vmatprep.subr.bf16.mxu0 %v10964_v8  ;;  %v6218_v28 = vld [vmem:[#allocation2 + $0x530] sm:$0xff]  ;;  %v6220_v8 = vld [vmem:[#allocation2 + $0x540] sm:$0xff] }
0x1128   :  { %10937 = vmatprep.subr.bf16.mxu1 %v10936_v7  ;;  %v6227_v7 = vld [vmem:[#allocation2 + $0x578] sm:$0xff]  ;;  %v10974_v12 = vpack.c.bf16 %v6218_v28, %v6214_v50  ;;  %v10946_v14 = vpack.c.bf16 %v6224_v56, %v6220_v8  ;;  %v10952_v50 = vpack.c.bf16 %v6241_v15, %v6237_v63  ;;  %v6240_v28 = vld [vmem:[#allocation2 + $0x5e0] sm:$0xff]  ;;  %v6242_v61 = vld [vmem:[#allocation2 + $0x5f0] sm:$0xff] }
0x1129   :  { %v10976_v57 = vpack.c.bf16 %v6227_v7, %v6223_v2  ;;  %v6239_v8 = vld [vmem:[#allocation2 + $0x5d8] sm:$0xff]  ;;  %v6466_v15 = vld [vmem:[#allocation2 + $0x600] sm:$0xff] }
0x112a   :  { %10967 = vmatpush1.bf16.msra.mxu0 %v10966_v3  ;;  %v6222_v3 = vld [vmem:[#allocation2 + $0x550] sm:$0xff] }
0x112b   :  { %10939 = vmatpush1.bf16.msra.mxu1 %v10938_v27  ;;  %10969 = vmatprep.subr.bf16.mxu0 %v10968_v60  ;;  %v6226_v27 = vld [vmem:[#allocation2 + $0x570] sm:$0xff]  ;;  %v6228_v60 = vld [vmem:[#allocation2 + $0x580] sm:$0xff] }
0x112c   :  { %10941 = vmatprep.subr.bf16.mxu1 %v10940_v53  ;;  %v6235_v53 = vld [vmem:[#allocation2 + $0x5b8] sm:$0xff]  ;;  %v10978_v39 = vpack.c.bf16 %v6226_v27, %v6222_v3  ;;  %v10950_v47 = vpack.c.bf16 %v6232_v13, %v6228_v60  ;;  %v6467_v27 = vld [vmem:[#allocation2 + $0x608] sm:$0xff]  ;;  %v6472_v13 = vld [vmem:[#allocation2 + $0x630] sm:$0xff] }
0x112d   :  { %v10980_v19 = vpack.c.bf16 %v6235_v53, %v6231_v5  ;;  %v6471_v60 = vld [vmem:[#allocation2 + $0x628] sm:$0xff]  ;;  %v6477_v5 = vld [vmem:[#allocation2 + $0x658] sm:$0xff] }
0x112e   :  { %10971 = vmatpush1.bf16.msra.mxu0 %v10970_v38  ;;  %v6230_v38 = vld [vmem:[#allocation2 + $0x590] sm:$0xff]  ;;  %v6481_v53 = vld [vmem:[#allocation2 + $0x678] sm:$0xff]  ;;  %v10991_v63 = vpack.c.bf16 %v6471_v60, %v6467_v27 }
0x112f   :  { %10943 = vmatpush1.bf16.msra.mxu1 %v10942_v48  ;;  %10973 = vmatprep.subr.bf16.mxu0 %v10972_v42  ;;  %v6234_v48 = vld [vmem:[#allocation2 + $0x5b0] sm:$0xff]  ;;  %v6236_v42 = vld [vmem:[#allocation2 + $0x5c0] sm:$0xff] }
0x1130   :  { %10945 = vmatprep.subr.bf16.mxu1 %v10944_v31  ;;  %v6243_v31 = vld [vmem:[#allocation2 + $0x5f8] sm:$0xff]  ;;  %v10982_v56 = vpack.c.bf16 %v6234_v48, %v6230_v38  ;;  %v10954_v2 = vpack.c.bf16 %v6240_v28, %v6236_v42  ;;  %v6479_v48 = vld [vmem:[#allocation2 + $0x668] sm:$0xff]  ;;  %v11027_v42 = vpack.c.bf16 %v6481_v53, %v6477_v5  ;;  %v6480_v28 = vld [vmem:[#allocation2 + $0x670] sm:$0xff] }
0x1131   :  { %v10984_v7 = vpack.c.bf16 %v6243_v31, %v6239_v8  ;;  %v6485_v31 = vld [vmem:[#allocation2 + $0x698] sm:$0xff]  ;;  %v6484_v60 = vld [vmem:[#allocation2 + $0x690] sm:$0xff] }
0x1132   :  { %10975 = vmatpush1.bf16.msra.mxu0 %v10974_v12  ;;  %v10986_v12 = vpack.c.bf16 %v6242_v61, %v6238_v21  ;;  %v6474_v61 = vld [vmem:[#allocation2 + $0x640] sm:$0xff]  ;;  %v6497_v5 = vld [vmem:[#allocation2 + $0x6f8] sm:$0xff] }
0x1133   :  { %10947 = vmatpush1.bf16.msra.mxu1 %v10946_v14  ;;  %10977 = vmatprep.subr.bf16.mxu0 %v10976_v57  ;;  %v6469_v14 = vld [vmem:[#allocation2 + $0x618] sm:$0xff] }
0x1134   :  { %10949 = vmatprep.subr.bf16.mxu1 %v10948_v62  ;;  %v6473_v57 = vld [vmem:[#allocation2 + $0x638] sm:$0xff]  ;;  %v6468_v62 = vld [vmem:[#allocation2 + $0x610] sm:$0xff] }
0x1135   :  { %v11023_v3 = vpack.c.bf16 %v6473_v57, %v6469_v14  ;;  %v6483_v57 = vld [vmem:[#allocation2 + $0x688] sm:$0xff] }
0x1136   :  { %10979 = vmatpush1.bf16.msra.mxu0 %v10978_v39  ;;  %v6470_v39 = vld [vmem:[#allocation2 + $0x620] sm:$0xff] }
0x1137   :  { %10951 = vmatpush1.bf16.msra.mxu1 %v10950_v47  ;;  %10981 = vmatprep.subr.bf16.mxu0 %v10980_v19  ;;  %v11025_v47 = vpack.c.bf16 %v6472_v13, %v6468_v62  ;;  %v6475_v19 = vld [vmem:[#allocation2 + $0x648] sm:$0xff]  ;;  %v6488_v62 = vld [vmem:[#allocation2 + $0x6b0] sm:$0xff]  ;;  %v6493_v13 = vld [vmem:[#allocation2 + $0x6d8] sm:$0xff] }
0x1138   :  { %10953 = vmatprep.subr.bf16.mxu1 %v10952_v50  ;;  %v6476_v50 = vld [vmem:[#allocation2 + $0x650] sm:$0xff]  ;;  %v10995_v21 = vpack.c.bf16 %v6479_v48, %v6475_v19  ;;  %v6491_v19 = vld [vmem:[#allocation2 + $0x6c8] sm:$0xff]  ;;  %v11035_v48 = vpack.c.bf16 %v6497_v5, %v6493_v13  ;;  %v6498_v5 = vld [vmem:[#allocation2 + $0x700] sm:$0xff] }
0x1139   :  { %v11029_v14 = vpack.c.bf16 %v6480_v28, %v6476_v50  ;;  %v6496_v50 = vld [vmem:[#allocation2 + $0x6f0] sm:$0xff]  ;;  %v6501_v28 = vld [vmem:[#allocation2 + $0x718] sm:$0xff] }
0x113a   :  { %10983 = vmatpush1.bf16.msra.mxu0 %v10982_v56  ;;  %v6489_v56 = vld [vmem:[#allocation2 + $0x6b8] sm:$0xff] }
0x113b   :  { %10955 = vmatpush1.bf16.msra.mxu1 %v10954_v2  ;;  %10985 = vmatprep.subr.bf16.mxu0 %v10984_v7  ;;  %v10339_v2 = vld [vmem:[%s13496_s2 + $0x18] sm:$0xff]  ;;  %v10993_v7 = vpack.c.bf16 %v6470_v39, %v6466_v15  ;;  %v11031_v27 = vpack.c.bf16 %v6489_v56, %v6485_v31  ;;  %v6482_v15 = vld [vmem:[#allocation2 + $0x680] sm:$0xff] }
0x113c   :  { %10988 = vmatprep.subr.bf16.mxu1 %v13425_v11  ;;  %v6486_v39 = vld [vmem:[#allocation2 + $0x6a0] sm:$0xff] }
0x113d   :  { %v11001_v31 = vpack.c.bf16 %v6486_v39, %v6482_v15  ;;  %v6507_v15 = vld [vmem:[#allocation2 + $0x748] sm:$0xff] }
0x113e   :  { %10987 = vmatpush1.bf16.msra.mxu0 %v10986_v12  ;;  %v6478_v12 = vld [vmem:[#allocation2 + $0x660] sm:$0xff]  ;;  %v6511_v39 = vld [vmem:[#allocation2 + $0x768] sm:$0xff] }
0x113f   :  { %11024 = vmatprep.subr.bf16.mxu0 %v11023_v3  ;;  %v6487_v3 = vld [vmem:[#allocation2 + $0x6a8] sm:$0xff]  ;;  %v10997_v53 = vpack.c.bf16 %v6478_v12, %v6474_v61 }
0x1140   :  { %v6499_v61 = vld [vmem:[#allocation2 + $0x708] sm:$0xff] }
0x1141   :  { %v6503_v12 = vld [vmem:[#allocation2 + $0x728] sm:$0xff] }
0x1142   :  { %v11007_v13 = vpack.c.bf16 %v6503_v12, %v6499_v61  ;;  %v6516_v61 = vld [vmem:[#allocation2 + $0x790] sm:$0xff] }
0x1143   :  { %v6520_v12 = vld [vmem:[#allocation2 + $0x7b0] sm:$0xff] }
0x11f4   :  { %v6175_v38 = vpop.f32.mrb[12].mxu0 }
0x11f5   :  { %v10672_v8 = vpop.f32.mrb[13].mxu0  ;;  %6309 = vmatmul.mubr.f32.vlgmr.msra.gmra.mrb[8].mxu1 %v6175_v38  ;;  %6380 = vmatmul.mubr.f32.vlgmr.msra.gmra.mrb[10].mxu0 %v6175_v38  ;;  %v6495_v38 = vld [vmem:[#allocation2 + $0x6e8] sm:$0xff] }
0x11f6   :  { %10990 = vmatpush3.bf16.msra.mxu1 %v12678_v34  ;;  %10677 = vmatprep.mubr.msk.f32.mxu1 %vm11498_vm12, %v13483_v10  ;;  %v6505_v8 = vld [vmem:[#allocation2 + $0x738] sm:$0xff]  ;;  %v11003_v56 = vpack.c.bf16 %v6495_v38, %v6491_v19  ;;  %v6508_v19 = vld [vmem:[#allocation2 + $0x750] sm:$0xff] }
0x11f7   :  { %10992 = vmatprep.subr.bf16.mxu1 %v10991_v63  ;;  %11026 = vmatpush1.bf16.msra.mxu0 %v11025_v47  ;;  %v10999_v63 = vpack.c.bf16 %v6487_v3, %v6483_v57  ;;  %v11033_v47 = vpack.c.bf16 %v6488_v62, %v6484_v60  ;;  %v6500_v57 = vld [vmem:[#allocation2 + $0x710] sm:$0xff]  ;;  %v6513_v60 = vld [vmem:[#allocation2 + $0x778] sm:$0xff] }
0x11f8   :  { %11028 = vmatprep.subr.bf16.mxu0 %v11027_v42  ;;  %6665 = vmatprep.mubr.f32.mxu0 %v13483_v10  ;;  %v6492_v42 = vld [vmem:[#allocation2 + $0x6d0] sm:$0xff] }
0x11f9   :  { %10678 = vmatmul.mubr.msk.f32.vlgmr.msra.gmra.mrb[12].mxu1 %vm4661_vm11, %v10339_v2  ;;  %v6490_v2 = vld [vmem:[#allocation2 + $0x6c0] sm:$0xff]  ;;  %v6504_v3 = vld [vmem:[#allocation2 + $0x730] sm:$0xff] }
0x11fa   :  { %10994 = vmatpush1.bf16.msra.mxu1 %v10993_v7  ;;  %6594 = vmatprep.mubr.f32.mxu1 %v13483_v10  ;;  %v6494_v7 = vld [vmem:[#allocation2 + $0x6e0] sm:$0xff]  ;;  %v6512_v38 = vld [vmem:[#allocation2 + $0x770] sm:$0xff] }
0x11fb   :  { %10996 = vmatprep.subr.bf16.mxu1 %v10995_v21  ;;  %11030 = vmatpush1.bf16.msra.mxu0 %v11029_v14  ;;  %v11037_v21 = vpack.c.bf16 %v6496_v50, %v6492_v42  ;;  %v11039_v14 = vpack.c.bf16 %v6505_v8, %v6501_v28  ;;  %v11005_v62 = vpack.c.bf16 %v6494_v7, %v6490_v2  ;;  %v6521_v42 = vld [vmem:[#allocation2 + $0x7b8] sm:$0xff]  ;;  %v6506_v8 = vld [vmem:[#allocation2 + $0x740] sm:$0xff]  ;;  %v6515_v2 = vld [vmem:[#allocation2 + $0x788] sm:$0xff] }
0x11fc   :  { %11032 = vmatprep.subr.bf16.mxu0 %v11031_v27  ;;  %v6509_v27 = vld [vmem:[#allocation2 + $0x758] sm:$0xff]  ;;  %v11011_v28 = vpack.c.bf16 %v6511_v39, %v6507_v15  ;;  %v6519_v7 = vld [vmem:[#allocation2 + $0x7a8] sm:$0xff]  ;;  %v6524_v15 = vld [vmem:[#allocation2 + $0x7d0] sm:$0xff] }
0x11fd   :  { %v6528_v39 = vld [vmem:[#allocation2 + $0x7f0] sm:$0xff] }
0x11fe   :  { %10998 = vmatpush1.bf16.msra.mxu1 %v10997_v53  ;;  %v6502_v53 = vld [vmem:[#allocation2 + $0x720] sm:$0xff] }
0x11ff   :  { %11000 = vmatprep.subr.bf16.mxu1 %v10999_v63  ;;  %11034 = vmatpush1.bf16.msra.mxu0 %v11033_v47  ;;  %v11041_v63 = vpack.c.bf16 %v6504_v3, %v6500_v57  ;;  %v11043_v47 = vpack.c.bf16 %v6513_v60, %v6509_v27  ;;  %v11009_v50 = vpack.c.bf16 %v6502_v53, %v6498_v5  ;;  %v6529_v57 = vld [vmem:[#allocation2 + $0x7f8] sm:$0xff]  ;;  %v6514_v60 = vld [vmem:[#allocation2 + $0x780] sm:$0xff]  ;;  %v6523_v5 = vld [vmem:[#allocation2 + $0x7c8] sm:$0xff] }
0x1200   :  { %11036 = vmatprep.subr.bf16.mxu0 %v11035_v48  ;;  %v6517_v48 = vld [vmem:[#allocation2 + $0x798] sm:$0xff]  ;;  %v11015_v27 = vpack.c.bf16 %v6519_v7, %v6515_v2  ;;  %v6527_v53 = vld [vmem:[#allocation2 + $0x7e8] sm:$0xff] }
0x1202   :  { %11002 = vmatpush1.bf16.msra.mxu1 %v11001_v31  ;;  %v6510_v31 = vld [vmem:[#allocation2 + $0x760] sm:$0xff] }
0x1203   :  { %11004 = vmatprep.subr.bf16.mxu1 %v11003_v56  ;;  %11038 = vmatpush1.bf16.msra.mxu0 %v11037_v21  ;;  %v11045_v56 = vpack.c.bf16 %v6512_v38, %v6508_v19  ;;  %v11047_v21 = vpack.c.bf16 %v6521_v42, %v6517_v48  ;;  %v11013_v3 = vpack.c.bf16 %v6510_v31, %v6506_v8  ;;  %v6522_v38 = vld [vmem:[#allocation2 + $0x7c0] sm:$0xff]  ;;  %v5531_v31 = vpop.permute.xlu1 %5530 }
0x1204   :  { %11040 = vmatprep.subr.bf16.mxu0 %v11039_v14  ;;  %v6525_v14 = vld [vmem:[#allocation2 + $0x7d8] sm:$0xff]  ;;  %v11019_v19 = vpack.c.bf16 %v6527_v53, %v6523_v5  ;;  %v6526_v48 = vld [vmem:[#allocation2 + $0x7e0] sm:$0xff]  ;;  %v11053_v42 = vpack.c.bf16 %v6528_v39, %v6524_v15 }
0x1206   :  { %11006 = vmatpush1.bf16.msra.mxu1 %v11005_v62  ;;  %v6518_v62 = vld [vmem:[#allocation2 + $0x7a0] sm:$0xff] }
0x1207   :  { %11008 = vmatprep.subr.bf16.mxu1 %v11007_v13  ;;  %11042 = vmatpush1.bf16.msra.mxu0 %v11041_v63  ;;  %v11049_v13 = vpack.c.bf16 %v6520_v12, %v6516_v61  ;;  %v11051_v63 = vpack.c.bf16 %v6529_v57, %v6525_v14  ;;  %v6676_v57 = vld [vmem:[%s13499_s7] sm:$0xff] }
0x1208   :  { %11044 = vmatprep.subr.bf16.mxu0 %v11043_v47  ;;  %v11017_v47 = vpack.c.bf16 %v6518_v62, %v6514_v60 }
0x120a   :  { %11010 = vmatpush1.bf16.msra.mxu1 %v11009_v50  ;;  %v11021_v50 = vpack.c.bf16 %v6526_v48, %v6522_v38 }
0x120b   :  { %11012 = vmatprep.subr.bf16.mxu1 %v11011_v28  ;;  %11046 = vmatpush1.bf16.msra.mxu0 %v11045_v56 }
0x120c   :  { %11048 = vmatprep.subr.bf16.mxu0 %v11047_v21 }
0x120e   :  { %11014 = vmatpush1.bf16.msra.mxu1 %v11013_v3 }
0x120f   :  { %11016 = vmatprep.subr.bf16.mxu1 %v11015_v27  ;;  %11050 = vmatpush1.bf16.msra.mxu0 %v11049_v13  ;;  %v6684_v27 = vpop.permute.xlu0 %6683 }
0x1210   :  { %11052 = vmatprep.subr.bf16.mxu0 %v11051_v63 }
0x1212   :  { %11018 = vmatpush1.bf16.msra.mxu1 %v11017_v47 }
0x1213   :  { %11020 = vmatprep.subr.bf16.mxu1 %v11019_v19  ;;  %11054 = vmatpush1.bf16.msra.mxu0 %v11053_v42  ;;  %v6688_v60 = vpop.permute.xlu0 %6687 }
0x1214   :  { %v6703_v6 = vsel %vm198_vm0, %v6684_v27, %v6688_v60 }
0x1215   :  { %v6708_v55 = vmul.f32 %v6703_v6, %v11797_v17 }
0x1216   :  { %11022 = vmatpush1.bf16.msra.mxu1 %v11021_v50 }
0x1217   :  { %v6696_v62 = vpop.permute.xlu0 %6695 }
0x1218   :  { %v6705_v51 = vsel %vm198_vm0, %v6696_v62, %v6684_v27 }
0x1219   :  { %v6707_v6 = vmul.f32 %v6705_v51, %v11801_v18 }
0x121b   :  { %v6692_v13 = vpop.permute.xlu0 %6691 }
0x121c   :  { %v6701_v0 = vsel %vm198_vm0, %v6688_v60, %v6692_v13 }
0x121d   :  { %v6709_v51 = vmul.f32 %v6701_v0, %v11814_v23 }
0x121f   :  { %v6866_v5 = vpop.permute.xlu0 %6865 }
0x1223   :  { %v12778_v53 = vpop.permute.xlu0 %6869 }
0x1227   :  { %v6878_v63 = vpop.permute.xlu0 %6877 }
0x122b   :  { %v12786_v15 = vpop.permute.xlu0 %6873 }
0x122f   :  { %v12792_v39 = vpop.permute.xlu0 %7048 }
0x1233   :  { %v12796_v47 = vpop.permute.xlu0 %7052 }
0x1237   :  { %v12802_v19 = vpop.permute.xlu0 %7060 }
0x123b   :  { %v12806_v42 = vpop.permute.xlu0 %7056 }
0x12cc   :  { %v6461_v28 = vpop.f32.mrb[12].mxu1 }
0x12cd   :  { %v10679_v8 = vpop.f32.mrb[13].mxu1  ;;  %6595 = vmatmul.mubr.f32.vlgmr.msra.gmra.mrb[8].mxu1 %v6461_v28  ;;  %6666 = vmatmul.mubr.f32.vlgmr.msra.gmra.mrb[10].mxu0 %v6461_v28  ;;  %v12808_v28 = vpop.permute.xlu0 %7231 }
0x12ce   :  { %6783 = vmatprep.mubr.f32.mxu0 %v13483_v10  ;;  %6854 = vmatprep.mubr.f32.mxu1 %v13483_v10 }
0x13a0   :  { %v6596_v56 = vpop.f32.mrb[8].mxu1  ;;  %v6667_v2 = vpop.f32.mrb[10].mxu0 }
0x13a1   :  { %v12709_v7 = vadd.f32 %v6596_v56, %v5531_v31  ;;  %v6598_v21 = vpop.f32.mrb[9].mxu1  ;;  %v6669_v61 = vpop.f32.mrb[11].mxu0  ;;  %v12715_v12 = vadd.f32 %v6667_v2, %v5531_v31 }
0x13a2   :  { %v12717_v14 = vadd.f32 %v6598_v21, %v5531_v31  ;;  %v12758_v3 = vadd.f32 %v6669_v61, %v5531_v31  ;;  %v12812_v56 = vpop.permute.xlu0 %7235 }
0x13a3   :  { %7565 = vrot.lane.b32.xlu0 %v12709_v7, %s11486_s16  ;;  %6685 = vrot.lane.b32.xlu1 %v12709_v7, %s11482_s11  ;;  %13498 = vst [vmem:[#allocation41_spill] sm:$0xff] %v12715_v12 }
0x13a6   :  { %v12816_v21 = vpop.permute.xlu0 %7243 }
0x13a7   :  { %7567 = vrot.lane.b32.xlu0 %v12717_v14, %s11486_s16  ;;  %6693 = vrot.lane.b32.xlu1 %v12715_v12, %s11482_s11 }
0x13aa   :  { %v12822_v11 = vpop.permute.xlu0 %7239 }
0x13ab   :  { %7927 = vrot.lane.b32.xlu0 %v12369_v4, %s11488_s22  ;;  %6867 = vrot.lane.b32.xlu1 %v12709_v7, %s11483_s5 }
0x13ae   :  { %v12826_v45 = vpop.permute.xlu0 %7740 }
0x13af   :  { %7919 = vrot.lane.b32.xlu0 %v12351_v44, %s11488_s22  ;;  %6875 = vrot.lane.b32.xlu1 %v12715_v12, %s11483_s5  ;;  %13500 = vst [vmem:[#allocation42_spill] sm:$0xff] %v12826_v45 }
0x13b2   :  { %v12832_v16 = vpop.permute.xlu0 %7744 }
0x13b3   :  { %7931 = vrot.lane.b32.xlu0 %v12371_v43, %s11488_s22  ;;  %7050 = vrot.lane.b32.xlu1 %v12709_v7, %s11484_s21  ;;  %13503 = vst [vmem:[#allocation45_spill] sm:$0xff] %v12832_v16 }
0x13b6   :  { %v12846_v16 = vpop.permute.xlu0 %7736 }
0x13b7   :  { %8106 = vrot.lane.b32.xlu0 %v12353_v35, %s11489_s23  ;;  %7058 = vrot.lane.b32.xlu1 %v12715_v12, %s11484_s21 }
0x13bb   :  { %8110 = vrot.lane.b32.xlu0 %v12369_v4, %s11489_s23  ;;  %7233 = vrot.lane.b32.xlu1 %v12709_v7, %s11485_s15 }
0x13bf   :  { %8102 = vrot.lane.b32.xlu0 %v12351_v44, %s11489_s23  ;;  %7241 = vrot.lane.b32.xlu1 %v12715_v12, %s11485_s15 }
0x13c3   :  { %8114 = vrot.lane.b32.xlu0 %v12371_v43, %s11489_s23  ;;  %7569 = vrot.lane.b32.xlu1 %v12715_v12, %s11486_s16 }
0x13c7   :  { %6679 = vperm.xlu0 %11384, %v6676_v57   ;;  %7746 = vrot.lane.b32.xlu1 %v12715_v12, %s11487_s18 }
0x13cb   :  { %7738 = vrot.lane.b32.xlu1 %v12709_v7, %s11487_s18 }
0x13cf   :  { %6689 = vrot.lane.b32.xlu1 %v12717_v14, %s11482_s11 }
0x13d3   :  { %6697 = vrot.lane.b32.xlu1 %v12758_v3, %s11482_s11 }
0x13d7   :  { %6871 = vrot.lane.b32.xlu1 %v12717_v14, %s11483_s5 }
0x13db   :  { %6879 = vrot.lane.b32.xlu1 %v12758_v3, %s11483_s5 }
0x13df   :  { %7054 = vrot.lane.b32.xlu1 %v12717_v14, %s11484_s21 }
0x13e3   :  { %7062 = vrot.lane.b32.xlu1 %v12758_v3, %s11484_s21 }
0x13e7   :  { %7237 = vrot.lane.b32.xlu1 %v12717_v14, %s11485_s15 }
0x13eb   :  { %7245 = vrot.lane.b32.xlu1 %v12758_v3, %s11485_s15 }
0x13ef   :  { %7929 = vrot.lane.b32.xlu1 %v12715_v12, %s11488_s22 }
0x13f3   :  { %7921 = vrot.lane.b32.xlu1 %v12709_v7, %s11488_s22 }
0x13f7   :  { %8112 = vrot.lane.b32.xlu1 %v12715_v12, %s11489_s23 }
0x13fb   :  { %8104 = vrot.lane.b32.xlu1 %v12709_v7, %s11489_s23 }
0x13ff   :  { %7571 = vrot.lane.b32.xlu1 %v12758_v3, %s11486_s16 }
0x1403   :  { %7742 = vrot.lane.b32.xlu1 %v12717_v14, %s11487_s18 }
0x1407   :  { %7750 = vrot.lane.b32.xlu1 %v12758_v3, %s11487_s18 }
0x140b   :  { %7925 = vrot.lane.b32.xlu1 %v12717_v14, %s11488_s22 }
0x140f   :  { %7933 = vrot.lane.b32.xlu1 %v12758_v3, %s11488_s22 }
0x1413   :  { %8108 = vrot.lane.b32.xlu1 %v12717_v14, %s11489_s23 }
0x1415   :  { %v6686_v38 = vpop.permute.xlu1 %6685 }
0x1417   :  { %8116 = vrot.lane.b32.xlu1 %v12758_v3, %s11489_s23 }
0x1419   :  { %v6694_v48 = vpop.permute.xlu1 %6693 }
0x141d   :  { %v6868_v50 = vpop.permute.xlu1 %6867 }
0x1421   :  { %v6876_v8 = vpop.permute.xlu1 %6875 }
0x1425   :  { %v12810_v31 = vpop.permute.xlu1 %7050 }
0x1429   :  { %v12814_v2 = vpop.permute.xlu1 %7058 }
0x142d   :  { %v12818_v61 = vpop.permute.xlu1 %7233 }
0x1431   :  { %v12820_v57 = vpop.permute.xlu1 %7241 }
0x1435   :  { %v12824_v34 = vpop.permute.xlu1 %7569 }
0x1439   :  { %v12828_v26 = vpop.permute.xlu1 %7746 }
0x143a   :  { %13501 = vst [vmem:[#allocation43_spill] sm:$0xff] %v12828_v26 }
0x143d   :  { %v12830_v33 = vpop.permute.xlu1 %7738 }
0x143e   :  { %13502 = vst [vmem:[#allocation44_spill] sm:$0xff] %v12830_v33  ;;  %v6699_v33 = vsel %vm198_vm0, %v6692_v13, %v6696_v62  ;;  %v6885_v62 = vsel %vm395_vm3, %v6866_v5, %v12778_v53 }
0x1441   :  { %v6690_v24 = vpop.permute.xlu1 %6689 }
0x1442   :  { %v6704_v1 = vsel %vm198_vm0, %v6686_v38, %v6690_v24  ;;  %v6702_v45 = vsel %vm198_vm0, %v6690_v24, %v6694_v48  ;;  %v6710_v24 = vmul.f32 %v6699_v33, %v11810_v22  ;;  %v12866_v33 = vpop.permute.xlu0 %7748 }
0x1443   :  { %v6712_v26 = vmul.f32 %v6704_v1, %v11797_v17  ;;  %v6713_v4 = vmul.f32 %v6702_v45, %v11814_v23 }
0x1445   :  { %v6698_v49 = vpop.permute.xlu1 %6697  ;;  %v11055_v12 = vpack.c.bf16 %v6712_v26, %v6708_v55 }
0x1446   :  { %v6700_v27 = vsel %vm198_vm0, %v6694_v48, %v6698_v49  ;;  %v6706_v1 = vsel %vm198_vm0, %v6698_v49, %v6686_v38  ;;  %v6890_v48 = vmul.f32 %v6885_v62, %v11829_v32  ;;  %v6887_v49 = vsel %vm395_vm3, %v6878_v63, %v6866_v5 }
0x1447   :  { %v6711_v60 = vmul.f32 %v6706_v1, %v11801_v18  ;;  %v6714_v26 = vmul.f32 %v6700_v27, %v11810_v22  ;;  %11056 = vmatprep.subr.bf16.mxu0 %v11055_v12  ;;  %v11061_v38 = vpack.c.bf16 %v6713_v4, %v6709_v51  ;;  %v6881_v12 = vsel %vm395_vm3, %v12786_v15, %v6878_v63  ;;  %v6715_v27 = vld [vmem:[%s13504_s0] sm:$0xff] }
0x1448   :  { %v6889_v5 = vmul.f32 %v6887_v49, %v11838_v36  ;;  %v6883_v4 = vsel %vm395_vm3, %v12778_v53, %v12786_v15  ;;  %v6892_v63 = vmul.f32 %v6881_v12, %v11852_v41 }
0x1449   :  { %v11057_v45 = vpack.c.bf16 %v6711_v60, %v6707_v6  ;;  %v6872_v55 = vpop.permute.xlu1 %6871  ;;  %v11059_v13 = vpack.c.bf16 %v6714_v26, %v6710_v24 }
0x144a   :  { %v6886_v1 = vsel %vm395_vm3, %v6868_v50, %v6872_v55  ;;  %v6884_v0 = vsel %vm395_vm3, %v6872_v55, %v6876_v8  ;;  %v6891_v55 = vmul.f32 %v6883_v4, %v11848_v40 }
0x144b   :  { %v6894_v6 = vmul.f32 %v6886_v1, %v11829_v32  ;;  %11058 = vmatpush1.bf16.msra.mxu0 %v11057_v45  ;;  %11060 = vmatprep.subr.bf16.mxu1 %v11059_v13  ;;  %v6895_v60 = vmul.f32 %v6884_v0, %v11848_v40  ;;  %v7068_v45 = vsel %vm591_vm4, %v12792_v39, %v12796_v47 }
0x144c   :  { %11062 = vmatpush1.bf16.msra.mxu1 %v11061_v38  ;;  %v7073_v49 = vmul.f32 %v7068_v45, %v11873_v52  ;;  %v7070_v38 = vsel %vm591_vm4, %v12802_v19, %v12792_v39  ;;  %v7064_v0 = vsel %vm591_vm4, %v12806_v42, %v12802_v19 }
0x144d   :  { %v6880_v24 = vpop.permute.xlu1 %6879  ;;  %v11063_v62 = vpack.c.bf16 %v6894_v6, %v6890_v48  ;;  %v11069_v1 = vpack.c.bf16 %v6895_v60, %v6891_v55  ;;  %v7072_v4 = vmul.f32 %v7070_v38, %v11879_v54  ;;  %v7247_v38 = vsel %vm787_vm5, %v12822_v11, %v12816_v21 }
0x144e   :  { %v6882_v26 = vsel %vm395_vm3, %v6876_v8, %v6880_v24  ;;  %v6888_v51 = vsel %vm395_vm3, %v6880_v24, %v6868_v50  ;;  %10341 = vmatmul.mubr.msk.f32.vlgmr.msra.gmra.mrb[14].mxu0 %vm4661_vm11, %v6715_v27  ;;  %v12897_v8 = vpop.permute.xlu0 %7923  ;;  %v7066_v24 = vsel %vm591_vm4, %v12796_v47, %v12806_v42  ;;  %v7251_v47 = vsel %vm787_vm5, %v12808_v28, %v12812_v56 }
0x144f   :  { %v6893_v53 = vmul.f32 %v6888_v51, %v11838_v36  ;;  %v6896_v15 = vmul.f32 %v6882_v26, %v11852_v41  ;;  %11064 = vmatprep.subr.bf16.mxu0 %v11063_v62  ;;  %10342 = vmatmul.mubr.msk.f32.vlgmr.msra.gmra.mrb[14].mxu1 %vm4661_vm11, %v6715_v27  ;;  %v7256_v55 = vmul.f32 %v7251_v47, %v11914_v20 }
0x1450   :  { %6966 = vmatprep.mubr.f32.mxu0 %v13483_v10  ;;  %7037 = vmatprep.mubr.f32.mxu1 %v13483_v10 }
0x1451   :  { %v11065_v50 = vpack.c.bf16 %v6893_v53, %v6889_v5  ;;  %v7055_v13 = vpop.permute.xlu1 %7054  ;;  %v11067_v48 = vpack.c.bf16 %v6896_v15, %v6892_v63  ;;  %v10343_v5 = vld [vmem:[%s13504_s0 + $0x8] sm:$0xff]  ;;  %v7075_v63 = vmul.f32 %v7064_v0, %v11893_v59 }
0x1452   :  { %v7069_v12 = vsel %vm591_vm4, %v12810_v31, %v7055_v13  ;;  %v7067_v6 = vsel %vm591_vm4, %v7055_v13, %v12814_v2  ;;  %v12918_v39 = vpop.permute.xlu0 %7565 }
0x1453   :  { %v7077_v27 = vmul.f32 %v7069_v12, %v11873_v52  ;;  %11066 = vmatpush1.bf16.msra.mxu0 %v11065_v50  ;;  %11068 = vmatprep.subr.bf16.mxu1 %v11067_v48  ;;  %v7078_v60 = vmul.f32 %v7067_v6, %v11889_v58  ;;  %v7253_v50 = vsel %vm787_vm5, %v12816_v21, %v12808_v28  ;;  %v10346_v28 = vld [vmem:[%s13504_s0 + $0x10] sm:$0xff] }
0x1454   :  { %11070 = vmatpush1.bf16.msra.mxu1 %v11069_v1  ;;  %v7255_v0 = vmul.f32 %v7253_v50, %v11920_v25  ;;  %v7249_v6 = vsel %vm787_vm5, %v12812_v56, %v12822_v11  ;;  %v7258_v21 = vmul.f32 %v7247_v38, %v11934_v30  ;;  %v13507_v50 = vld [vmem:[#allocation25_spill] sm:$0xff] }
0x1455   :  { %v7063_v19 = vpop.permute.xlu1 %7062  ;;  %v11071_v62 = vpack.c.bf16 %v7077_v27, %v7073_v49 }
0x1456   :  { %v7065_v26 = vsel %vm591_vm4, %v12814_v2, %v7063_v19  ;;  %v7071_v51 = vsel %vm591_vm4, %v7063_v19, %v12810_v31  ;;  %10344 = vmatmul.mubr.msk.f32.vlgmr.msra.gmra.mrb[14].mxu0 %vm4661_vm11, %v10343_v5  ;;  %v7074_v2 = vmul.f32 %v7066_v24, %v11889_v58  ;;  %v7568_v13 = vpop.permute.xlu0 %7567 }
0x1457   :  { %v7076_v42 = vmul.f32 %v7071_v51, %v11879_v54  ;;  %v7079_v45 = vmul.f32 %v7065_v26, %v11893_v59  ;;  %11072 = vmatprep.subr.bf16.mxu0 %v11071_v62  ;;  %10345 = vmatmul.mubr.msk.f32.vlgmr.msra.gmra.mrb[14].mxu1 %vm4661_vm11, %v10343_v5  ;;  %v7574_v11 = vsel %vm1142_vm6, %v7568_v13, %v12824_v34 }
0x1458   :  { %7149 = vmatprep.mubr.f32.mxu0 %v13483_v10  ;;  %7220 = vmatprep.mubr.f32.mxu1 %v13483_v10  ;;  %v11077_v48 = vpack.c.bf16 %v7078_v60, %v7074_v2  ;;  %v7582_v51 = vmul.f32 %v7574_v11, %v11955_v46  ;;  %v10349_v2 = vld [vmem:[%s13504_s0 + $0x18] sm:$0xff] }
0x1459   :  { %v11073_v31 = vpack.c.bf16 %v7076_v42, %v7072_v4  ;;  %v7238_v53 = vpop.permute.xlu1 %7237  ;;  %v11075_v15 = vpack.c.bf16 %v7079_v45, %v7075_v63  ;;  %v11087_v42 = vpack.c.bf16 %v12717_v14, %v12353_v35  ;;  %v11091_v45 = vpack.c.bf16 %v12758_v3, %v12371_v43  ;;  %v13505_v43 = vld [vmem:[#allocation36_spill] sm:$0xff]  ;;  %v13506_v3 = vld [vmem:[#allocation41_spill] sm:$0xff] }
0x145a   :  { %v7252_v49 = vsel %vm787_vm5, %v12818_v61, %v7238_v53  ;;  %v7250_v1 = vsel %vm787_vm5, %v7238_v53, %v12820_v57  ;;  %v12982_v63 = vpop.permute.xlu0 %7927  ;;  %v7575_v35 = vsel %vm1142_vm6, %v12918_v39, %v7568_v13 }
0x145b   :  { %v7260_v12 = vmul.f32 %v7252_v49, %v11914_v20  ;;  %11074 = vmatpush1.bf16.msra.mxu0 %v11073_v31  ;;  %11076 = vmatprep.subr.bf16.mxu1 %v11075_v15  ;;  %v7261_v4 = vmul.f32 %v7250_v1, %v11930_v29  ;;  %v7578_v31 = vmul.f32 %v12439_v37, %v11955_v46  ;;  %v10352_v49 = vld [vmem:[%s13504_s0 + $0x20] sm:$0xff] }
0x145c   :  { %11078 = vmatpush1.bf16.msra.mxu1 %v11077_v48  ;;  %v11089_v15 = vpack.c.bf16 %v12709_v7, %v12351_v44  ;;  %v11093_v37 = vpack.c.bf16 %v13506_v3, %v13505_v43  ;;  %v7581_v48 = vmul.f32 %v7575_v35, %v13507_v50  ;;  %v13508_v7 = vld [vmem:[#allocation37_spill] sm:$0xff]  ;;  %v13517_v43 = vld [vmem:[#allocation43_spill] sm:$0xff] }
0x145d   :  { %v7246_v27 = vpop.permute.xlu1 %7245  ;;  %v11079_v5 = vpack.c.bf16 %v7260_v12, %v7256_v55  ;;  %v11095_v55 = vpack.c.bf16 %v7582_v51, %v7578_v31  ;;  %v7577_v13 = vmul.f32 %v13508_v7, %v13507_v50 }
0x145e   :  { %v7248_v24 = vsel %vm787_vm5, %v12820_v57, %v7246_v27  ;;  %v7254_v19 = vsel %vm787_vm5, %v7246_v27, %v12818_v61  ;;  %10347 = vmatmul.mubr.msk.f32.vlgmr.msra.gmra.mrb[14].mxu0 %vm4661_vm11, %v10346_v28  ;;  %v7257_v57 = vmul.f32 %v7249_v6, %v11930_v29  ;;  %v13003_v14 = vpop.permute.xlu0 %7919  ;;  %v13510_v6 = vld [vmem:[#allocation38_spill] sm:$0xff] }
0x145f   :  { %v7259_v56 = vmul.f32 %v7254_v19, %v11920_v25  ;;  %v7262_v62 = vmul.f32 %v7248_v24, %v11934_v30  ;;  %11080 = vmatprep.subr.bf16.mxu0 %v11079_v5  ;;  %10348 = vmatmul.mubr.msk.f32.vlgmr.msra.gmra.mrb[14].mxu1 %vm4661_vm11, %v10346_v28  ;;  %v11097_v1 = vpack.c.bf16 %v7581_v48, %v7577_v13  ;;  %v13511_v5 = vld [vmem:[#allocation45_spill] sm:$0xff] }
0x1460   :  { %7332 = vmatprep.mubr.f32.mxu0 %v13483_v10  ;;  %7403 = vmatprep.mubr.f32.mxu1 %v13483_v10  ;;  %v11085_v47 = vpack.c.bf16 %v7261_v4, %v7257_v57  ;;  %v7752_v35 = vsel %vm1338_vm7, %v13511_v5, %v12866_v33  ;;  %v7758_v48 = vsel %vm1338_vm7, %v12866_v33, %v12846_v16 }
0x1461   :  { %v11081_v61 = vpack.c.bf16 %v7259_v56, %v7255_v0  ;;  %v12986_v60 = vpop.permute.xlu1 %7929  ;;  %v11083_v26 = vpack.c.bf16 %v7262_v62, %v7258_v21  ;;  %v13509_v0 = vld [vmem:[#allocation26_spill] sm:$0xff]  ;;  %v13513_v56 = vld [vmem:[#allocation27_spill] sm:$0xff] }
0x1462   :  { %v7932_v38 = vpop.permute.xlu0 %7931  ;;  %v7580_v27 = vmul.f32 %v13510_v6, %v13509_v0  ;;  %v13512_v21 = vld [vmem:[#allocation42_spill] sm:$0xff]  ;;  %v13514_v62 = vld [vmem:[#allocation39_spill] sm:$0xff] }
0x1463   :  { %11082 = vmatpush1.bf16.msra.mxu0 %v11081_v61  ;;  %11084 = vmatprep.subr.bf16.mxu1 %v11083_v26  ;;  %v7754_v4 = vsel %vm1338_vm7, %v13512_v21, %v13511_v5  ;;  %v7579_v57 = vmul.f32 %v13514_v62, %v13513_v56  ;;  %v7756_v61 = vsel %vm1338_vm7, %v12846_v16, %v13512_v21  ;;  %v13520_v21 = vld [vmem:[#allocation30_spill] sm:$0xff] }
0x1464   :  { %11086 = vmatpush1.bf16.msra.mxu1 %v11085_v47  ;;  %11088 = vmatprep.subr.bf16.mxu0 %v11087_v42  ;;  %v10355_v47 = vld [vmem:[%s13504_s0 + $0x28] sm:$0xff]  ;;  %v13515_v42 = vld [vmem:[#allocation28_spill] sm:$0xff]  ;;  %v7937_v16 = vsel %vm1534_vm8, %v12897_v8, %v12982_v63 }
0x1465   :  { %11092 = vmatprep.subr.bf16.mxu1 %v11091_v45  ;;  %v12996_v53 = vpop.permute.xlu1 %7921  ;;  %v7761_v45 = vmul.f32 %v7754_v4, %v13515_v42  ;;  %v7763_v4 = vmul.f32 %v7758_v48, %v13520_v21 }
0x1466   :  { %10350 = vmatmul.mubr.msk.f32.vlgmr.msra.gmra.mrb[14].mxu0 %vm4661_vm11, %v10349_v2  ;;  %v13029_v24 = vpop.permute.xlu0 %8106 }
0x1467   :  { %11090 = vmatpush1.bf16.msra.mxu0 %v11089_v15  ;;  %10351 = vmatmul.mubr.msk.f32.vlgmr.msra.gmra.mrb[14].mxu1 %vm4661_vm11, %v10349_v2  ;;  %v13516_v15 = vld [vmem:[#allocation29_spill] sm:$0xff] }
0x1468   :  { %11094 = vmatpush1.bf16.msra.mxu1 %v11093_v37  ;;  %11096 = vmatprep.subr.bf16.mxu0 %v11095_v55  ;;  %v13518_v37 = vld [vmem:[#allocation44_spill] sm:$0xff] }
0x1469   :  { %v13010_v44 = vpop.permute.xlu1 %8112  ;;  %7483 = vmatprep.mubr.f32.mxu0 %v13483_v10  ;;  %7554 = vmatprep.mubr.f32.mxu1 %v13483_v10 }
0x146d   :  { %v13017_v12 = vpop.permute.xlu1 %8104 }
0x146e   :  { %10353 = vmatmul.mubr.msk.f32.vlgmr.msra.gmra.mrb[14].mxu0 %vm4661_vm11, %v10352_v49 }
0x146f   :  { %11098 = vmatpush1.bf16.msra.mxu0 %v11097_v1  ;;  %10354 = vmatmul.mubr.msk.f32.vlgmr.msra.gmra.mrb[14].mxu1 %vm4661_vm11, %v10352_v49  ;;  %v8111_v49 = vpop.permute.xlu0 %8110  ;;  %v13519_v1 = vld [vmem:[#allocation31_spill] sm:$0xff] }
0x1470   :  { %7654 = vmatprep.mubr.f32.mxu0 %v13483_v10  ;;  %7725 = vmatprep.mubr.f32.mxu1 %v13483_v10 }
0x1471   :  { %v7572_v28 = vpop.permute.xlu1 %7571 }
0x1472   :  { %v7573_v19 = vsel %vm1142_vm6, %v12824_v34, %v7572_v28  ;;  %v7576_v11 = vsel %vm1142_vm6, %v7572_v28, %v12918_v39  ;;  %v7760_v39 = vmul.f32 %v7756_v61, %v13516_v15  ;;  %v7762_v28 = vmul.f32 %v7752_v35, %v13519_v1  ;;  %v10358_v61 = vld [vmem:[%s13504_s0 + $0x30] sm:$0xff] }
0x1473   :  { %v7583_v26 = vmul.f32 %v7573_v19, %v13513_v56  ;;  %v7584_v51 = vmul.f32 %v7576_v11, %v13509_v0  ;;  %v7939_v11 = vsel %vm1534_vm8, %v13003_v14, %v12897_v8  ;;  %v7935_v8 = vsel %vm1534_vm8, %v12982_v63, %v7932_v38  ;;  %v8103_v35 = vpop.permute.xlu0 %8102  ;;  %v13523_v63 = vld [vmem:[#allocation35_spill] sm:$0xff] }
0x1474   :  { %v7945_v48 = vmul.f32 %v7935_v8, %v13523_v63 }
0x1475   :  { %v11101_v34 = vpack.c.bf16 %v7583_v26, %v7579_v57  ;;  %v7743_v2 = vpop.permute.xlu1 %7742  ;;  %v11099_v31 = vpack.c.bf16 %v7584_v51, %v7580_v27  ;;  %v13521_v26 = vld [vmem:[#allocation32_spill] sm:$0xff] }
0x1476   :  { %v7755_v3 = vsel %vm1338_vm7, %v7743_v2, %v13517_v43  ;;  %v7757_v55 = vsel %vm1338_vm7, %v13518_v37, %v7743_v2  ;;  %10356 = vmatmul.mubr.msk.f32.vlgmr.msra.gmra.mrb[14].mxu0 %vm4661_vm11, %v10355_v47  ;;  %v7944_v51 = vmul.f32 %v7937_v16, %v13521_v26 }
0x1477   :  { %v7764_v7 = vmul.f32 %v7757_v55, %v13516_v15  ;;  %v7765_v13 = vmul.f32 %v7755_v3, %v13515_v42  ;;  %11100 = vmatprep.subr.bf16.mxu1 %v11099_v31  ;;  %7837 = vmatprep.mubr.f32.mxu0 %v13483_v10  ;;  %v13522_v31 = vld [vmem:[#allocation33_spill] sm:$0xff]  ;;  %v7941_v3 = vsel %vm1534_vm8, %v7932_v38, %v13003_v14 }
0x1478   :  { %11102 = vmatpush1.bf16.msra.mxu1 %v11101_v34  ;;  %v8120_v14 = vsel %vm1730_vm9, %v13029_v24, %v8111_v49 }
0x1479   :  { %v11105_v6 = vpack.c.bf16 %v7764_v7, %v7760_v39  ;;  %v7751_v27 = vpop.permute.xlu1 %7750  ;;  %v11103_v5 = vpack.c.bf16 %v7765_v13, %v7761_v45  ;;  %v7943_v39 = vmul.f32 %v7939_v11, %v13522_v31  ;;  %v10361_v11 = vld [vmem:[%s13504_s0 + $0x38] sm:$0xff] }
0x147a   :  { %v7753_v33 = vsel %vm1338_vm7, %v13517_v43, %v7751_v27  ;;  %v7759_v19 = vsel %vm1338_vm7, %v7751_v27, %v13518_v37 }
0x147b   :  { %v7766_v62 = vmul.f32 %v7753_v33, %v13519_v1  ;;  %v7767_v57 = vmul.f32 %v7759_v19, %v13520_v21  ;;  %10357 = vmatmul.mubr.msk.f32.vlgmr.msra.gmra.mrb[14].mxu1 %vm4661_vm11, %v10355_v47  ;;  %11104 = vmatprep.subr.bf16.mxu0 %v11103_v5  ;;  %v8115_v19 = vpop.permute.xlu0 %8114 }
0x147c   :  { %11106 = vmatpush1.bf16.msra.mxu0 %v11105_v6  ;;  %7908 = vmatprep.mubr.f32.mxu1 %v13483_v10  ;;  %v13524_v6 = vld [vmem:[#allocation34_spill] sm:$0xff] }
0x147d   :  { %v11109_v45 = vpack.c.bf16 %v7766_v62, %v7762_v28  ;;  %v7926_v34 = vpop.permute.xlu1 %7925  ;;  %v11107_v2 = vpack.c.bf16 %v7767_v57, %v7763_v4  ;;  %v7946_v27 = vmul.f32 %v7941_v3, %v13524_v6  ;;  %v8122_v4 = vsel %vm1730_vm9, %v8103_v35, %v13029_v24  ;;  %v13129_v24 = vld [vmem:[%s11513_s9 + $0x20] ss:$0 sm:$0xff] }
0x147e   :  { %v7938_v47 = vsel %vm1534_vm8, %v7926_v34, %v12986_v60  ;;  %v7940_v43 = vsel %vm1534_vm8, %v12996_v53, %v7926_v34 }
0x147f   :  { %v7947_v37 = vmul.f32 %v7940_v43, %v13522_v31  ;;  %v7948_v55 = vmul.f32 %v7938_v47, %v13521_v26  ;;  %10359 = vmatmul.mubr.msk.f32.vlgmr.msra.gmra.mrb[14].mxu0 %vm4661_vm11, %v10358_v61  ;;  %11108 = vmatprep.subr.bf16.mxu1 %v11107_v2  ;;  %v8118_v2 = vsel %vm1730_vm9, %v8111_v49, %v8115_v19 }
0x1480   :  { %11110 = vmatpush1.bf16.msra.mxu1 %v11109_v45  ;;  %8020 = vmatprep.mubr.f32.mxu0 %v13483_v10  ;;  %v8126_v45 = vmul.f32 %v13129_v24, %v8122_v4  ;;  %v8124_v47 = vsel %vm1730_vm9, %v8115_v19, %v8103_v35  ;;  %v13157_v35 = vld [vmem:[%s11513_s9 + $0x38] ss:$0 sm:$0xff] }
0x1481   :  { %v11113_v7 = vpack.c.bf16 %v7947_v37, %v7943_v39  ;;  %v7934_v13 = vpop.permute.xlu1 %7933  ;;  %v11111_v28 = vpack.c.bf16 %v7948_v55, %v7944_v51  ;;  %v13147_v55 = vld [vmem:[%s11513_s9 + $0x30] ss:$0 sm:$0xff] }
0x1482   :  { %v7936_v38 = vsel %vm1534_vm8, %v12986_v60, %v7934_v13  ;;  %v7942_v5 = vsel %vm1534_vm8, %v7934_v13, %v12996_v53  ;;  %v13125_v53 = vld [vmem:[%s11513_s9 + $0x28] ss:$0 sm:$0xff]  ;;  %v8128_v49 = vmul.f32 %v13147_v55, %v8118_v2  ;;  %v8129_v13 = vmul.f32 %v13157_v35, %v8124_v47  ;;  %s13525_s9 = sld [smem:[#allocation17_spill]] }
0x1483   :  { %v7949_v16 = vmul.f32 %v7936_v38, %v13523_v63  ;;  %v7950_v33 = vmul.f32 %v7942_v5, %v13524_v6  ;;  %10360 = vmatmul.mubr.msk.f32.vlgmr.msra.gmra.mrb[14].mxu1 %vm4661_vm11, %v10358_v61  ;;  %11112 = vmatprep.subr.bf16.mxu0 %v11111_v28  ;;  %v8127_v51 = vmul.f32 %v13125_v53, %v8120_v14  ;;  %v10364_v14 = vld [vmem:[%s13504_s0 + $0x40] sm:$0xff] }
0x1484   :  { %11114 = vmatpush1.bf16.msra.mxu0 %v11113_v7  ;;  %8091 = vmatprep.mubr.f32.mxu1 %v13483_v10 }
0x1485   :  { %v11117_v60 = vpack.c.bf16 %v7949_v16, %v7945_v48  ;;  %v8109_v62 = vpop.permute.xlu1 %8108  ;;  %v11115_v57 = vpack.c.bf16 %v7950_v33, %v7946_v27 }
0x1486   :  { %v8121_v61 = vsel %vm1730_vm9, %v8109_v62, %v13010_v44  ;;  %v8123_v34 = vsel %vm1730_vm9, %v13017_v12, %v8109_v62 }
0x1487   :  { %v8130_v39 = vmul.f32 %v13129_v24, %v8123_v34  ;;  %v8131_v8 = vmul.f32 %v13125_v53, %v8121_v61  ;;  %10362 = vmatmul.mubr.msk.f32.vlgmr.msra.gmra.mrb[14].mxu0 %vm4661_vm11, %v10361_v11  ;;  %11116 = vmatprep.subr.bf16.mxu1 %v11115_v57 }
0x1488   :  { %11118 = vmatpush1.bf16.msra.mxu1 %v11117_v60  ;;  %8203 = vmatprep.mubr.f32.mxu0 %v13483_v10  ;;  %v8286_v61 = vld [vmem:[%s13525_s9] sm:$0xff] }
0x1489   :  { %v11121_v43 = vpack.c.bf16 %v8130_v39, %v8126_v45  ;;  %v8117_v3 = vpop.permute.xlu1 %8116  ;;  %v11119_v37 = vpack.c.bf16 %v8131_v8, %v8127_v51 }
0x148a   :  { %v8119_v48 = vsel %vm1730_vm9, %v13010_v44, %v8117_v3  ;;  %v8125_v7 = vsel %vm1730_vm9, %v8117_v3, %v13017_v12  ;;  %v6680_v12 = vpop.permute.xlu0 %6679 }
0x148b   :  { %v8132_v28 = vmul.f32 %v13147_v55, %v8119_v48  ;;  %v8133_v27 = vmul.f32 %v13157_v35, %v8125_v7  ;;  %10363 = vmatmul.mubr.msk.f32.vlgmr.msra.gmra.mrb[14].mxu1 %vm4661_vm11, %v10361_v11  ;;  %11120 = vmatprep.subr.bf16.mxu0 %v11119_v37 }
0x148c   :  { %11122 = vmatpush1.bf16.msra.mxu0 %v11121_v43  ;;  %8274 = vmatprep.mubr.f32.mxu1 %v13483_v10 }
0x148d   :  { %v11125_v44 = vpack.c.bf16 %v8132_v28, %v8128_v49  ;;  %v11123_v38 = vpack.c.bf16 %v8133_v27, %v8129_v13 }
0x148f   :  { %10365 = vmatmul.mubr.msk.f32.vlgmr.msra.gmra.mrb[14].mxu0 %vm4661_vm11, %v10364_v14  ;;  %11124 = vmatprep.subr.bf16.mxu1 %v11123_v38  ;;  %v8285_v38 = vld [vmem:[%s13526_s10] sm:$0xff] }
0x1490   :  { %11126 = vmatpush1.bf16.msra.mxu1 %v11125_v44  ;;  %8423 = vmatprep.mubr.f32.mxu0 %v13483_v10 }
0x1493   :  { %10366 = vmatmul.mubr.msk.f32.vlgmr.msra.gmra.mrb[14].mxu1 %vm4661_vm11, %v10364_v14 }
0x1494   :  { %8494 = vmatprep.mubr.f32.mxu1 %v13483_v10 }
0x1562   :  { %v8205_v5 = vpop.f32.mrb[14].mxu0 }
0x1563   :  { %v11146_v4 = vadd.f32 %v8205_v5, %v6680_v12  ;;  %v8207_v16 = vpop.f32.mrb[15].mxu0 }
0x1564   :  { %v11147_v33 = vadd.f32 %v8207_v16, %v6680_v12 }
0x1566   :  { %v8287_v19 = vadd.f32 %v11147_v33, %v11146_v4  ;;  %v8276_v11 = vpop.f32.mrb[14].mxu1 }
0x1567   :  { %v11148_v60 = vadd.f32 %v8276_v11, %v6680_v12  ;;  %v8278_v62 = vpop.f32.mrb[15].mxu1 }
0x1568   :  { %v11149_v57 = vadd.f32 %v8278_v62, %v6680_v12 }
0x1569   :  { %v8288_v51 = vadd.f32 %v11148_v60, %v8287_v19 }
0x156b   :  { %v8289_v45 = vadd.f32 %v11149_v57, %v8288_v51 }
0x156d   :  { %8290 = vadd.xlane.f32.xlu1 %v8289_v45 }
0x157e   :  { %8321 = vperm.xlu1 %11385, %v8286_v61  }
0x15fa   :  { %v8291_v34 = vpop.xlane.xlu1 %8290 }
0x15fb   :  { %v8292_v2 = vmul.f32 0.001953125, %v8291_v34 }
0x15fd   :  { %v8293_v39 = vsub.f32 %v11146_v4, %v8292_v2  ;;  %v8294_v8 = vsub.f32 %v11147_v33, %v8292_v2  ;;  %v8295_v47 = vsub.f32 %v11148_v60, %v8292_v2  ;;  %v8296_v43 = vsub.f32 %v11149_v57, %v8292_v2 }
0x15fe   :  { %v8322_v60 = vpop.permute.xlu1 %8321 }
0x15ff   :  { %v8297_v3 = vmul.f32 %v8293_v39, %v8293_v39  ;;  %v8298_v37 = vmul.f32 %v8294_v8, %v8294_v8  ;;  %v8299_v49 = vmul.f32 %v8295_v47, %v8295_v47  ;;  %v8300_v7 = vmul.f32 %v8296_v43, %v8296_v43 }
0x1601   :  { %v8301_v48 = vadd.f32 %v8298_v37, %v8297_v3 }
0x1603   :  { %v8302_v13 = vadd.f32 %v8301_v48, %v8299_v49 }
0x1605   :  { %v8303_v28 = vadd.f32 %v8302_v13, %v8300_v7 }
0x1607   :  { %8304 = vadd.xlane.f32.xlu0 %v8303_v28 }
0x1694   :  { %v8305_v27 = vpop.xlane.xlu0 %8304 }
0x1695   :  { %v8306_v14 = vmul.f32 0.001953125, %v8305_v27 }
0x1697   :  { %v8307_v44 = vadd.f32 1e-05, %v8306_v14 }
0x1699   :  { %11410 = vrsqrt.f32 %v8307_v44 }
0x16a3   :  { %v11411_v12 = vpop.eup %11410 }
0x16a4   :  { %v8309_v5 = vmul.f32 %v11411_v12, %v8285_v38 }
0x16a6   :  { %8312 = vperm.xlu0 %11384, %v8309_v5  }
0x1725   :  { %v8313_v4 = vpop.permute.xlu0 %8312 }
0x1726   :  { %v8315_v16 = vmul.f32 %v8313_v4, %v8293_v39  ;;  %v8316_v33 = vmul.f32 %v8313_v4, %v8294_v8  ;;  %v8317_v19 = vmul.f32 %v8313_v4, %v8295_v47  ;;  %v8318_v11 = vmul.f32 %v8313_v4, %v8296_v43 }
0x1728   :  { %v8324_v62 = vadd.f32 %v8322_v60, %v8315_v16  ;;  %v8325_v57 = vadd.f32 %v8322_v60, %v8316_v33  ;;  %v8326_v51 = vadd.f32 %v8322_v60, %v8317_v19  ;;  %v8327_v45 = vadd.f32 %v8322_v60, %v8318_v11 }
0x172a   :  { %v13171_v61 = vmax.f32 %v8324_v62, 0.0  ;;  %v13173_v34 = vmax.f32 %v8325_v57, 0.0  ;;  %v13179_v2 = vmax.f32 %v8326_v51, 0.0  ;;  %v13181_v39 = vmax.f32 %v8327_v45, 0.0 }
0x172c   :  { %8341 = vrot.lane.b32.xlu0 %v13173_v34, %s11482_s11  ;;  %8339 = vrot.lane.b32.xlu1 %v13171_v61, %s11482_s11 }
0x1730   :  { %8343 = vrot.lane.b32.xlu0 %v13179_v2, %s11482_s11  ;;  %8345 = vrot.lane.b32.xlu1 %v13181_v39, %s11482_s11  ;;  %s13527_s11 = sld [smem:[#allocation19_spill]] }
0x1734   :  { %8507 = vrot.lane.b32.xlu0 %v13173_v34, %s11483_s5  ;;  %8505 = vrot.lane.b32.xlu1 %v13171_v61, %s11483_s5 }
0x1736   :  { %v8332_v8 = vld [vmem:[%s13527_s11] sm:$0xff] }
0x1738   :  { %8509 = vrot.lane.b32.xlu0 %v13179_v2, %s11483_s5  ;;  %8511 = vrot.lane.b32.xlu1 %v13181_v39, %s11483_s5  ;;  %s13528_s5 = sld [smem:[#allocation18_spill]] }
0x173c   :  { %8674 = vrot.lane.b32.xlu0 %v13173_v34, %s11484_s21  ;;  %8672 = vrot.lane.b32.xlu1 %v13171_v61, %s11484_s21 }
0x173e   :  { %v8355_v38 = vld [vmem:[%s13528_s5] sm:$0xff]  ;;  %v10369_v60 = vld [vmem:[%s13528_s5 + $0x8] sm:$0xff] }
0x173f   :  { %v10390_v9 = vld [vmem:[%s13528_s5 + $0x40] sm:$0xff] }
0x1740   :  { %8676 = vrot.lane.b32.xlu0 %v13179_v2, %s11484_s21  ;;  %8678 = vrot.lane.b32.xlu1 %v13181_v39, %s11484_s21  ;;  %s13529_s21 = sld [smem:[#allocation21_spill]] }
0x1744   :  { %8841 = vrot.lane.b32.xlu0 %v13173_v34, %s11485_s15  ;;  %8839 = vrot.lane.b32.xlu1 %v13171_v61, %s11485_s15 }
0x1748   :  { %8843 = vrot.lane.b32.xlu0 %v13179_v2, %s11485_s15  ;;  %8845 = vrot.lane.b32.xlu1 %v13181_v39, %s11485_s15  ;;  %s13530_s15 = sld [smem:[#allocation20_spill]] }
0x174c   :  { %9161 = vrot.lane.b32.xlu0 %v13179_v2, %s11486_s16  ;;  %9159 = vrot.lane.b32.xlu1 %v13173_v34, %s11486_s16 }
0x1750   :  { %9163 = vrot.lane.b32.xlu0 %v13181_v39, %s11486_s16  ;;  %9157 = vrot.lane.b32.xlu1 %v13171_v61, %s11486_s16  ;;  %s13531_s16 = sld [smem:[#allocation23_spill]] }
0x1754   :  { %9328 = vrot.lane.b32.xlu0 %v13179_v2, %s11487_s18  ;;  %9326 = vrot.lane.b32.xlu1 %v13173_v34, %s11487_s18 }
0x1758   :  { %9330 = vrot.lane.b32.xlu0 %v13181_v39, %s11487_s18  ;;  %9324 = vrot.lane.b32.xlu1 %v13171_v61, %s11487_s18  ;;  %s13532_s18 = sld [smem:[#allocation22_spill]] }
0x175c   :  { %9495 = vrot.lane.b32.xlu0 %v13179_v2, %s11488_s22  ;;  %9493 = vrot.lane.b32.xlu1 %v13173_v34, %s11488_s22 }
0x1760   :  { %9497 = vrot.lane.b32.xlu0 %v13181_v39, %s11488_s22  ;;  %9491 = vrot.lane.b32.xlu1 %v13171_v61, %s11488_s22 }
0x1764   :  { %9662 = vrot.lane.b32.xlu0 %v13179_v2, %s11489_s23  ;;  %9660 = vrot.lane.b32.xlu1 %v13173_v34, %s11489_s23 }
0x1768   :  { %9664 = vrot.lane.b32.xlu0 %v13181_v39, %s11489_s23  ;;  %9658 = vrot.lane.b32.xlu1 %v13171_v61, %s11489_s23 }
0x176c   :  { %8335 = vperm.xlu1 %11385, %v8332_v8  }
0x179e   :  { %v8342_v47 = vpop.permute.xlu0 %8341  ;;  %v8340_v43 = vpop.permute.xlu1 %8339 }
0x179f   :  { %v8349_v3 = vsel %vm198_vm0, %v8340_v43, %v8342_v47 }
0x17a0   :  { %v8352_v37 = vmul.f32 %v8349_v3, %v11797_v17 }
0x17a2   :  { %v8344_v49 = vpop.permute.xlu0 %8343  ;;  %8359 = vmatprep.subr.mxu0 %v8352_v37  ;;  %v8346_v48 = vpop.permute.xlu1 %8345  ;;  %v10372_v37 = vld [vmem:[%s13528_s5 + $0x10] sm:$0xff] }
0x17a3   :  { %v8348_v7 = vsel %vm198_vm0, %v8342_v47, %v8344_v49  ;;  %v8347_v13 = vsel %vm198_vm0, %v8344_v49, %v8346_v48  ;;  %v8350_v28 = vsel %vm198_vm0, %v8346_v48, %v8340_v43 }
0x17a4   :  { %v8353_v27 = vmul.f32 %v8348_v7, %v11814_v23  ;;  %v8351_v14 = vmul.f32 %v8350_v28, %v11801_v18  ;;  %v8354_v44 = vmul.f32 %v8347_v13, %v11810_v22 }
0x17a6   :  { %v8508_v17 = vpop.permute.xlu0 %8507  ;;  %8360 = vmatpush1.msra.mxu0 %v8351_v14  ;;  %8430 = vmatprep.subr.mxu1 %v8354_v44  ;;  %v8506_v12 = vpop.permute.xlu1 %8505 }
0x17a7   :  { %v8515_v5 = vsel %vm395_vm3, %v8506_v12, %v8508_v17  ;;  %10367 = vmatmul.mubr.msk.f32.vlgmr.msra.gmra.mrb[16].mxu0 %vm1990_vm10, %v8355_v38  ;;  %8431 = vmatpush1.msra.mxu1 %v8353_v27 }
0x17a8   :  { %v8518_v4 = vmul.f32 %v8515_v5, %v11829_v32  ;;  %10368 = vmatmul.mubr.msk.f32.vlgmr.msra.gmra.mrb[16].mxu1 %vm1990_vm10, %v8355_v38  ;;  %8590 = vmatprep.mubr.f32.mxu0 %v13483_v10  ;;  %v10375_v38 = vld [vmem:[%s13528_s5 + $0x18] sm:$0xff] }
0x17a9   :  { %8661 = vmatprep.mubr.f32.mxu1 %v13483_v10 }
0x17aa   :  { %v8510_v18 = vpop.permute.xlu0 %8509  ;;  %8526 = vmatprep.subr.mxu0 %v8518_v4  ;;  %v8512_v22 = vpop.permute.xlu1 %8511 }
0x17ab   :  { %v8514_v23 = vsel %vm395_vm3, %v8508_v17, %v8510_v18  ;;  %v8513_v16 = vsel %vm395_vm3, %v8510_v18, %v8512_v22  ;;  %v8516_v33 = vsel %vm395_vm3, %v8512_v22, %v8506_v12 }
0x17ac   :  { %v8519_v32 = vmul.f32 %v8514_v23, %v11848_v40  ;;  %v8517_v19 = vmul.f32 %v8516_v33, %v11838_v36  ;;  %v8520_v11 = vmul.f32 %v8513_v16, %v11852_v41 }
0x17ae   :  { %v8675_v62 = vpop.permute.xlu0 %8674  ;;  %8527 = vmatpush1.msra.mxu0 %v8517_v19  ;;  %8597 = vmatprep.subr.mxu1 %v8520_v11  ;;  %v8673_v57 = vpop.permute.xlu1 %8672 }
0x17af   :  { %v8682_v51 = vsel %vm591_vm4, %v8673_v57, %v8675_v62  ;;  %10370 = vmatmul.mubr.msk.f32.vlgmr.msra.gmra.mrb[16].mxu0 %vm1990_vm10, %v10369_v60  ;;  %8598 = vmatpush1.msra.mxu1 %v8519_v32 }
0x17b0   :  { %v8685_v45 = vmul.f32 %v8682_v51, %v11873_v52  ;;  %10371 = vmatmul.mubr.msk.f32.vlgmr.msra.gmra.mrb[16].mxu1 %vm1990_vm10, %v10369_v60  ;;  %8757 = vmatprep.mubr.f32.mxu0 %v13483_v10  ;;  %v10381_v60 = vld [vmem:[%s13528_s5 + $0x28] sm:$0xff] }
0x17b1   :  { %8828 = vmatprep.mubr.f32.mxu1 %v13483_v10 }
0x17b2   :  { %v8677_v36 = vpop.permute.xlu0 %8676  ;;  %8693 = vmatprep.subr.mxu0 %v8685_v45  ;;  %v8679_v40 = vpop.permute.xlu1 %8678 }
0x17b3   :  { %v8681_v41 = vsel %vm591_vm4, %v8675_v62, %v8677_v36  ;;  %v8680_v8 = vsel %vm591_vm4, %v8677_v36, %v8679_v40  ;;  %v8683_v47 = vsel %vm591_vm4, %v8679_v40, %v8673_v57 }
0x17b4   :  { %v8686_v52 = vmul.f32 %v8681_v41, %v11889_v58  ;;  %v8684_v43 = vmul.f32 %v8683_v47, %v11879_v54  ;;  %v8687_v3 = vmul.f32 %v8680_v8, %v11893_v59  ;;  %v10384_v47 = vld [vmem:[%s13528_s5 + $0x30] sm:$0xff] }
0x17b6   :  { %v8842_v49 = vpop.permute.xlu0 %8841  ;;  %8694 = vmatpush1.msra.mxu0 %v8684_v43  ;;  %8764 = vmatprep.subr.mxu1 %v8687_v3  ;;  %v8840_v48 = vpop.permute.xlu1 %8839 }
0x17b7   :  { %v8849_v7 = vsel %vm787_vm5, %v8840_v48, %v8842_v49  ;;  %10373 = vmatmul.mubr.msk.f32.vlgmr.msra.gmra.mrb[16].mxu0 %vm1990_vm10, %v10372_v37  ;;  %8765 = vmatpush1.msra.mxu1 %v8686_v52 }
0x17b8   :  { %v8852_v13 = vmul.f32 %v8849_v7, %v11914_v20  ;;  %10374 = vmatmul.mubr.msk.f32.vlgmr.msra.gmra.mrb[16].mxu1 %vm1990_vm10, %v10372_v37  ;;  %8924 = vmatprep.mubr.f32.mxu0 %v13483_v10 }
0x17b9   :  { %8995 = vmatprep.mubr.f32.mxu1 %v13483_v10 }
0x17ba   :  { %v8844_v54 = vpop.permute.xlu0 %8843  ;;  %8860 = vmatprep.subr.mxu0 %v8852_v13  ;;  %v8846_v58 = vpop.permute.xlu1 %8845 }
0x17bb   :  { %v8848_v59 = vsel %vm787_vm5, %v8842_v49, %v8844_v54  ;;  %v8847_v28 = vsel %vm787_vm5, %v8844_v54, %v8846_v58  ;;  %v8850_v27 = vsel %vm787_vm5, %v8846_v58, %v8840_v48  ;;  %v10387_v54 = vld [vmem:[%s13528_s5 + $0x38] sm:$0xff] }
0x17bc   :  { %v8853_v20 = vmul.f32 %v8848_v59, %v11930_v29  ;;  %v8851_v14 = vmul.f32 %v8850_v27, %v11920_v25  ;;  %v8854_v44 = vmul.f32 %v8847_v28, %v11934_v30 }
0x17be   :  { %v9162_v17 = vpop.permute.xlu0 %9161  ;;  %8861 = vmatpush1.msra.mxu0 %v8851_v14  ;;  %8931 = vmatprep.subr.mxu1 %v8854_v44  ;;  %v9160_v12 = vpop.permute.xlu1 %9159 }
0x17bf   :  { %v9166_v5 = vsel %vm1142_vm6, %v9160_v12, %v9162_v17  ;;  %10376 = vmatmul.mubr.msk.f32.vlgmr.msra.gmra.mrb[16].mxu0 %vm1990_vm10, %v10375_v38  ;;  %8932 = vmatpush1.msra.mxu1 %v8853_v20 }
0x17c0   :  { %v9170_v4 = vmul.f32 %v9166_v5, %v11955_v46  ;;  %9011 = vmatprep.subr.mxu0 %v13173_v34  ;;  %10377 = vmatmul.mubr.msk.f32.vlgmr.msra.gmra.mrb[16].mxu1 %vm1990_vm10, %v10375_v38 }
0x17c1   :  { %9012 = vmatpush1.msra.mxu0 %v13171_v61  ;;  %9082 = vmatprep.subr.mxu1 %v13181_v39  ;;  %v10378_v39 = vld [vmem:[%s13528_s5 + $0x20] sm:$0xff] }
0x17c2   :  { %9083 = vmatpush1.msra.mxu1 %v13179_v2  ;;  %v9164_v25 = vpop.permute.xlu0 %9163  ;;  %9178 = vmatprep.subr.mxu0 %v9170_v4  ;;  %v9158_v29 = vpop.permute.xlu1 %9157 }
0x17c3   :  { %v9167_v30 = vsel %vm1142_vm6, %v9158_v29, %v9160_v12  ;;  %v9168_v46 = vsel %vm1142_vm6, %v9164_v25, %v9158_v29  ;;  %9075 = vmatprep.mubr.f32.mxu0 %v13483_v10  ;;  %9146 = vmatprep.mubr.f32.mxu1 %v13483_v10  ;;  %v9165_v61 = vsel %vm1142_vm6, %v9162_v17, %v9164_v25 }
0x17c4   :  { %v9169_v34 = vmul.f32 %v9167_v30, %v13507_v50  ;;  %v9172_v2 = vmul.f32 %v9168_v46, %v13509_v0  ;;  %v9171_v23 = vmul.f32 %v9165_v61, %v13513_v56 }
0x17c6   :  { %v9329_v18 = vpop.permute.xlu0 %9328  ;;  %9249 = vmatprep.subr.mxu1 %v9172_v2  ;;  %v9327_v22 = vpop.permute.xlu1 %9326 }
0x17c7   :  { %v9333_v16 = vsel %vm1338_vm7, %v9327_v22, %v9329_v18  ;;  %10379 = vmatmul.mubr.msk.f32.vlgmr.msra.gmra.mrb[16].mxu0 %vm1990_vm10, %v10378_v39 }
0x17c8   :  { %v9337_v33 = vmul.f32 %v9333_v16, %v13515_v42  ;;  %9179 = vmatpush1.msra.mxu0 %v9169_v34  ;;  %10380 = vmatmul.mubr.msk.f32.vlgmr.msra.gmra.mrb[16].mxu1 %vm1990_vm10, %v10378_v39  ;;  %v9826_v16 = vld [vmem:[%s13529_s21] sm:$0xff] }
0x17c9   :  { %9250 = vmatpush1.msra.mxu1 %v9171_v23  ;;  %9242 = vmatprep.mubr.f32.mxu0 %v13483_v10 }
0x17ca   :  { %v9331_v50 = vpop.permute.xlu0 %9330  ;;  %9345 = vmatprep.subr.mxu0 %v9337_v33  ;;  %v9325_v0 = vpop.permute.xlu1 %9324  ;;  %9313 = vmatprep.mubr.f32.mxu1 %v13483_v10  ;;  %v10048_v33 = vld [vmem:[%s11678_s13] sm:$0x3] }
0x17cb   :  { %v9334_v56 = vsel %vm1338_vm7, %v9325_v0, %v9327_v22  ;;  %v9335_v32 = vsel %vm1338_vm7, %v9331_v50, %v9325_v0  ;;  %v9332_v42 = vsel %vm1338_vm7, %v9329_v18, %v9331_v50 }
0x17cc   :  { %v9336_v19 = vmul.f32 %v9334_v56, %v13516_v15  ;;  %v9339_v11 = vmul.f32 %v9335_v32, %v13520_v21  ;;  %v9338_v51 = vmul.f32 %v9332_v42, %v13519_v1  ;;  %v9825_v32 = vld [vmem:[%s13530_s15] sm:$0xff] }
0x17ce   :  { %v9496_v62 = vpop.permute.xlu0 %9495  ;;  %9416 = vmatprep.subr.mxu1 %v9339_v11  ;;  %v9494_v57 = vpop.permute.xlu1 %9493  ;;  %v9873_v11 = vld [vmem:[%s13531_s16] sm:$0x3] }
0x17cf   :  { %v9500_v45 = vsel %vm1534_vm8, %v9494_v57, %v9496_v62  ;;  %10382 = vmatmul.mubr.msk.f32.vlgmr.msra.gmra.mrb[16].mxu0 %vm1990_vm10, %v10381_v60 }
0x17d0   :  { %v9504_v36 = vmul.f32 %v9500_v45, %v13521_v26  ;;  %9346 = vmatpush1.msra.mxu0 %v9336_v19  ;;  %10383 = vmatmul.mubr.msk.f32.vlgmr.msra.gmra.mrb[16].mxu1 %vm1990_vm10, %v10381_v60 }
0x17d1   :  { %9417 = vmatpush1.msra.mxu1 %v9338_v51  ;;  %9409 = vmatprep.mubr.f32.mxu0 %v13483_v10 }
0x17d2   :  { %v9498_v15 = vpop.permute.xlu0 %9497  ;;  %9512 = vmatprep.subr.mxu0 %v9504_v36  ;;  %v9492_v21 = vpop.permute.xlu1 %9491  ;;  %9480 = vmatprep.mubr.f32.mxu1 %v13483_v10 }
0x17d3   :  { %v9501_v1 = vsel %vm1534_vm8, %v9492_v21, %v9494_v57  ;;  %v9502_v40 = vsel %vm1534_vm8, %v9498_v15, %v9492_v21  ;;  %v9499_v26 = vsel %vm1534_vm8, %v9496_v62, %v9498_v15 }
0x17d4   :  { %v9503_v41 = vmul.f32 %v9501_v1, %v13522_v31  ;;  %v9506_v8 = vmul.f32 %v9502_v40, %v13524_v6  ;;  %v9505_v3 = vmul.f32 %v9499_v26, %v13523_v63 }
0x17d6   :  { %v9663_v52 = vpop.permute.xlu0 %9662  ;;  %9583 = vmatprep.subr.mxu1 %v9506_v8  ;;  %v9661_v43 = vpop.permute.xlu1 %9660 }
0x17d7   :  { %v9667_v37 = vsel %vm1730_vm9, %v9661_v43, %v9663_v52  ;;  %10385 = vmatmul.mubr.msk.f32.vlgmr.msra.gmra.mrb[16].mxu0 %vm1990_vm10, %v10384_v47 }
0x17d8   :  { %v9671_v49 = vmul.f32 %v13125_v53, %v9667_v37  ;;  %9513 = vmatpush1.msra.mxu0 %v9503_v41  ;;  %10386 = vmatmul.mubr.msk.f32.vlgmr.msra.gmra.mrb[16].mxu1 %vm1990_vm10, %v10384_v47  ;;  %v10047_v37 = vld [vmem:[%s11673_s4] sm:$0x3] }
0x17d9   :  { %9584 = vmatpush1.msra.mxu1 %v9505_v3  ;;  %9576 = vmatprep.mubr.f32.mxu0 %v13483_v10  ;;  %v13534_v3 = vld [vmem:[#allocation40_spill] sm:$0xff] }
0x17da   :  { %v9665_v31 = vpop.permute.xlu0 %9664  ;;  %9679 = vmatprep.subr.mxu0 %v9671_v49  ;;  %v9659_v6 = vpop.permute.xlu1 %9658  ;;  %9647 = vmatprep.mubr.f32.mxu1 %v13483_v10  ;;  %v11499_v49 = vmov 1983009808  }
0x17db   :  { %v9668_v63 = vsel %vm1730_vm9, %v9659_v6, %v9661_v43  ;;  %v9669_v48 = vsel %vm1730_vm9, %v9665_v31, %v9659_v6  ;;  %v9666_v53 = vsel %vm1730_vm9, %v9663_v52, %v9665_v31  ;;  %v9872_v52 = vld [vmem:[%s13532_s18] sm:$0x3]  ;;  %v13533_v43 = vmov 0.0|0.0  }
0x17dc   :  { %v9670_v7 = vmul.f32 %v13129_v24, %v9668_v63  ;;  %v9673_v13 = vmul.f32 %v13157_v35, %v9669_v48  ;;  %v9672_v58 = vmul.f32 %v13147_v55, %v9666_v53  ;;  %v10031_v31 = vunpack.c.l.s4 %v11499_v49 }
0x17de   :  { %9750 = vmatprep.subr.mxu1 %v9673_v13  ;;  %v10032_v6 = vunpack.c.0.s8 %v10031_v31 }
0x17df   :  { %10388 = vmatmul.mubr.msk.f32.vlgmr.msra.gmra.mrb[16].mxu0 %vm1990_vm10, %v10387_v54 }
0x17e0   :  { %9680 = vmatpush1.msra.mxu0 %v9670_v7  ;;  %10389 = vmatmul.mubr.msk.f32.vlgmr.msra.gmra.mrb[16].mxu1 %vm1990_vm10, %v10387_v54 }
0x17e1   :  { %9751 = vmatpush1.msra.mxu1 %v9672_v58  ;;  %9743 = vmatprep.mubr.f32.mxu0 %v13483_v10 }
0x17e2   :  { %9814 = vmatprep.mubr.f32.mxu1 %v13483_v10 }
0x17e7   :  { %10391 = vmatmul.mubr.msk.f32.vlgmr.msra.gmra.mrb[16].mxu0 %vm1990_vm10, %v10390_v9 }
0x17e8   :  { %10392 = vmatmul.mubr.msk.f32.vlgmr.msra.gmra.mrb[16].mxu1 %vm1990_vm10, %v10390_v9  ;;  %9946 = vmatprep.mubr.f32.mxu0 %v13483_v10 }
0x17e9   :  { %10017 = vmatprep.mubr.f32.mxu1 %v13483_v10 }
0x17eb   :  { %v8336_v24 = vpop.permute.xlu1 %8335 }
0x18ba   :  { %v9745_v55 = vpop.f32.mrb[16].mxu0 }
0x18bb   :  { %v11150_v35 = vadd.f32 %v9745_v55, %v8336_v24  ;;  %v9747_v59 = vpop.f32.mrb[17].mxu0  ;;  %v9816_v28 = vpop.f32.mrb[16].mxu1 }
0x18bc   :  { %v11151_v27 = vadd.f32 %v9747_v59, %v8336_v24  ;;  %v9818_v20 = vpop.f32.mrb[17].mxu1  ;;  %v11152_v44 = vadd.f32 %v9816_v28, %v8336_v24 }
0x18bd   :  { %v11153_v17 = vadd.f32 %v9818_v20, %v8336_v24  ;;  %v13535_v24 = vld [vmem:[#allocation24_spill] sm:$0xff] }
0x18be   :  { %v9827_v14 = vadd.f32 %v11151_v27, %v11150_v35 }
0x18c0   :  { %v9828_v38 = vadd.f32 %v11152_v44, %v9827_v14 }
0x18c2   :  { %v9829_v12 = vadd.f32 %v11153_v17, %v9828_v38 }
0x18c4   :  { %9830 = vadd.xlane.f32.xlu0 %v9829_v12 }
0x1951   :  { %v9831_v5 = vpop.xlane.xlu0 %9830 }
0x1952   :  { %v9832_v4 = vmul.f32 0.001953125, %v9831_v5 }
0x1954   :  { %v9833_v25 = vsub.f32 %v11150_v35, %v9832_v4  ;;  %v9834_v29 = vsub.f32 %v11151_v27, %v9832_v4  ;;  %v9835_v30 = vsub.f32 %v11152_v44, %v9832_v4  ;;  %v9836_v46 = vsub.f32 %v11153_v17, %v9832_v4 }
0x1956   :  { %v9837_v61 = vmul.f32 %v9833_v25, %v9833_v25  ;;  %v9838_v34 = vmul.f32 %v9834_v29, %v9834_v29  ;;  %v9839_v2 = vmul.f32 %v9835_v30, %v9835_v30  ;;  %v9840_v18 = vmul.f32 %v9836_v46, %v9836_v46 }
0x1958   :  { %v9841_v39 = vadd.f32 %v9838_v34, %v9837_v61 }
0x195a   :  { %v9842_v22 = vadd.f32 %v9841_v39, %v9839_v2 }
0x195c   :  { %v9843_v23 = vadd.f32 %v9842_v22, %v9840_v18 }
0x195e   :  { %9844 = vadd.xlane.f32.xlu1 %v9843_v23 }
0x196f   :  { %9861 = vperm.xlu1 %11385, %v9826_v16  }
0x1973   :  { %10051 = vperm.xlu1 %11385, %v10048_v33  }
0x19eb   :  { %v9845_v50 = vpop.xlane.xlu1 %9844 }
0x19ec   :  { %v9846_v0 = vmul.f32 0.001953125, %v9845_v50 }
0x19ee   :  { %v9847_v56 = vadd.f32 1e-05, %v9846_v0 }
0x19ef   :  { %v9862_v36 = vpop.permute.xlu1 %9861 }
0x19f0   :  { %11412 = vrsqrt.f32 %v9847_v56 }
0x19f3   :  { %v10052_v28 = vpop.permute.xlu1 %10051 }
0x19fa   :  { %v11413_v42 = vpop.eup %11412 }
0x19fb   :  { %v9849_v19 = vmul.f32 %v11413_v42, %v9825_v32 }
0x19fd   :  { %9852 = vperm.xlu0 %11384, %v9849_v19  }
0x1a01   :  { %9876 = vperm.xlu0 %11384, %v9873_v11  }
0x1a7c   :  { %v9853_v60 = vpop.permute.xlu0 %9852 }
0x1a7d   :  { %v9855_v62 = vmul.f32 %v9853_v60, %v9833_v25  ;;  %v9856_v57 = vmul.f32 %v9853_v60, %v9834_v29  ;;  %v9857_v51 = vmul.f32 %v9853_v60, %v9835_v30  ;;  %v9858_v45 = vmul.f32 %v9853_v60, %v9836_v46 }
0x1a7f   :  { %v9864_v15 = vadd.f32 %v9862_v36, %v9855_v62  ;;  %v9866_v21 = vadd.f32 %v9862_v36, %v9857_v51  ;;  %v9865_v1 = vadd.f32 %v9862_v36, %v9856_v57  ;;  %v9867_v40 = vadd.f32 %v9862_v36, %v9858_v45 }
0x1a80   :  { %v9877_v63 = vpop.permute.xlu0 %9876 }
0x1a81   :  { %v9869_v26 = vmax.f32 %v9865_v1, 0.0  ;;  %v9871_v41 = vmax.f32 %v9867_v40, 0.0  ;;  %v9868_v8 = vmax.f32 %v9864_v15, 0.0  ;;  %v9870_v47 = vmax.f32 %v9866_v21, 0.0 }
0x1a83   :  { %9882 = vmatprep.subr.mxu0 %v9869_v26  ;;  %9953 = vmatprep.subr.mxu1 %v9871_v41 }
0x1a84   :  { %9883 = vmatpush1.msra.mxu0 %v9868_v8  ;;  %9954 = vmatpush1.msra.mxu1 %v9870_v47 }
0x1a85   :  { %10393 = vmatmul.mubr.msk.f32.vlgmr.msra.gmra.mrb[18].mxu0 %vm1990_vm10, %v9872_v52  ;;  %10394 = vmatmul.mubr.msk.f32.vlgmr.msra.gmra.mrb[18].mxu1 %vm1990_vm10, %v9872_v52 }
0x1a86   :  { %11127 = vmatprep.subr.bf16.mxu0 %v13533_v43  ;;  %10684 = vmatprep.mubr.msk.f32.mxu0 %vm11498_vm12, %v13483_v10  ;;  %v10035_v10 = vsub.s32 %v10032_v6, %v13535_v24 }
0x1a87   :  { %11129 = vmatpush3.bf16.msra.mxu0 %v13534_v3 }
0x1a8a   :  { %10685 = vmatmul.mubr.msk.f32.vlgmr.msra.gmra.mrb[20].mxu0 %vm4661_vm11, %v10047_v37 }
0x1b58   :  { %v9948_v48 = vpop.f32.mrb[18].mxu0  ;;  %v10019_v53 = vpop.f32.mrb[18].mxu1 }
0x1b59   :  { %v9949_v7 = vadd.f32 %v9948_v48, %v9877_v63  ;;  %v10020_v13 = vadd.f32 %v10019_v53, %v9877_v63  ;;  %v9950_v54 = vpop.f32.mrb[19].mxu0  ;;  %v10021_v58 = vpop.f32.mrb[19].mxu1 }
0x1b5a   :  { %v9951_v9 = vadd.f32 %v9950_v54, %v9877_v63  ;;  %v10022_v55 = vadd.f32 %v10021_v58, %v9877_v63 }
0x1b5c   :  { %v10028_v35 = vcombine.low %v9949_v7, %v9951_v9  ;;  %v10029_v59 = vcombine.low %v10020_v13, %v10022_v55 }
0x1b5d   :  { %v10123_v27 = vpop.f32.mrb[20].mxu0 }
0x1b5e   :  { %v10036_v20 = vrot.slane %v10028_v35, %v10035_v10  ;;  %v10043_v14 = vrot.slane %v10029_v59, %v10035_v10  ;;  %v10124_v44 = vadd.f32 %v10123_v27, %v10052_v28  ;;  %v10686_v38 = vpop.f32.mrb[21].mxu0 }
0x1b60   :  { %v10044_v17 = vcombine.low %v10036_v20, %v10043_v14  ;;  %10127 = vst [vmem:[%s11688_s27] sm:$0x3] %v10124_v44 }
0x1b62   :  { %10046 = vst [vmem:[%s11683_s20] sm:$0xff] %v10044_v17 }
0x1b63   :  { %10136 = vsyncpa [#allocation3], 1 }

</bundles_post_ra>
